<compile_context>
chip_gen: v5e
topology: v5e:2x2
jax: 0.10.0
libtpu: 0.0.40
codegen_flags: <defaults>
</compile_context>

<pallas_src>
import math

import jax
import jax.numpy as jnp
from jax.experimental import pallas as pl
from jax.experimental.pallas import tpu as pltpu

# ---------------- model hyper-parameters (small, deterministic) -------------
HIDDEN_DIM = 32
FEATURE_SIZE = (4, 4)                         # -> num_queries = 16
NUM_QUERIES = FEATURE_SIZE[0] * FEATURE_SIZE[1]
NHEAD = 4
HEAD_DIM = HIDDEN_DIM // NHEAD
DIM_FEEDFORWARD = 64
SEQ_LEN = 16                                  # memory / out sequence length
BATCH = 2
LN_EPS = 1e-5                                 # torch.nn.LayerNorm default

assert HIDDEN_DIM % NHEAD == 0, "hidden_dim must be divisible by nhead"


# ----------------------------- kernel ---------------------------------------
def _decoder_layer_kernel(
    mem_ref, src_ref, emb_ref,
    sa_win_ref, sa_bin_ref, sa_wo_ref, sa_bo_ref,
    ca_win_ref, ca_bin_ref, ca_wo_ref, ca_bo_ref,
    l1w_ref, l1b_ref, l2w_ref, l2b_ref,
    n1g_ref, n1b_ref, n2g_ref, n2b_ref, n3g_ref, n3b_ref,
    o_ref,
):
    f32 = jnp.float32
    D, L, S, B = HIDDEN_DIM, NUM_QUERIES, SEQ_LEN, BATCH
    H, HD = NHEAD, HEAD_DIM
    scale = 1.0 / math.sqrt(HD)

    mem_bm = mem_ref[...]                     # (B*S, D) batch-major, lane-dense
    src_bm = src_ref[...]                     # (B*S, D)
    emb = emb_ref[...]                        # (L, D)  learned queries

    def layernorm(x, g, b):
        mu = jnp.mean(x, axis=-1, keepdims=True)
        xc = x - mu
        var = jnp.mean(xc * xc, axis=-1, keepdims=True)
        return xc * jax.lax.rsqrt(var + LN_EPS) * g + b

    def mha(q_rows, kv_rows, w_in_t, b_in, wo_t, bo, broadcast_q):
        """q_rows: (nq, D), kv_rows: (B*S, D).  Returns (B*L, D)."""
        nq = q_rows.shape[0]
        # ---- fused QKV projection: one MXU pass over the stacked slab ------
        stacked = jnp.concatenate([q_rows, kv_rows], axis=0)        # (nq+B*S, D)
        proj = jnp.dot(stacked, w_in_t, preferred_element_type=f32) + b_in
        q = proj[:nq, :D]                                           # (nq, D)
        k = proj[nq:, D:2 * D].reshape(B, S, D)                     # (B, S, D)
        v = proj[nq:, 2 * D:].reshape(B, S, D)                      # (B, S, D)
        if broadcast_q:                                             # Q batch-invariant
            q = jnp.concatenate([q] * B, axis=0)                    # (B*L, D)
        qh = q.reshape(B, L, D)

        # ---- per-head scores, concatenated -> ONE wide softmax -------------
        scores = jnp.concatenate(
            [jnp.einsum('bld,bsd->bls',
                        qh[:, :, h * HD:(h + 1) * HD],
                        k[:, :, h * HD:(h + 1) * HD],
                        preferred_element_type=f32)
             for h in range(H)], axis=1) * scale                    # (B, H*L, S)
        p = jnp.exp(scores - jnp.max(scores, axis=-1, keepdims=True))
        p = p / jnp.sum(p, axis=-1, keepdims=True)                  # exact denom

        # ---- per-head PV, lane-concat heads -> ONE output projection -------
        ctx = jnp.concatenate(
            [jnp.einsum('bls,bsd->bld',
                        p[:, h * L:(h + 1) * L, :],
                        v[:, :, h * HD:(h + 1) * HD],
                        preferred_element_type=f32)
             for h in range(H)], axis=-1)                           # (B, L, D)
        return jnp.dot(ctx.reshape(B * L, D), wo_t,
                       preferred_element_type=f32) + bo             # (B*L, D)

    # ---- self attention: Q = learned queries, K = V = memory (module spec) --
    tgt = jnp.concatenate([emb] * B, axis=0)                        # (B*L, D) residual
    tgt2 = mha(emb, mem_bm, sa_win_ref[...], sa_bin_ref[...],
               sa_wo_ref[...], sa_bo_ref[...], broadcast_q=True)
    tgt = layernorm(tgt + tgt2, n1g_ref[...], n1b_ref[...])

    # ---- cross attention: Q = tgt, K = V = `out` (module spec) --------------
    tgt2 = mha(tgt, src_bm, ca_win_ref[...], ca_bin_ref[...],
               ca_wo_ref[...], ca_bo_ref[...], broadcast_q=False)
    tgt = layernorm(tgt + tgt2, n2g_ref[...], n2b_ref[...])

    # ---- feed-forward: linear2(relu(linear1(x)))  (dropout = identity) ------
    hmid = jnp.maximum(
        jnp.dot(tgt, l1w_ref[...], preferred_element_type=f32) + l1b_ref[...], 0.0)
    tgt2 = jnp.dot(hmid, l2w_ref[...], preferred_element_type=f32) + l2b_ref[...]
    tgt = layernorm(tgt + tgt2, n3g_ref[...], n3b_ref[...])

    # ---- dense (B*L, D) store; the (L,B,D) permute happens in the wrapper ---
    o_ref[...] = tgt.astype(o_ref.dtype)


# ----------------------------- wrapper ---------------------------------------
def _prep_mha_params(in_w, in_b, out_w, out_b):
    """PyTorch-layout MHA params -> kernel (x @ w) layout, fused in-projection."""
    return (in_w.T, in_b, out_w.T, out_b)     # (D,3D), (1,3D), (D,D), (1,D)


@jax.jit
def transformer_decoder_layer(out_sbd, memory_sbd, params):
    """out_sbd, memory_sbd: (S, B, D) seq-first (PyTorch layout).
    Returns (L, B, D) with L = num_queries, matching forward_post."""
    S, B, D = memory_sbd.shape
    L = params["embed"].shape[0]

    # tiny (4 KB) layout fixes done in XLA: lane/sublane-dense kernel inputs
    mem_bm = jnp.transpose(memory_sbd, (1, 0, 2)).reshape(B * S, D)
    src_bm = jnp.transpose(out_sbd, (1, 0, 2)).reshape(B * S, D)

    sa = _prep_mha_params(params["sa_in_w"], params["sa_in_b"],
                          params["sa_out_w"], params["sa_out_b"])
    ca = _prep_mha_params(params["ca_in_w"], params["ca_in_b"],
                          params["ca_out_w"], params["ca_out_b"])

    inputs = (
        mem_bm, src_bm, params["embed"],
        *sa, *ca,
        params["lin1_w"].T, params["lin1_b"],
        params["lin2_w"].T, params["lin2_b"],
        params["n1_g"], params["n1_b"],
        params["n2_g"], params["n2_b"],
        params["n3_g"], params["n3_b"],
    )

    # grid-less call: whole problem (<200 KB) resident in VMEM, no pipeline
    # scaffolding / double-buffering.
    res = pl.pallas_call(
        _decoder_layer_kernel,
        out_shape=jax.ShapeDtypeStruct((B * L, D), jnp.float32),
        in_specs=[pl.BlockSpec(memory_space=pltpu.MemorySpace.VMEM)
                  for _ in inputs],
        out_specs=pl.BlockSpec(memory_space=pltpu.MemorySpace.VMEM),
    )(*inputs)

    return jnp.transpose(res.reshape(B, L, D), (1, 0, 2))   # (L, B, D)


# -------------------------- pure-JAX reference --------------------------------
def _reference(out_sbd, memory_sbd, params, nhead=NHEAD):
    D = params["embed"].shape[1]
    hd = D // nhead

    def layernorm(x, g, b):
        mu = jnp.mean(x, axis=-1, keepdims=True)
        var = jnp.mean((x - mu) ** 2, axis=-1, keepdims=True)
        return (x - mu) / jnp.sqrt(var + LN_EPS) * g + b

    def mha(q_in, k_in, v_in, in_w, in_b, out_w, out_b):
        wq, wk, wv = in_w[:D], in_w[D:2 * D], in_w[2 * D:]
        bq, bk, bv = in_b[0, :D], in_b[0, D:2 * D], in_b[0, 2 * D:]
        q = q_in @ wq.T + bq
        k = k_in @ wk.T + bk
        v = v_in @ wv.T + bv
        outs = []
        for h in range(nhead):
            sl = slice(h * hd, (h + 1) * hd)
            s = (q[:, sl] @ k[:, sl].T) / math.sqrt(hd)
            p = jax.nn.softmax(s, axis=-1)
            outs.append(p @ v[:, sl])
        return jnp.concatenate(outs, -1) @ out_w.T + out_b[0]

    def one(mem, src):
        tgt = params["embed"]
        t2 = mha(tgt, mem, mem, params["sa_in_w"], params["sa_in_b"],
                 params["sa_out_w"], params["sa_out_b"])
        tgt = layernorm(tgt + t2, params["n1_g"][0], params["n1_b"][0])
        t2 = mha(tgt, src, src, params["ca_in_w"], params["ca_in_b"],
                 params["ca_out_w"], params["ca_out_b"])
        tgt = layernorm(tgt + t2, params["n2_g"][0], params["n2_b"][0])
        h = jnp.maximum(tgt @ params["lin1_w"].T + params["lin1_b"][0], 0.0)
        t2 = h @ params["lin2_w"].T + params["lin2_b"][0]
        return layernorm(tgt + t2, params["n3_g"][0], params["n3_b"][0])

    mem_bsd = jnp.transpose(memory_sbd, (1, 0, 2))
    out_bsd = jnp.transpose(out_sbd, (1, 0, 2))
    res = jax.vmap(one)(mem_bsd, out_bsd)            # (B, L, D)
    return jnp.transpose(res, (1, 0, 2))             # (L, B, D)


# ------------------------------ main ------------------------------------------
def _init_params(key):
    D, F, L = HIDDEN_DIM, DIM_FEEDFORWARD, NUM_QUERIES
    ks = jax.random.split(key, 12)
    return {
        "embed":    jax.random.normal(ks[0], (L, D), jnp.float32) * 0.02,
        "sa_in_w":  jax.random.normal(ks[1], (3 * D, D), jnp.float32) * 0.05,
        "sa_in_b":  jax.random.normal(ks[2], (1, 3 * D), jnp.float32) * 0.01,
        "sa_out_w": jax.random.normal(ks[3], (D, D), jnp.float32) * 0.05,
        "sa_out_b": jnp.zeros((1, D), jnp.float32),
        "ca_in_w":  jax.random.normal(ks[4], (3 * D, D), jnp.float32) * 0.05,
        "ca_in_b":  jax.random.normal(ks[5], (1, 3 * D), jnp.float32) * 0.01,
        "ca_out_w": jax.random.normal(ks[6], (D, D), jnp.float32) * 0.05,
        "ca_out_b": jnp.zeros((1, D), jnp.float32),
        "lin1_w":   jax.random.normal(ks[7], (F, D), jnp.float32) * 0.05,
        "lin1_b":   jax.random.normal(ks[8], (1, F), jnp.float32) * 0.01,
        "lin2_w":   jax.random.normal(ks[9], (D, F), jnp.float32) * 0.05,
        "lin2_b":   jax.random.normal(ks[10], (1, D), jnp.float32) * 0.01,
        "n1_g": jnp.ones((1, D), jnp.float32), "n1_b": jnp.zeros((1, D), jnp.float32),
        "n2_g": jnp.ones((1, D), jnp.float32), "n2_b": jnp.zeros((1, D), jnp.float32),
        "n3_g": jnp.ones((1, D), jnp.float32), "n3_b": jnp.zeros((1, D), jnp.float32),
    }


if __name__ == "__main__":
    key = jax.random.PRNGKey(0)
    kp, km, ko = jax.random.split(key, 3)
    params = _init_params(kp)

    # PyTorch layout: (S, B, D) for memory and out.
    memory = jax.random.normal(km, (SEQ_LEN, BATCH, HIDDEN_DIM), jnp.float32)
    out_in = jax.random.normal(ko, (SEQ_LEN, BATCH, HIDDEN_DIM), jnp.float32)

    y = transformer_decoder_layer(out_in, memory, params)
    y = jax.block_until_ready(y)

    y_ref = _reference(out_in, memory, params)
    assert y.shape == (NUM_QUERIES, BATCH, HIDDEN_DIM)
    # softmax denominator is now exact; remaining delta vs. the XLA reference comes
    # only from default MXU matmul precision, so keep a modest tolerance.
    err = float(jnp.max(jnp.abs(y - y_ref)))
    assert jnp.allclose(y, y_ref, atol=5e-3, rtol=5e-3), err

    print("KERNEL_OK")
</pallas_src>

<mosaic_0001>
module attributes {stable_mosaic.version = 11 : i64} {
  func.func @_decoder_layer_kernel(%arg0: memref<32x32xf32, #tpu.memory_space<vmem>>, %arg1: memref<32x32xf32, #tpu.memory_space<vmem>>, %arg2: memref<16x32xf32, #tpu.memory_space<vmem>>, %arg3: memref<32x96xf32, #tpu.memory_space<vmem>>, %arg4: memref<1x96xf32, #tpu.memory_space<vmem>>, %arg5: memref<32x32xf32, #tpu.memory_space<vmem>>, %arg6: memref<1x32xf32, #tpu.memory_space<vmem>>, %arg7: memref<32x96xf32, #tpu.memory_space<vmem>>, %arg8: memref<1x96xf32, #tpu.memory_space<vmem>>, %arg9: memref<32x32xf32, #tpu.memory_space<vmem>>, %arg10: memref<1x32xf32, #tpu.memory_space<vmem>>, %arg11: memref<32x64xf32, #tpu.memory_space<vmem>>, %arg12: memref<1x64xf32, #tpu.memory_space<vmem>>, %arg13: memref<64x32xf32, #tpu.memory_space<vmem>>, %arg14: memref<1x32xf32, #tpu.memory_space<vmem>>, %arg15: memref<1x32xf32, #tpu.memory_space<vmem>>, %arg16: memref<1x32xf32, #tpu.memory_space<vmem>>, %arg17: memref<1x32xf32, #tpu.memory_space<vmem>>, %arg18: memref<1x32xf32, #tpu.memory_space<vmem>>, %arg19: memref<1x32xf32, #tpu.memory_space<vmem>>, %arg20: memref<1x32xf32, #tpu.memory_space<vmem>>, %arg21: memref<32x32xf32, #tpu.memory_space<vmem>>) attributes {dimension_semantics = [], scalar_prefetch = 0 : i64, scratch_operands = 0 : i64, tpu.core_type = #tpu.core_type<tc>} {
    %c0 = arith.constant 0 : index
    %c0_0 = arith.constant 0 : index
    %0 = vector.load %arg0[%c0, %c0_0] : memref<32x32xf32, #tpu.memory_space<vmem>>, vector<32x32xf32>
    %c0_1 = arith.constant 0 : index
    %c0_2 = arith.constant 0 : index
    %1 = vector.load %arg1[%c0_1, %c0_2] : memref<32x32xf32, #tpu.memory_space<vmem>>, vector<32x32xf32>
    %c0_3 = arith.constant 0 : index
    %c0_4 = arith.constant 0 : index
    %2 = vector.load %arg2[%c0_3, %c0_4] : memref<16x32xf32, #tpu.memory_space<vmem>>, vector<16x32xf32>
    %3 = tpu.concatenate %2, %2 in 0 : vector<16x32xf32>, vector<16x32xf32> -> vector<32x32xf32>
    %c0_5 = arith.constant 0 : index
    %c0_6 = arith.constant 0 : index
    %4 = vector.load %arg3[%c0_5, %c0_6] : memref<32x96xf32, #tpu.memory_space<vmem>>, vector<32x96xf32>
    %c0_7 = arith.constant 0 : index
    %c0_8 = arith.constant 0 : index
    %5 = vector.load %arg4[%c0_7, %c0_8] : memref<1x96xf32, #tpu.memory_space<vmem>>, vector<1x96xf32>
    %c0_9 = arith.constant 0 : index
    %c0_10 = arith.constant 0 : index
    %6 = vector.load %arg5[%c0_9, %c0_10] : memref<32x32xf32, #tpu.memory_space<vmem>>, vector<32x32xf32>
    %c0_11 = arith.constant 0 : index
    %c0_12 = arith.constant 0 : index
    %7 = vector.load %arg6[%c0_11, %c0_12] : memref<1x32xf32, #tpu.memory_space<vmem>>, vector<1x32xf32>
    %8 = tpu.concatenate %2, %0 in 0 : vector<16x32xf32>, vector<32x32xf32> -> vector<48x32xf32>
    %cst = arith.constant dense<0.000000e+00> : vector<48x96xf32>
    %9 = tpu.matmul %8, %4, %cst {dimension_numbers = #tpu.dot_dimension_numbers<[1], [0], [0], [1], [0, 0, 1, 1], [], []>} : vector<48x32xf32>, vector<32x96xf32>, vector<48x96xf32> -> vector<48x96xf32>
    %10 = vector.broadcast %5 : vector<1x96xf32> to vector<48x96xf32>
    %11 = arith.addf %9, %10 : vector<48x96xf32>
    %12 = vector.extract_strided_slice %11 {offsets = [0, 0], sizes = [16, 32], strides = [1, 1]} : vector<48x96xf32> to vector<16x32xf32>
    %13 = vector.extract_strided_slice %11 {offsets = [16, 32], sizes = [32, 32], strides = [1, 1]} : vector<48x96xf32> to vector<32x32xf32>
    %14 = vector.shape_cast %13 : vector<32x32xf32> to vector<2x16x32xf32>
    %15 = vector.extract_strided_slice %11 {offsets = [16, 64], sizes = [32, 32], strides = [1, 1]} : vector<48x96xf32> to vector<32x32xf32>
    %16 = vector.shape_cast %15 : vector<32x32xf32> to vector<2x16x32xf32>
    %17 = tpu.concatenate %12, %12 in 0 : vector<16x32xf32>, vector<16x32xf32> -> vector<32x32xf32>
    %18 = vector.shape_cast %17 : vector<32x32xf32> to vector<2x16x32xf32>
    %19 = vector.extract_strided_slice %18 {offsets = [0, 0, 0], sizes = [2, 16, 8], strides = [1, 1, 1]} : vector<2x16x32xf32> to vector<2x16x8xf32>
    %20 = vector.extract_strided_slice %14 {offsets = [0, 0, 0], sizes = [2, 16, 8], strides = [1, 1, 1]} : vector<2x16x32xf32> to vector<2x16x8xf32>
    "tpu.trace_start"() <{level = 10 : i32, message = "bld,bsd->bls"}> : () -> ()
    %cst_13 = arith.constant dense<0.000000e+00> : vector<2x16x16xf32>
    %21 = tpu.matmul %19, %20, %cst_13 {dimension_numbers = #tpu.dot_dimension_numbers<[2], [2], [1], [1], [0, 0, 0, 1, 1, 1], [0], [0]>} : vector<2x16x8xf32>, vector<2x16x8xf32>, vector<2x16x16xf32> -> vector<2x16x16xf32>
    "tpu.trace_stop"() : () -> ()
    %22 = vector.extract_strided_slice %18 {offsets = [0, 0, 8], sizes = [2, 16, 8], strides = [1, 1, 1]} : vector<2x16x32xf32> to vector<2x16x8xf32>
    %23 = vector.extract_strided_slice %14 {offsets = [0, 0, 8], sizes = [2, 16, 8], strides = [1, 1, 1]} : vector<2x16x32xf32> to vector<2x16x8xf32>
    "tpu.trace_start"() <{level = 10 : i32, message = "bld,bsd->bls"}> : () -> ()
    %cst_14 = arith.constant dense<0.000000e+00> : vector<2x16x16xf32>
    %24 = tpu.matmul %22, %23, %cst_14 {dimension_numbers = #tpu.dot_dimension_numbers<[2], [2], [1], [1], [0, 0, 0, 1, 1, 1], [0], [0]>} : vector<2x16x8xf32>, vector<2x16x8xf32>, vector<2x16x16xf32> -> vector<2x16x16xf32>
    "tpu.trace_stop"() : () -> ()
    %25 = vector.extract_strided_slice %18 {offsets = [0, 0, 16], sizes = [2, 16, 8], strides = [1, 1, 1]} : vector<2x16x32xf32> to vector<2x16x8xf32>
    %26 = vector.extract_strided_slice %14 {offsets = [0, 0, 16], sizes = [2, 16, 8], strides = [1, 1, 1]} : vector<2x16x32xf32> to vector<2x16x8xf32>
    "tpu.trace_start"() <{level = 10 : i32, message = "bld,bsd->bls"}> : () -> ()
    %cst_15 = arith.constant dense<0.000000e+00> : vector<2x16x16xf32>
    %27 = tpu.matmul %25, %26, %cst_15 {dimension_numbers = #tpu.dot_dimension_numbers<[2], [2], [1], [1], [0, 0, 0, 1, 1, 1], [0], [0]>} : vector<2x16x8xf32>, vector<2x16x8xf32>, vector<2x16x16xf32> -> vector<2x16x16xf32>
    "tpu.trace_stop"() : () -> ()
    %28 = vector.extract_strided_slice %18 {offsets = [0, 0, 24], sizes = [2, 16, 8], strides = [1, 1, 1]} : vector<2x16x32xf32> to vector<2x16x8xf32>
    %29 = vector.extract_strided_slice %14 {offsets = [0, 0, 24], sizes = [2, 16, 8], strides = [1, 1, 1]} : vector<2x16x32xf32> to vector<2x16x8xf32>
    "tpu.trace_start"() <{level = 10 : i32, message = "bld,bsd->bls"}> : () -> ()
    %cst_16 = arith.constant dense<0.000000e+00> : vector<2x16x16xf32>
    %30 = tpu.matmul %28, %29, %cst_16 {dimension_numbers = #tpu.dot_dimension_numbers<[2], [2], [1], [1], [0, 0, 0, 1, 1, 1], [0], [0]>} : vector<2x16x8xf32>, vector<2x16x8xf32>, vector<2x16x16xf32> -> vector<2x16x16xf32>
    "tpu.trace_stop"() : () -> ()
    %31 = tpu.concatenate %21, %24, %27, %30 in 1 : vector<2x16x16xf32>, vector<2x16x16xf32>, vector<2x16x16xf32>, vector<2x16x16xf32> -> vector<2x64x16xf32>
    %cst_17 = arith.constant 0.353553385 : f32
    %32 = vector.broadcast %cst_17 : f32 to vector<2x64x16xf32>
    %33 = arith.mulf %31, %32 : vector<2x64x16xf32>
    %cst_18 = arith.constant dense<0xFF800000> : vector<2x64xf32>
    %34 = vector.multi_reduction <maximumf>, %33, %cst_18 [2] : vector<2x64x16xf32> to vector<2x64xf32>
    %35 = vector.shape_cast %34 : vector<2x64xf32> to vector<2x64x1xf32>
    %36 = vector.broadcast %35 : vector<2x64x1xf32> to vector<2x64x16xf32>
    %37 = arith.subf %33, %36 : vector<2x64x16xf32>
    %38 = math.exp %37 : vector<2x64x16xf32>
    %cst_19 = arith.constant dense<0.000000e+00> : vector<2x64xf32>
    %39 = vector.multi_reduction <add>, %38, %cst_19 [2] : vector<2x64x16xf32> to vector<2x64xf32>
    %40 = vector.shape_cast %39 : vector<2x64xf32> to vector<2x64x1xf32>
    %41 = vector.broadcast %40 : vector<2x64x1xf32> to vector<2x64x16xf32>
    %42 = arith.divf %38, %41 : vector<2x64x16xf32>
    %43 = vector.extract_strided_slice %42 {offsets = [0, 0, 0], sizes = [2, 16, 16], strides = [1, 1, 1]} : vector<2x64x16xf32> to vector<2x16x16xf32>
    %44 = vector.extract_strided_slice %16 {offsets = [0, 0, 0], sizes = [2, 16, 8], strides = [1, 1, 1]} : vector<2x16x32xf32> to vector<2x16x8xf32>
    "tpu.trace_start"() <{level = 10 : i32, message = "bls,bsd->bld"}> : () -> ()
    %cst_20 = arith.constant dense<0.000000e+00> : vector<2x16x8xf32>
    %45 = tpu.matmul %43, %44, %cst_20 {dimension_numbers = #tpu.dot_dimension_numbers<[2], [1], [1], [2], [0, 0, 0, 1, 1, 2], [0], [0]>} : vector<2x16x16xf32>, vector<2x16x8xf32>, vector<2x16x8xf32> -> vector<2x16x8xf32>
    "tpu.trace_stop"() : () -> ()
    %46 = vector.extract_strided_slice %42 {offsets = [0, 16, 0], sizes = [2, 16, 16], strides = [1, 1, 1]} : vector<2x64x16xf32> to vector<2x16x16xf32>
    %47 = vector.extract_strided_slice %16 {offsets = [0, 0, 8], sizes = [2, 16, 8], strides = [1, 1, 1]} : vector<2x16x32xf32> to vector<2x16x8xf32>
    "tpu.trace_start"() <{level = 10 : i32, message = "bls,bsd->bld"}> : () -> ()
    %cst_21 = arith.constant dense<0.000000e+00> : vector<2x16x8xf32>
    %48 = tpu.matmul %46, %47, %cst_21 {dimension_numbers = #tpu.dot_dimension_numbers<[2], [1], [1], [2], [0, 0, 0, 1, 1, 2], [0], [0]>} : vector<2x16x16xf32>, vector<2x16x8xf32>, vector<2x16x8xf32> -> vector<2x16x8xf32>
    "tpu.trace_stop"() : () -> ()
    %49 = vector.extract_strided_slice %42 {offsets = [0, 32, 0], sizes = [2, 16, 16], strides = [1, 1, 1]} : vector<2x64x16xf32> to vector<2x16x16xf32>
    %50 = vector.extract_strided_slice %16 {offsets = [0, 0, 16], sizes = [2, 16, 8], strides = [1, 1, 1]} : vector<2x16x32xf32> to vector<2x16x8xf32>
    "tpu.trace_start"() <{level = 10 : i32, message = "bls,bsd->bld"}> : () -> ()
    %cst_22 = arith.constant dense<0.000000e+00> : vector<2x16x8xf32>
    %51 = tpu.matmul %49, %50, %cst_22 {dimension_numbers = #tpu.dot_dimension_numbers<[2], [1], [1], [2], [0, 0, 0, 1, 1, 2], [0], [0]>} : vector<2x16x16xf32>, vector<2x16x8xf32>, vector<2x16x8xf32> -> vector<2x16x8xf32>
    "tpu.trace_stop"() : () -> ()
    %52 = vector.extract_strided_slice %42 {offsets = [0, 48, 0], sizes = [2, 16, 16], strides = [1, 1, 1]} : vector<2x64x16xf32> to vector<2x16x16xf32>
    %53 = vector.extract_strided_slice %16 {offsets = [0, 0, 24], sizes = [2, 16, 8], strides = [1, 1, 1]} : vector<2x16x32xf32> to vector<2x16x8xf32>
    "tpu.trace_start"() <{level = 10 : i32, message = "bls,bsd->bld"}> : () -> ()
    %cst_23 = arith.constant dense<0.000000e+00> : vector<2x16x8xf32>
    %54 = tpu.matmul %52, %53, %cst_23 {dimension_numbers = #tpu.dot_dimension_numbers<[2], [1], [1], [2], [0, 0, 0, 1, 1, 2], [0], [0]>} : vector<2x16x16xf32>, vector<2x16x8xf32>, vector<2x16x8xf32> -> vector<2x16x8xf32>
    "tpu.trace_stop"() : () -> ()
    %55 = tpu.concatenate %45, %48, %51, %54 in 2 : vector<2x16x8xf32>, vector<2x16x8xf32>, vector<2x16x8xf32>, vector<2x16x8xf32> -> vector<2x16x32xf32>
    %56 = vector.shape_cast %55 : vector<2x16x32xf32> to vector<32x32xf32>
    %cst_24 = arith.constant dense<0.000000e+00> : vector<32x32xf32>
    %57 = tpu.matmul %56, %6, %cst_24 {dimension_numbers = #tpu.dot_dimension_numbers<[1], [0], [0], [1], [0, 0, 1, 1], [], []>} : vector<32x32xf32>, vector<32x32xf32>, vector<32x32xf32> -> vector<32x32xf32>
    %58 = vector.broadcast %7 : vector<1x32xf32> to vector<32x32xf32>
    %59 = arith.addf %57, %58 : vector<32x32xf32>
    %60 = arith.addf %3, %59 : vector<32x32xf32>
    %c0_25 = arith.constant 0 : index
    %c0_26 = arith.constant 0 : index
    %61 = vector.load %arg15[%c0_25, %c0_26] : memref<1x32xf32, #tpu.memory_space<vmem>>, vector<1x32xf32>
    %c0_27 = arith.constant 0 : index
    %c0_28 = arith.constant 0 : index
    %62 = vector.load %arg16[%c0_27, %c0_28] : memref<1x32xf32, #tpu.memory_space<vmem>>, vector<1x32xf32>
    %cst_29 = arith.constant dense<0.000000e+00> : vector<32xf32>
    %63 = vector.multi_reduction <add>, %60, %cst_29 [1] : vector<32x32xf32> to vector<32xf32>
    %64 = vector.shape_cast %63 : vector<32xf32> to vector<32x1xf32>
    %cst_30 = arith.constant 3.200000e+01 : f32
    %65 = vector.broadcast %cst_30 : f32 to vector<32x1xf32>
    %66 = arith.divf %64, %65 : vector<32x1xf32>
    %67 = vector.broadcast %66 : vector<32x1xf32> to vector<32x32xf32>
    %68 = arith.subf %60, %67 : vector<32x32xf32>
    %69 = arith.mulf %68, %68 : vector<32x32xf32>
    %cst_31 = arith.constant dense<0.000000e+00> : vector<32xf32>
    %70 = vector.multi_reduction <add>, %69, %cst_31 [1] : vector<32x32xf32> to vector<32xf32>
    %71 = vector.shape_cast %70 : vector<32xf32> to vector<32x1xf32>
    %cst_32 = arith.constant 3.200000e+01 : f32
    %72 = vector.broadcast %cst_32 : f32 to vector<32x1xf32>
    %73 = arith.divf %71, %72 : vector<32x1xf32>
    %cst_33 = arith.constant 9.99999974E-6 : f32
    %74 = vector.broadcast %cst_33 : f32 to vector<32x1xf32>
    %75 = arith.addf %73, %74 : vector<32x1xf32>
    %76 = math.rsqrt %75 : vector<32x1xf32>
    %77 = vector.broadcast %76 : vector<32x1xf32> to vector<32x32xf32>
    %78 = arith.mulf %68, %77 : vector<32x32xf32>
    %79 = vector.broadcast %61 : vector<1x32xf32> to vector<32x32xf32>
    %80 = arith.mulf %78, %79 : vector<32x32xf32>
    %81 = vector.broadcast %62 : vector<1x32xf32> to vector<32x32xf32>
    %82 = arith.addf %80, %81 : vector<32x32xf32>
    %c0_34 = arith.constant 0 : index
    %c0_35 = arith.constant 0 : index
    %83 = vector.load %arg7[%c0_34, %c0_35] : memref<32x96xf32, #tpu.memory_space<vmem>>, vector<32x96xf32>
    %c0_36 = arith.constant 0 : index
    %c0_37 = arith.constant 0 : index
    %84 = vector.load %arg8[%c0_36, %c0_37] : memref<1x96xf32, #tpu.memory_space<vmem>>, vector<1x96xf32>
    %c0_38 = arith.constant 0 : index
    %c0_39 = arith.constant 0 : index
    %85 = vector.load %arg9[%c0_38, %c0_39] : memref<32x32xf32, #tpu.memory_space<vmem>>, vector<32x32xf32>
    %c0_40 = arith.constant 0 : index
    %c0_41 = arith.constant 0 : index
    %86 = vector.load %arg10[%c0_40, %c0_41] : memref<1x32xf32, #tpu.memory_space<vmem>>, vector<1x32xf32>
    %87 = tpu.concatenate %82, %1 in 0 : vector<32x32xf32>, vector<32x32xf32> -> vector<64x32xf32>
    %cst_42 = arith.constant dense<0.000000e+00> : vector<64x96xf32>
    %88 = tpu.matmul %87, %83, %cst_42 {dimension_numbers = #tpu.dot_dimension_numbers<[1], [0], [0], [1], [0, 0, 1, 1], [], []>} : vector<64x32xf32>, vector<32x96xf32>, vector<64x96xf32> -> vector<64x96xf32>
    %89 = vector.broadcast %84 : vector<1x96xf32> to vector<64x96xf32>
    %90 = arith.addf %88, %89 : vector<64x96xf32>
    %91 = vector.extract_strided_slice %90 {offsets = [0, 0], sizes = [32, 32], strides = [1, 1]} : vector<64x96xf32> to vector<32x32xf32>
    %92 = vector.extract_strided_slice %90 {offsets = [32, 32], sizes = [32, 32], strides = [1, 1]} : vector<64x96xf32> to vector<32x32xf32>
    %93 = vector.shape_cast %92 : vector<32x32xf32> to vector<2x16x32xf32>
    %94 = vector.extract_strided_slice %90 {offsets = [32, 64], sizes = [32, 32], strides = [1, 1]} : vector<64x96xf32> to vector<32x32xf32>
    %95 = vector.shape_cast %94 : vector<32x32xf32> to vector<2x16x32xf32>
    %96 = vector.shape_cast %91 : vector<32x32xf32> to vector<2x16x32xf32>
    %97 = vector.extract_strided_slice %96 {offsets = [0, 0, 0], sizes = [2, 16, 8], strides = [1, 1, 1]} : vector<2x16x32xf32> to vector<2x16x8xf32>
    %98 = vector.extract_strided_slice %93 {offsets = [0, 0, 0], sizes = [2, 16, 8], strides = [1, 1, 1]} : vector<2x16x32xf32> to vector<2x16x8xf32>
    "tpu.trace_start"() <{level = 10 : i32, message = "bld,bsd->bls"}> : () -> ()
    %cst_43 = arith.constant dense<0.000000e+00> : vector<2x16x16xf32>
    %99 = tpu.matmul %97, %98, %cst_43 {dimension_numbers = #tpu.dot_dimension_numbers<[2], [2], [1], [1], [0, 0, 0, 1, 1, 1], [0], [0]>} : vector<2x16x8xf32>, vector<2x16x8xf32>, vector<2x16x16xf32> -> vector<2x16x16xf32>
    "tpu.trace_stop"() : () -> ()
    %100 = vector.extract_strided_slice %96 {offsets = [0, 0, 8], sizes = [2, 16, 8], strides = [1, 1, 1]} : vector<2x16x32xf32> to vector<2x16x8xf32>
    %101 = vector.extract_strided_slice %93 {offsets = [0, 0, 8], sizes = [2, 16, 8], strides = [1, 1, 1]} : vector<2x16x32xf32> to vector<2x16x8xf32>
    "tpu.trace_start"() <{level = 10 : i32, message = "bld,bsd->bls"}> : () -> ()
    %cst_44 = arith.constant dense<0.000000e+00> : vector<2x16x16xf32>
    %102 = tpu.matmul %100, %101, %cst_44 {dimension_numbers = #tpu.dot_dimension_numbers<[2], [2], [1], [1], [0, 0, 0, 1, 1, 1], [0], [0]>} : vector<2x16x8xf32>, vector<2x16x8xf32>, vector<2x16x16xf32> -> vector<2x16x16xf32>
    "tpu.trace_stop"() : () -> ()
    %103 = vector.extract_strided_slice %96 {offsets = [0, 0, 16], sizes = [2, 16, 8], strides = [1, 1, 1]} : vector<2x16x32xf32> to vector<2x16x8xf32>
    %104 = vector.extract_strided_slice %93 {offsets = [0, 0, 16], sizes = [2, 16, 8], strides = [1, 1, 1]} : vector<2x16x32xf32> to vector<2x16x8xf32>
    "tpu.trace_start"() <{level = 10 : i32, message = "bld,bsd->bls"}> : () -> ()
    %cst_45 = arith.constant dense<0.000000e+00> : vector<2x16x16xf32>
    %105 = tpu.matmul %103, %104, %cst_45 {dimension_numbers = #tpu.dot_dimension_numbers<[2], [2], [1], [1], [0, 0, 0, 1, 1, 1], [0], [0]>} : vector<2x16x8xf32>, vector<2x16x8xf32>, vector<2x16x16xf32> -> vector<2x16x16xf32>
    "tpu.trace_stop"() : () -> ()
    %106 = vector.extract_strided_slice %96 {offsets = [0, 0, 24], sizes = [2, 16, 8], strides = [1, 1, 1]} : vector<2x16x32xf32> to vector<2x16x8xf32>
    %107 = vector.extract_strided_slice %93 {offsets = [0, 0, 24], sizes = [2, 16, 8], strides = [1, 1, 1]} : vector<2x16x32xf32> to vector<2x16x8xf32>
    "tpu.trace_start"() <{level = 10 : i32, message = "bld,bsd->bls"}> : () -> ()
    %cst_46 = arith.constant dense<0.000000e+00> : vector<2x16x16xf32>
    %108 = tpu.matmul %106, %107, %cst_46 {dimension_numbers = #tpu.dot_dimension_numbers<[2], [2], [1], [1], [0, 0, 0, 1, 1, 1], [0], [0]>} : vector<2x16x8xf32>, vector<2x16x8xf32>, vector<2x16x16xf32> -> vector<2x16x16xf32>
    "tpu.trace_stop"() : () -> ()
    %109 = tpu.concatenate %99, %102, %105, %108 in 1 : vector<2x16x16xf32>, vector<2x16x16xf32>, vector<2x16x16xf32>, vector<2x16x16xf32> -> vector<2x64x16xf32>
    %cst_47 = arith.constant 0.353553385 : f32
    %110 = vector.broadcast %cst_47 : f32 to vector<2x64x16xf32>
    %111 = arith.mulf %109, %110 : vector<2x64x16xf32>
    %cst_48 = arith.constant dense<0xFF800000> : vector<2x64xf32>
    %112 = vector.multi_reduction <maximumf>, %111, %cst_48 [2] : vector<2x64x16xf32> to vector<2x64xf32>
    %113 = vector.shape_cast %112 : vector<2x64xf32> to vector<2x64x1xf32>
    %114 = vector.broadcast %113 : vector<2x64x1xf32> to vector<2x64x16xf32>
    %115 = arith.subf %111, %114 : vector<2x64x16xf32>
    %116 = math.exp %115 : vector<2x64x16xf32>
    %cst_49 = arith.constant dense<0.000000e+00> : vector<2x64xf32>
    %117 = vector.multi_reduction <add>, %116, %cst_49 [2] : vector<2x64x16xf32> to vector<2x64xf32>
    %118 = vector.shape_cast %117 : vector<2x64xf32> to vector<2x64x1xf32>
    %119 = vector.broadcast %118 : vector<2x64x1xf32> to vector<2x64x16xf32>
    %120 = arith.divf %116, %119 : vector<2x64x16xf32>
    %121 = vector.extract_strided_slice %120 {offsets = [0, 0, 0], sizes = [2, 16, 16], strides = [1, 1, 1]} : vector<2x64x16xf32> to vector<2x16x16xf32>
    %122 = vector.extract_strided_slice %95 {offsets = [0, 0, 0], sizes = [2, 16, 8], strides = [1, 1, 1]} : vector<2x16x32xf32> to vector<2x16x8xf32>
    "tpu.trace_start"() <{level = 10 : i32, message = "bls,bsd->bld"}> : () -> ()
    %cst_50 = arith.constant dense<0.000000e+00> : vector<2x16x8xf32>
    %123 = tpu.matmul %121, %122, %cst_50 {dimension_numbers = #tpu.dot_dimension_numbers<[2], [1], [1], [2], [0, 0, 0, 1, 1, 2], [0], [0]>} : vector<2x16x16xf32>, vector<2x16x8xf32>, vector<2x16x8xf32> -> vector<2x16x8xf32>
    "tpu.trace_stop"() : () -> ()
    %124 = vector.extract_strided_slice %120 {offsets = [0, 16, 0], sizes = [2, 16, 16], strides = [1, 1, 1]} : vector<2x64x16xf32> to vector<2x16x16xf32>
    %125 = vector.extract_strided_slice %95 {offsets = [0, 0, 8], sizes = [2, 16, 8], strides = [1, 1, 1]} : vector<2x16x32xf32> to vector<2x16x8xf32>
    "tpu.trace_start"() <{level = 10 : i32, message = "bls,bsd->bld"}> : () -> ()
    %cst_51 = arith.constant dense<0.000000e+00> : vector<2x16x8xf32>
    %126 = tpu.matmul %124, %125, %cst_51 {dimension_numbers = #tpu.dot_dimension_numbers<[2], [1], [1], [2], [0, 0, 0, 1, 1, 2], [0], [0]>} : vector<2x16x16xf32>, vector<2x16x8xf32>, vector<2x16x8xf32> -> vector<2x16x8xf32>
    "tpu.trace_stop"() : () -> ()
    %127 = vector.extract_strided_slice %120 {offsets = [0, 32, 0], sizes = [2, 16, 16], strides = [1, 1, 1]} : vector<2x64x16xf32> to vector<2x16x16xf32>
    %128 = vector.extract_strided_slice %95 {offsets = [0, 0, 16], sizes = [2, 16, 8], strides = [1, 1, 1]} : vector<2x16x32xf32> to vector<2x16x8xf32>
    "tpu.trace_start"() <{level = 10 : i32, message = "bls,bsd->bld"}> : () -> ()
    %cst_52 = arith.constant dense<0.000000e+00> : vector<2x16x8xf32>
    %129 = tpu.matmul %127, %128, %cst_52 {dimension_numbers = #tpu.dot_dimension_numbers<[2], [1], [1], [2], [0, 0, 0, 1, 1, 2], [0], [0]>} : vector<2x16x16xf32>, vector<2x16x8xf32>, vector<2x16x8xf32> -> vector<2x16x8xf32>
    "tpu.trace_stop"() : () -> ()
    %130 = vector.extract_strided_slice %120 {offsets = [0, 48, 0], sizes = [2, 16, 16], strides = [1, 1, 1]} : vector<2x64x16xf32> to vector<2x16x16xf32>
    %131 = vector.extract_strided_slice %95 {offsets = [0, 0, 24], sizes = [2, 16, 8], strides = [1, 1, 1]} : vector<2x16x32xf32> to vector<2x16x8xf32>
    "tpu.trace_start"() <{level = 10 : i32, message = "bls,bsd->bld"}> : () -> ()
    %cst_53 = arith.constant dense<0.000000e+00> : vector<2x16x8xf32>
    %132 = tpu.matmul %130, %131, %cst_53 {dimension_numbers = #tpu.dot_dimension_numbers<[2], [1], [1], [2], [0, 0, 0, 1, 1, 2], [0], [0]>} : vector<2x16x16xf32>, vector<2x16x8xf32>, vector<2x16x8xf32> -> vector<2x16x8xf32>
    "tpu.trace_stop"() : () -> ()
    %133 = tpu.concatenate %123, %126, %129, %132 in 2 : vector<2x16x8xf32>, vector<2x16x8xf32>, vector<2x16x8xf32>, vector<2x16x8xf32> -> vector<2x16x32xf32>
    %134 = vector.shape_cast %133 : vector<2x16x32xf32> to vector<32x32xf32>
    %cst_54 = arith.constant dense<0.000000e+00> : vector<32x32xf32>
    %135 = tpu.matmul %134, %85, %cst_54 {dimension_numbers = #tpu.dot_dimension_numbers<[1], [0], [0], [1], [0, 0, 1, 1], [], []>} : vector<32x32xf32>, vector<32x32xf32>, vector<32x32xf32> -> vector<32x32xf32>
    %136 = vector.broadcast %86 : vector<1x32xf32> to vector<32x32xf32>
    %137 = arith.addf %135, %136 : vector<32x32xf32>
    %138 = arith.addf %82, %137 : vector<32x32xf32>
    %c0_55 = arith.constant 0 : index
    %c0_56 = arith.constant 0 : index
    %139 = vector.load %arg17[%c0_55, %c0_56] : memref<1x32xf32, #tpu.memory_space<vmem>>, vector<1x32xf32>
    %c0_57 = arith.constant 0 : index
    %c0_58 = arith.constant 0 : index
    %140 = vector.load %arg18[%c0_57, %c0_58] : memref<1x32xf32, #tpu.memory_space<vmem>>, vector<1x32xf32>
    %cst_59 = arith.constant dense<0.000000e+00> : vector<32xf32>
    %141 = vector.multi_reduction <add>, %138, %cst_59 [1] : vector<32x32xf32> to vector<32xf32>
    %142 = vector.shape_cast %141 : vector<32xf32> to vector<32x1xf32>
    %cst_60 = arith.constant 3.200000e+01 : f32
    %143 = vector.broadcast %cst_60 : f32 to vector<32x1xf32>
    %144 = arith.divf %142, %143 : vector<32x1xf32>
    %145 = vector.broadcast %144 : vector<32x1xf32> to vector<32x32xf32>
    %146 = arith.subf %138, %145 : vector<32x32xf32>
    %147 = arith.mulf %146, %146 : vector<32x32xf32>
    %cst_61 = arith.constant dense<0.000000e+00> : vector<32xf32>
    %148 = vector.multi_reduction <add>, %147, %cst_61 [1] : vector<32x32xf32> to vector<32xf32>
    %149 = vector.shape_cast %148 : vector<32xf32> to vector<32x1xf32>
    %cst_62 = arith.constant 3.200000e+01 : f32
    %150 = vector.broadcast %cst_62 : f32 to vector<32x1xf32>
    %151 = arith.divf %149, %150 : vector<32x1xf32>
    %cst_63 = arith.constant 9.99999974E-6 : f32
    %152 = vector.broadcast %cst_63 : f32 to vector<32x1xf32>
    %153 = arith.addf %151, %152 : vector<32x1xf32>
    %154 = math.rsqrt %153 : vector<32x1xf32>
    %155 = vector.broadcast %154 : vector<32x1xf32> to vector<32x32xf32>
    %156 = arith.mulf %146, %155 : vector<32x32xf32>
    %157 = vector.broadcast %139 : vector<1x32xf32> to vector<32x32xf32>
    %158 = arith.mulf %156, %157 : vector<32x32xf32>
    %159 = vector.broadcast %140 : vector<1x32xf32> to vector<32x32xf32>
    %160 = arith.addf %158, %159 : vector<32x32xf32>
    %c0_64 = arith.constant 0 : index
    %c0_65 = arith.constant 0 : index
    %161 = vector.load %arg11[%c0_64, %c0_65] : memref<32x64xf32, #tpu.memory_space<vmem>>, vector<32x64xf32>
    %cst_66 = arith.constant dense<0.000000e+00> : vector<32x64xf32>
    %162 = tpu.matmul %160, %161, %cst_66 {dimension_numbers = #tpu.dot_dimension_numbers<[1], [0], [0], [1], [0, 0, 1, 1], [], []>} : vector<32x32xf32>, vector<32x64xf32>, vector<32x64xf32> -> vector<32x64xf32>
    %c0_67 = arith.constant 0 : index
    %c0_68 = arith.constant 0 : index
    %163 = vector.load %arg12[%c0_67, %c0_68] : memref<1x64xf32, #tpu.memory_space<vmem>>, vector<1x64xf32>
    %164 = vector.broadcast %163 : vector<1x64xf32> to vector<32x64xf32>
    %165 = arith.addf %162, %164 : vector<32x64xf32>
    %cst_69 = arith.constant 0.000000e+00 : f32
    %166 = vector.broadcast %cst_69 : f32 to vector<32x64xf32>
    %167 = arith.maximumf %165, %166 : vector<32x64xf32>
    %c0_70 = arith.constant 0 : index
    %c0_71 = arith.constant 0 : index
    %168 = vector.load %arg13[%c0_70, %c0_71] : memref<64x32xf32, #tpu.memory_space<vmem>>, vector<64x32xf32>
    %cst_72 = arith.constant dense<0.000000e+00> : vector<32x32xf32>
    %169 = tpu.matmul %167, %168, %cst_72 {dimension_numbers = #tpu.dot_dimension_numbers<[1], [0], [0], [1], [0, 0, 1, 1], [], []>} : vector<32x64xf32>, vector<64x32xf32>, vector<32x32xf32> -> vector<32x32xf32>
    %c0_73 = arith.constant 0 : index
    %c0_74 = arith.constant 0 : index
    %170 = vector.load %arg14[%c0_73, %c0_74] : memref<1x32xf32, #tpu.memory_space<vmem>>, vector<1x32xf32>
    %171 = vector.broadcast %170 : vector<1x32xf32> to vector<32x32xf32>
    %172 = arith.addf %169, %171 : vector<32x32xf32>
    %173 = arith.addf %160, %172 : vector<32x32xf32>
    %c0_75 = arith.constant 0 : index
    %c0_76 = arith.constant 0 : index
    %174 = vector.load %arg19[%c0_75, %c0_76] : memref<1x32xf32, #tpu.memory_space<vmem>>, vector<1x32xf32>
    %c0_77 = arith.constant 0 : index
    %c0_78 = arith.constant 0 : index
    %175 = vector.load %arg20[%c0_77, %c0_78] : memref<1x32xf32, #tpu.memory_space<vmem>>, vector<1x32xf32>
    %cst_79 = arith.constant dense<0.000000e+00> : vector<32xf32>
    %176 = vector.multi_reduction <add>, %173, %cst_79 [1] : vector<32x32xf32> to vector<32xf32>
    %177 = vector.shape_cast %176 : vector<32xf32> to vector<32x1xf32>
    %cst_80 = arith.constant 3.200000e+01 : f32
    %178 = vector.broadcast %cst_80 : f32 to vector<32x1xf32>
    %179 = arith.divf %177, %178 : vector<32x1xf32>
    %180 = vector.broadcast %179 : vector<32x1xf32> to vector<32x32xf32>
    %181 = arith.subf %173, %180 : vector<32x32xf32>
    %182 = arith.mulf %181, %181 : vector<32x32xf32>
    %cst_81 = arith.constant dense<0.000000e+00> : vector<32xf32>
    %183 = vector.multi_reduction <add>, %182, %cst_81 [1] : vector<32x32xf32> to vector<32xf32>
    %184 = vector.shape_cast %183 : vector<32xf32> to vector<32x1xf32>
    %cst_82 = arith.constant 3.200000e+01 : f32
    %185 = vector.broadcast %cst_82 : f32 to vector<32x1xf32>
    %186 = arith.divf %184, %185 : vector<32x1xf32>
    %cst_83 = arith.constant 9.99999974E-6 : f32
    %187 = vector.broadcast %cst_83 : f32 to vector<32x1xf32>
    %188 = arith.addf %186, %187 : vector<32x1xf32>
    %189 = math.rsqrt %188 : vector<32x1xf32>
    %190 = vector.broadcast %189 : vector<32x1xf32> to vector<32x32xf32>
    %191 = arith.mulf %181, %190 : vector<32x32xf32>
    %192 = vector.broadcast %174 : vector<1x32xf32> to vector<32x32xf32>
    %193 = arith.mulf %191, %192 : vector<32x32xf32>
    %194 = vector.broadcast %175 : vector<1x32xf32> to vector<32x32xf32>
    %195 = arith.addf %193, %194 : vector<32x32xf32>
    %c0_84 = arith.constant 0 : index
    %c0_85 = arith.constant 0 : index
    %196 = vector.load %arg21[%c0_84, %c0_85] : memref<32x32xf32, #tpu.memory_space<vmem>>, vector<32x32xf32>
    tpu.vector_store %arg21[%c0_84, %c0_85], %195 {strides = array<i32>} : memref<32x32xf32, #tpu.memory_space<vmem>>, vector<32x32xf32>,
    return
  }
}

</mosaic_0001>

<bundles_post_ra>
// kernel: transformer_decoder_layer.1
= control target key start
LH: loop header
LB: loop body
LE: loop exit
PB: predicated region body
PF: predicated region fallthrough
CT: control target
= control target key end

     0   :  { %vm91_vm0 = vcmask 261120   ;;  %s4460_s23 = smov 120   ;;  %s3227_s24 = smov 88   ;;  %vm151_vm1 = vcmask 64512   ;;  %vm444_vm2 = vcmask 130048   ;;  %s4418_s3 = inlined_call_operand.vmem [shape: f32[32,96], index: 3, kind: input, shape index: {}]   ;;  %s4419_s2 = inlined_call_operand.vmem [shape: f32[16,32], index: 2, kind: input, shape index: {}]   ;;  %s4420_s4 = inlined_call_operand.vmem [shape: f32[1,96], index: 4, kind: input, shape index: {}]   ;;  %s4421_s0 = inlined_call_operand.vmem [shape: f32[32,32], index: 0, kind: input, shape index: {}]   ;;  %s4422_s5 = inlined_call_operand.vmem [shape: f32[32,32], index: 5, kind: input, shape index: {}]   ;;  %s4423_s6 = inlined_call_operand.vmem [shape: f32[1,32], index: 6, kind: input, shape index: {}]   ;;  %s4424_s15 = inlined_call_operand.vmem [shape: f32[1,32], index: 15, kind: input, shape index: {}]   ;;  %s4425_s16 = inlined_call_operand.vmem [shape: f32[1,32], index: 16, kind: input, shape index: {}]   ;;  %s4426_s7 = inlined_call_operand.vmem [shape: f32[32,96], index: 7, kind: input, shape index: {}]   ;;  %s4427_s8 = inlined_call_operand.vmem [shape: f32[1,96], index: 8, kind: input, shape index: {}]   ;;  %s4428_s1 = inlined_call_operand.vmem [shape: f32[32,32], index: 1, kind: input, shape index: {}]   ;;  %s4429_s10 = inlined_call_operand.vmem [shape: f32[1,32], index: 10, kind: input, shape index: {}]   ;;  %s4430_s9 = inlined_call_operand.vmem [shape: f32[32,32], index: 9, kind: input, shape index: {}]   ;;  %s4431_s17 = inlined_call_operand.vmem [shape: f32[1,32], index: 17, kind: input, shape index: {}]   ;;  %s4432_s18 = inlined_call_operand.vmem [shape: f32[1,32], index: 18, kind: input, shape index: {}]   ;;  %s4433_s12 = inlined_call_operand.vmem [shape: f32[1,64], index: 12, kind: input, shape index: {}]   ;;  %s4434_s11 = inlined_call_operand.vmem [shape: f32[32,64], index: 11, kind: input, shape index: {}]   ;;  %s4435_s13 = inlined_call_operand.vmem [shape: f32[64,32], index: 13, kind: input, shape index: {}]   ;;  %s4436_s14 = inlined_call_operand.vmem [shape: f32[1,32], index: 14, kind: input, shape index: {}]   ;;  %s4437_s19 = inlined_call_operand.vmem [shape: f32[1,32], index: 19, kind: input, shape index: {}]   ;;  %s4438_s20 = inlined_call_operand.vmem [shape: f32[1,32], index: 20, kind: input, shape index: {}]   ;;  %s4439_s21 = inlined_call_operand.vmem [shape: f32[32,32], index: 21, kind: output, shape index: {}]  }
   0x1   :  { %4462 = sst [smem:[#allocation2_spill]] %s4418_s3  ;;  %s4452_s27 = smov 104  }
   0x2   :  { %4463 = sst [smem:[#allocation3_spill]] %s4419_s2  ;;  %s3226_s2 = smov 96  }
   0x3   :  { %4464 = sst [smem:[#allocation4_spill]] %s4420_s4  ;;  %s4456_s4 = smov 80  }
   0x4   :  { %4465 = sst [smem:[#allocation5_spill]] %s4421_s0  ;;  %s4444_s0 = smov 48  }
   0x5   :  { %4466 = sst [smem:[#allocation6_spill]] %s4422_s5  ;;  %s4450_s28 = smov 56  }
   0x6   :  { %4467 = sst [smem:[#allocation7_spill]] %s4423_s6  ;;  %s4448_s29 = smov 64  }
   0x7   :  { %s4468_s26 = sld [smem:[#allocation2_spill]]  ;;  %s4446_s3 = smov 40  }
   0x8   :  { %s4469_s22 = sld [smem:[#allocation3_spill]]  ;;  %s4458_s5 = smov 8  }
   0x9   :  { %s4470_s25 = sld [smem:[#allocation5_spill]]  ;;  %s3237_s30 = smov 24  }
   0xa   :  { %s4471_s6 = sld [smem:[#allocation4_spill]] }
   0xd   :  { %v81_v0 = vld [vmem:[%s4468_s26 + $0x18] sm:$0xff]  ;;  %v80_v1 = vld [vmem:[%s4468_s26 + $0x10] sm:$0xff]  ;;  %v79_v2 = vld [vmem:[%s4468_s26 + $0x8] sm:$0xff] }
   0xe   :  { %122 = vmatpush.msra.mxu0 %v81_v0  ;;  %v78_v3 = vld [vmem:[%s4468_s26] sm:$0xff]  ;;  %v77_v5 = vld [vmem:[%s4469_s22 + $0x8] sm:$0xff]  ;;  %s4454_s26 = smov 112  }
   0xf   :  { %v76_v4 = vld [vmem:[%s4469_s22] sm:$0xff]  ;;  %v69_v7 = vld [vmem:[%s4470_s25 + $0x8] sm:$0xff]  ;;  %v70_v8 = vld [vmem:[%s4470_s25 + $0x10] sm:$0xff] }
  0x10   :  { %123 = vmatpush.msra.mxu0 %v80_v1  ;;  %v68_v6 = vld [vmem:[%s4470_s25] sm:$0xff]  ;;  %v71_v9 = vld [vmem:[%s4470_s25 + $0x18] sm:$0xff]  ;;  %s3229_s25 = smov 72  }
  0x11   :  { %v3057_v10 = vld [vmem:[%s4471_s6] ss:$0 sm:$0xff]  ;;  %s3238_s6 = smov 16  }
  0x12   :  { %124 = vmatpush.msra.mxu0 %v79_v2 }
  0x14   :  { %125 = vmatpush.msra.mxu0 %v78_v3 }
  0x15   :  { %2834 = vmatmul.msk.f32.vlgmr.msra.gmra.mxu0 %vm91_vm0, %v76_v4 }
  0x1d   :  { %2835 = vmatmul.msk.f32.gmra.mxu0 %vm91_vm0, %v77_v5 }
  0x25   :  { %2836 = vmatmul.msk.f32.gmra.mxu0 %vm91_vm0, %v68_v6 }
  0x2d   :  { %2837 = vmatmul.msk.f32.gmra.mxu0 %vm91_vm0, %v69_v7 }
  0x35   :  { %2838 = vmatmul.msk.f32.gmra.mxu0 %vm91_vm0, %v70_v8 }
  0x3d   :  { %2839 = vmatmul.msk.f32.gmra.mxu0 %vm91_vm0, %v71_v9 }
  0x92   :  { %v127_v11 = vpop.f32.mrf.mxu0 }
  0x93   :  { %v3389_v12 = vadd.f32 %v3057_v10, %v127_v11 }
  0x95   :  { %218 = vrot.lane.b32.xlu1 %v3389_v12, %s4460_s23 }
  0x9a   :  { %v130_v13 = vpop.f32.mrf.mxu0 }
  0x9b   :  { %v131_v23 = vadd.f32 %v3057_v10, %v130_v13 }
  0xa2   :  { %v133_v14 = vpop.f32.mrf.mxu0 }
  0xa3   :  { %v134_v15 = vadd.f32 %v3057_v10, %v133_v14 }
  0xa5   :  { %147 = vrot.lane.b32.xlu2 %v134_v15, %s3226_s2 }
  0xaa   :  { %v136_v16 = vpop.f32.mrf.mxu0 }
  0xab   :  { %v137_v17 = vadd.f32 %v3057_v10, %v136_v16 }
  0xad   :  { %149 = vrot.lane.b32.xlu1 %v137_v17, %s3226_s2  ;;  %222 = vrot.lane.b32.xlu2 %v134_v15, %s3227_s24  ;;  %v3396_v18 = vpack.i.bf16 %v134_v15, %v137_v17 }
  0xb2   :  { %v139_v19 = vpop.f32.mrf.mxu0 }
  0xb3   :  { %v140_v20 = vadd.f32 %v3057_v10, %v139_v19 }
  0xb5   :  { %187 = vrot.lane.b32.xlu0 %v140_v20, %s3226_s2  ;;  %224 = vrot.lane.b32.xlu1 %v137_v17, %s3227_s24 }
  0xb6   :  { %294 = vrot.lane.b32.xlu2 %v137_v17, %s4456_s4 }
  0xba   :  { %v142_v21 = vpop.f32.mrf.mxu0 }
  0xbb   :  { %v143_v22 = vadd.f32 %v3057_v10, %v142_v21 }
  0xbd   :  { %189 = vrot.lane.b32.xlu0 %v143_v22, %s3226_s2  ;;  %292 = vrot.lane.b32.xlu1 %v134_v15, %s4456_s4  ;;  %v3403_v24 = vpack.i.bf16 %v140_v20, %v143_v22 }
  0xbe   :  { %220 = vrot.lane.b32.xlu2 %v131_v23, %s4460_s23 }
  0xc5   :  { %257 = vrot.lane.b32.xlu0 %v140_v20, %s3227_s24  ;;  %364 = vrot.lane.b32.xlu1 %v137_v17, %s3229_s25 }
  0xc6   :  { %290 = vrot.lane.b32.xlu2 %v131_v23, %s4454_s26 }
  0xcd   :  { %259 = vrot.lane.b32.xlu0 %v143_v22, %s3227_s24  ;;  %399 = vrot.lane.b32.xlu1 %v143_v22, %s3229_s25 }
  0xce   :  { %358 = vrot.lane.b32.xlu2 %v3389_v12, %s4452_s27 }
  0xd5   :  { %288 = vrot.lane.b32.xlu0 %v3389_v12, %s4454_s26  ;;  %329 = vrot.lane.b32.xlu1 %v143_v22, %s4456_s4  ;;  %s4477_s26 = sld [smem:[#allocation7_spill]] }
  0xd6   :  { %327 = vrot.lane.b32.xlu2 %v140_v20, %s4456_s4 }
  0xdd   :  { %362 = vrot.lane.b32.xlu0 %v134_v15, %s3229_s25 }
  0xe5   :  { %397 = vrot.lane.b32.xlu0 %v140_v20, %s3229_s25 }
  0xed   :  { %360 = vrot.lane.b32.xlu0 %v131_v23, %s4452_s27 }
  0xff   :  { %v148_v25 = vpop.permute.xlu2 %147 }
 0x107   :  { %v219_v26 = vpop.permute.xlu1 %218  ;;  %v223_v27 = vpop.permute.xlu2 %222 }
 0x110   :  { %v295_v29 = vpop.permute.xlu2 %294 }
 0x118   :  { %v221_v32 = vpop.permute.xlu2 %220 }
 0x11f   :  { %v150_v28 = vpop.permute.xlu1 %149 }
 0x120   :  { %2840 = vmatpush.xpose.msk.msrb.mxu0 %vm151_vm1, %v150_v28  ;;  %2960 = vmatpush.xpose.msk.msra.mxu1 %vm151_vm1, %v150_v28  ;;  %v291_v35 = vpop.permute.xlu2 %290 }
 0x124   :  { %2841 = vmatpush.xpose.msk.msrb.mxu0 %vm151_vm1, %v148_v25  ;;  %2961 = vmatpush.xpose.msk.msra.mxu1 %vm151_vm1, %v148_v25 }
 0x127   :  { %v188_v30 = vpop.permute.xlu0 %187  ;;  %v225_v31 = vpop.permute.xlu1 %224  ;;  %2842 = vmatmul.msk.f32.vlgmr.msrb.gmra.mxu0 %vm151_vm1, %v3389_v12  ;;  %2843 = vmatmul.msk.f32.vlgmr.msra.gmra.mxu1 %vm151_vm1, %v131_v23 }
 0x128   :  { %2848 = vmatpush.xpose.msk.msra.mxu3 %vm151_vm1, %v225_v31  ;;  %v359_v40 = vpop.permute.xlu2 %358 }
 0x12c   :  { %2849 = vmatpush.xpose.msk.msra.mxu3 %vm151_vm1, %v223_v27 }
 0x12f   :  { %v190_v33 = vpop.permute.xlu0 %189  ;;  %v293_v34 = vpop.permute.xlu1 %292  ;;  %2850 = vmatmul.msk.f32.vlgmr.msra.gmra.mxu3 %vm151_vm1, %v219_v26 }
 0x130   :  { %2844 = vmatpush.xpose.msk.msra.mxu2 %vm151_vm1, %v190_v33  ;;  %v328_v43 = vpop.permute.xlu2 %327 }
 0x134   :  { %2845 = vmatpush.xpose.msk.msra.mxu2 %vm151_vm1, %v188_v30 }
 0x137   :  { %2846 = vmatmul.msk.f32.vlgmr.msra.gmra.mxu2 %vm151_vm1, %v3389_v12  ;;  %v258_v36 = vpop.permute.xlu0 %257  ;;  %v365_v37 = vpop.permute.xlu1 %364  ;;  %2851 = vmatmul.msk.f32.gmra.mxu3 %vm151_vm1, %v221_v32 }
 0x138   :  { %2856 = vmatpush.xpose.msk.msrb.mxu2 %vm151_vm1, %v295_v29 }
 0x13c   :  { %2857 = vmatpush.xpose.msk.msrb.mxu2 %vm151_vm1, %v293_v34 }
 0x13f   :  { %2847 = vmatmul.msk.f32.gmra.mxu2 %vm151_vm1, %v131_v23  ;;  %v260_v38 = vpop.permute.xlu0 %259  ;;  %v400_v39 = vpop.permute.xlu1 %399 }
 0x140   :  { %2852 = vmatpush.xpose.msk.msrb.mxu1 %vm151_vm1, %v260_v38  ;;  %2868 = vmatpush.xpose.msk.msra.mxu2 %vm151_vm1, %v400_v39 }
 0x144   :  { %2853 = vmatpush.xpose.msk.msrb.mxu1 %vm151_vm1, %v258_v36 }
 0x147   :  { %v289_v41 = vpop.permute.xlu0 %288  ;;  %v330_v42 = vpop.permute.xlu1 %329  ;;  %2854 = vmatmul.msk.f32.vlgmr.msrb.gmra.mxu1 %vm151_vm1, %v219_v26 }
 0x148   :  { %2864 = vmatpush.xpose.msk.msra.mxu1 %vm151_vm1, %v365_v37  ;;  %2858 = vmatmul.msk.f32.vlgmr.msrb.gmra.mxu2 %vm151_vm1, %v289_v41 }
 0x149   :  { %2860 = vmatpush.xpose.msk.msrb.mxu3 %vm151_vm1, %v330_v42 }
 0x14d   :  { %2861 = vmatpush.xpose.msk.msrb.mxu3 %vm151_vm1, %v328_v43 }
 0x14f   :  { %v363_v44 = vpop.permute.xlu0 %362  ;;  %2855 = vmatmul.msk.f32.gmra.mxu1 %vm151_vm1, %v221_v32 }
 0x150   :  { %2862 = vmatmul.msk.f32.vlgmr.msrb.gmra.mxu3 %vm151_vm1, %v289_v41  ;;  %2859 = vmatmul.msk.f32.gmra.mxu2 %vm151_vm1, %v291_v35 }
 0x151   :  { %2865 = vmatpush.xpose.msk.msra.mxu1 %vm151_vm1, %v363_v44 }
 0x157   :  { %v398_v45 = vpop.permute.xlu0 %397  ;;  %2866 = vmatmul.msk.f32.vlgmr.msra.gmra.mxu1 %vm151_vm1, %v359_v40 }
 0x158   :  { %2863 = vmatmul.msk.f32.gmra.mxu3 %vm151_vm1, %v291_v35  ;;  %2869 = vmatpush.xpose.msk.msra.mxu2 %vm151_vm1, %v398_v45 }
 0x15b   :  { %2870 = vmatmul.msk.f32.vlgmr.msra.gmra.mxu2 %vm151_vm1, %v359_v40 }
 0x15f   :  { %v361_v46 = vpop.permute.xlu0 %360 }
 0x160   :  { %2867 = vmatmul.msk.f32.gmra.mxu1 %vm151_vm1, %v361_v46 }
 0x163   :  { %2871 = vmatmul.msk.f32.gmra.mxu2 %vm151_vm1, %v361_v46 }
 0x1a4   :  { %v179_v47 = vpop.f32.mrf.mxu0  ;;  %v182_v48 = vpop.f32.mrf.mxu1 }
 0x1a5   :  { %v3456_v49 = vmul.f32 0.35355338, %v179_v47  ;;  %v3458_v50 = vmul.f32 0.35355338, %v182_v48 }
 0x1a7   :  { %v448_v51 = vsel %vm444_vm2, %v3458_v50, -inf  ;;  %v445_v52 = vsel %vm444_vm2, %v3456_v49, -inf }
 0x1a8   :  { %449 = vmax.xlane.f32.xlu0 %v448_v51  ;;  %446 = vmax.xlane.f32.xlu1 %v445_v52 }
 0x1b2   :  { %v251_v53 = vpop.f32.mrf.mxu3 }
 0x1b3   :  { %v3464_v54 = vmul.f32 0.35355338, %v251_v53 }
 0x1b5   :  { %v451_v55 = vsel %vm444_vm2, %v3464_v54, -inf }
 0x1b6   :  { %452 = vmax.xlane.f32.xlu2 %v451_v55 }
 0x1ba   :  { %v212_v56 = vpop.f32.mrf.mxu2  ;;  %v254_v57 = vpop.f32.mrf.mxu3 }
 0x1bb   :  { %v3468_v58 = vmul.f32 0.35355338, %v212_v56  ;;  %v3470_v59 = vmul.f32 0.35355338, %v254_v57 }
 0x1bd   :  { %v469_v60 = vsel %vm444_vm2, %v3468_v58, -inf  ;;  %v454_v61 = vsel %vm444_vm2, %v3470_v59, -inf }
 0x1be   :  { %470 = vmax.xlane.f32.xlu0 %v469_v60  ;;  %455 = vmax.xlane.f32.xlu2 %v454_v61 }
 0x1c2   :  { %v215_v7 = vpop.f32.mrf.mxu2 }
 0x1c3   :  { %v3488_v8 = vmul.f32 0.35355338, %v215_v7 }
 0x1c4   :  { %v282_v62 = vpop.f32.mrf.mxu1 }
 0x1c5   :  { %v3476_v63 = vmul.f32 0.35355338, %v282_v62  ;;  %v472_v11 = vsel %vm444_vm2, %v3488_v8, -inf }
 0x1c7   :  { %v475_v0 = vsel %vm444_vm2, %v3476_v63, -inf }
 0x1c8   :  { %476 = vmax.xlane.f32.xlu2 %v475_v0 }
 0x1cb   :  { %v321_v16 = vpop.f32.mrf.mxu2 }
 0x1cc   :  { %v285_v1 = vpop.f32.mrf.mxu1  ;;  %v3504_v17 = vmul.f32 0.35355338, %v321_v16 }
 0x1cd   :  { %v3480_v2 = vmul.f32 0.35355338, %v285_v1 }
 0x1ce   :  { %v457_v19 = vsel %vm444_vm2, %v3504_v17, -inf }
 0x1cf   :  { %v478_v3 = vsel %vm444_vm2, %v3480_v2, -inf }
 0x1d0   :  { %479 = vmax.xlane.f32.xlu0 %v478_v3 }
 0x1d3   :  { %v352_v4 = vpop.f32.mrf.mxu3  ;;  %v324_v20 = vpop.f32.mrf.mxu2 }
 0x1d4   :  { %v3484_v5 = vmul.f32 0.35355338, %v352_v4  ;;  %v391_v13 = vpop.f32.mrf.mxu1  ;;  %v3516_v26 = vmul.f32 0.35355338, %v324_v20 }
 0x1d5   :  { %v3498_v14 = vmul.f32 0.35355338, %v391_v13 }
 0x1d6   :  { %v481_v6 = vsel %vm444_vm2, %v3484_v5, -inf  ;;  %v460_v28 = vsel %vm444_vm2, %v3516_v26, -inf }
 0x1d7   :  { %482 = vmax.xlane.f32.xlu1 %v481_v6  ;;  %v463_v15 = vsel %vm444_vm2, %v3498_v14, -inf }
 0x1db   :  { %v355_v9 = vpop.f32.mrf.mxu3 }
 0x1dc   :  { %v3490_v10 = vmul.f32 0.35355338, %v355_v9 }
 0x1dd   :  { %v394_v21 = vpop.f32.mrf.mxu1 }
 0x1de   :  { %v484_v12 = vsel %vm444_vm2, %v3490_v10, -inf  ;;  %v3512_v22 = vmul.f32 0.35355338, %v394_v21  ;;  %v422_v23 = vpop.f32.mrf.mxu2 }
 0x1df   :  { %473 = vmax.xlane.f32.xlu1 %v472_v11  ;;  %485 = vmax.xlane.f32.xlu0 %v484_v12  ;;  %v3518_v27 = vmul.f32 0.35355338, %v422_v23 }
 0x1e0   :  { %2988 = vrot.lane.b32.xlu2 %v3396_v18, %s4444_s0  ;;  %v466_v25 = vsel %vm444_vm2, %v3512_v22, -inf }
 0x1e1   :  { %v487_v31 = vsel %vm444_vm2, %v3518_v27, -inf }
 0x1e6   :  { %v425_v29 = vpop.f32.mrf.mxu2 }
 0x1e7   :  { %464 = vmax.xlane.f32.xlu1 %v463_v15  ;;  %v3524_v32 = vmul.f32 0.35355338, %v425_v29 }
 0x1e8   :  { %2993 = vrot.lane.b32.xlu2 %v3403_v24, %s4450_s28 }
 0x1e9   :  { %v490_v37 = vsel %vm444_vm2, %v3524_v32, -inf }
 0x1ef   :  { %458 = vmax.xlane.f32.xlu1 %v457_v19 }
 0x1f3   :  { %2983 = vrot.lane.b32.xlu0 %v3396_v18, %s4450_s28 }
 0x208   :  { %2978 = vrot.lane.b32.xlu1 %v3396_v18, %s4448_s29 }
 0x211   :  { %467 = vmax.xlane.f32.xlu2 %v466_v25 }
 0x219   :  { %461 = vmax.xlane.f32.xlu2 %v460_v28 }
 0x21b   :  { %v450_v30 = vpop.xlane.xlu0 %449  ;;  %v447_v34 = vpop.xlane.xlu1 %446 }
 0x21c   :  { %v494_v33 = vsub.f32 %v3458_v50, %v450_v30  ;;  %v493_v36 = vsub.f32 %v3456_v49, %v447_v34 }
 0x21d   :  { %488 = vmax.xlane.f32.xlu0 %v487_v31 }
 0x21e   :  { %v511_v35 = vmul.f32 1.442695, %v494_v33  ;;  %v509_v38 = vmul.f32 1.442695, %v493_v36 }
 0x220   :  { %3069 = vpow2.f32 %v511_v35 }
 0x221   :  { %491 = vmax.xlane.f32.xlu2 %v490_v37  ;;  %3071 = vpow2.f32 %v509_v38 }
 0x226   :  { %v3530_v39 = vpop.eup %3069 }
 0x227   :  { %v544_v40 = vsel %vm444_vm2, %v3530_v39, 0.0  ;;  %v3535_v44 = vpop.eup %3071 }
 0x228   :  { %545 = vadd.xlane.f32.xlu0 %v544_v40  ;;  %v541_v45 = vsel %vm444_vm2, %v3535_v44, 0.0 }
 0x229   :  { %v453_v41 = vpop.xlane.xlu2 %452 }
 0x22a   :  { %v495_v42 = vsub.f32 %v3464_v54, %v453_v41 }
 0x22c   :  { %v513_v43 = vmul.f32 1.442695, %v495_v42 }
 0x22e   :  { %3073 = vpow2.f32 %v513_v43 }
 0x231   :  { %v471_v46 = vpop.xlane.xlu0 %470  ;;  %v456_v47 = vpop.xlane.xlu2 %455 }
 0x232   :  { %542 = vadd.xlane.f32.xlu1 %v541_v45  ;;  %v501_v48 = vsub.f32 %v3468_v58, %v471_v46  ;;  %v496_v49 = vsub.f32 %v3470_v59, %v456_v47 }
 0x234   :  { %v3541_v50 = vpop.eup %3073  ;;  %v525_v51 = vmul.f32 1.442695, %v501_v48  ;;  %v515_v52 = vmul.f32 1.442695, %v496_v49 }
 0x235   :  { %v547_v53 = vsel %vm444_vm2, %v3541_v50, 0.0 }
 0x236   :  { %3075 = vpow2.f32 %v525_v51  ;;  %548 = vadd.xlane.f32.xlu2 %v547_v53 }
 0x237   :  { %3077 = vpow2.f32 %v515_v52 }
 0x23b   :  { %v477_v54 = vpop.xlane.xlu2 %476 }
 0x23c   :  { %v3545_v55 = vpop.eup %3075  ;;  %v503_v56 = vsub.f32 %v3476_v63, %v477_v54 }
 0x23d   :  { %v3548_v57 = vpop.eup %3077  ;;  %v565_v58 = vsel %vm444_vm2, %v3545_v55, 0.0 }
 0x23e   :  { %v529_v59 = vmul.f32 1.442695, %v503_v56  ;;  %566 = vadd.xlane.f32.xlu2 %v565_v58  ;;  %v550_v60 = vsel %vm444_vm2, %v3548_v57, 0.0 }
 0x23f   :  { %551 = vadd.xlane.f32.xlu1 %v550_v60 }
 0x240   :  { %3079 = vpow2.f32 %v529_v59 }
 0x243   :  { %v480_v61 = vpop.xlane.xlu0 %479  ;;  %v2989_v62 = vpop.permute.xlu2 %2988 }
 0x244   :  { %v504_v0 = vsub.f32 %v3480_v2, %v480_v61  ;;  %v2990_v43 = vunpack.i.l.bf16 %v2989_v62  ;;  %v2991_v45 = vunpack.i.h.bf16 %v2989_v62 }
 0x246   :  { %v3555_v1 = vpop.eup %3079  ;;  %v531_v3 = vmul.f32 1.442695, %v504_v0 }
 0x247   :  { %v571_v63 = vsel %vm444_vm2, %v3555_v1, 0.0 }
 0x248   :  { %3081 = vpow2.f32 %v531_v3  ;;  %572 = vadd.xlane.f32.xlu0 %v571_v63 }
 0x24a   :  { %v483_v4 = vpop.xlane.xlu1 %482 }
 0x24b   :  { %v505_v6 = vsub.f32 %v3484_v5, %v483_v4  ;;  %v2994_v7 = vpop.permute.xlu2 %2993 }
 0x24c   :  { %v2995_v11 = vunpack.i.l.bf16 %v2994_v7  ;;  %v2996_v13 = vunpack.i.h.bf16 %v2994_v7 }
 0x24d   :  { %v533_v9 = vmul.f32 1.442695, %v505_v6 }
 0x24e   :  { %v3560_v12 = vpop.eup %3081  ;;  %960 = vmatpush.msrb.mxu2 %v2995_v11 }
 0x24f   :  { %3083 = vpow2.f32 %v533_v9  ;;  %v574_v2 = vsel %vm444_vm2, %v3560_v12, 0.0 }
 0x250   :  { %575 = vadd.xlane.f32.xlu2 %v574_v2  ;;  %961 = vmatpush.msrb.mxu2 %v2996_v13 }
 0x252   :  { %v474_v15 = vpop.xlane.xlu1 %473  ;;  %v3572_v28 = vpop.xlane.xlu0 %485 }
 0x253   :  { %v502_v16 = vsub.f32 %v3488_v8, %v474_v15 }
 0x255   :  { %v3565_v19 = vpop.eup %3083  ;;  %v527_v20 = vmul.f32 1.442695, %v502_v16 }
 0x256   :  { %v577_v5 = vsel %vm444_vm2, %v3565_v19, 0.0 }
 0x257   :  { %3085 = vpow2.f32 %v527_v20  ;;  %578 = vadd.xlane.f32.xlu1 %v577_v5 }
 0x25a   :  { %v465_v21 = vpop.xlane.xlu1 %464 }
 0x25b   :  { %v499_v23 = vsub.f32 %v3498_v14, %v465_v21 }
 0x25d   :  { %v3570_v25 = vpop.eup %3085  ;;  %v521_v29 = vmul.f32 1.442695, %v499_v23 }
 0x25e   :  { %v568_v30 = vsel %vm444_vm2, %v3570_v25, 0.0 }
 0x25f   :  { %3087 = vpow2.f32 %v521_v29  ;;  %569 = vadd.xlane.f32.xlu1 %v568_v30 }
 0x262   :  { %v459_v8 = vpop.xlane.xlu1 %458 }
 0x263   :  { %v497_v31 = vsub.f32 %v3504_v17, %v459_v8 }
 0x265   :  { %v3577_v33 = vpop.eup %3087  ;;  %v517_v34 = vmul.f32 1.442695, %v497_v31  ;;  %v2984_v35 = vpop.permute.xlu0 %2983 }
 0x266   :  { %v2985_v36 = vunpack.i.l.bf16 %v2984_v35  ;;  %v559_v14 = vsel %vm444_vm2, %v3577_v33, 0.0  ;;  %v2986_v37 = vunpack.i.h.bf16 %v2984_v35 }
 0x267   :  { %3089 = vpow2.f32 %v517_v34  ;;  %560 = vadd.xlane.f32.xlu0 %v559_v14 }
 0x268   :  { %925 = vmatpush.msrb.mxu1 %v2985_v36 }
 0x26a   :  { %926 = vmatpush.msrb.mxu1 %v2986_v37 }
 0x26d   :  { %v3581_v38 = vpop.eup %3089 }
 0x26e   :  { %v553_v40 = vsel %vm444_vm2, %v3581_v38, 0.0 }
 0x26f   :  { %554 = vadd.xlane.f32.xlu2 %v553_v40 }
 0x278   :  { %3003 = vrot.lane.b32.xlu1 %v3396_v18, %s4446_s3 }
 0x27a   :  { %v2979_v17 = vpop.permute.xlu1 %2978 }
 0x27b   :  { %v2980_v41 = vunpack.i.l.bf16 %v2979_v17  ;;  %v2981_v42 = vunpack.i.h.bf16 %v2979_v17 }
 0x27d   :  { %855 = vmatpush.msra.mxu3 %v2980_v41 }
 0x27f   :  { %856 = vmatpush.msra.mxu3 %v2981_v42 }
 0x280   :  { %3013 = vrot.lane.b32.xlu1 %v3403_v24, %s4444_s0 }
 0x281   :  { %995 = vmatpush.msrb.mxu3 %v2990_v43 }
 0x283   :  { %996 = vmatpush.msrb.mxu3 %v2991_v45 }
 0x284   :  { %v468_v46 = vpop.xlane.xlu2 %467 }
 0x285   :  { %v500_v47 = vsub.f32 %v3512_v22, %v468_v46 }
 0x287   :  { %v523_v48 = vmul.f32 1.442695, %v500_v47 }
 0x289   :  { %3091 = vpow2.f32 %v523_v48 }
 0x28c   :  { %v462_v49 = vpop.xlane.xlu2 %461 }
 0x28d   :  { %v498_v18 = vsub.f32 %v3516_v26, %v462_v49 }
 0x28f   :  { %v3591_v51 = vpop.eup %3091  ;;  %v519_v52 = vmul.f32 1.442695, %v498_v18 }
 0x290   :  { %v489_v53 = vpop.xlane.xlu0 %488  ;;  %v562_v56 = vsel %vm444_vm2, %v3591_v51, 0.0 }
 0x291   :  { %v507_v54 = vsub.f32 %v3518_v27, %v489_v53  ;;  %3093 = vpow2.f32 %v519_v52  ;;  %563 = vadd.xlane.f32.xlu2 %v562_v56 }
 0x293   :  { %v537_v58 = vmul.f32 1.442695, %v507_v54 }
 0x294   :  { %v492_v59 = vpop.xlane.xlu2 %491 }
 0x295   :  { %3095 = vpow2.f32 %v537_v58  ;;  %v508_v22 = vsub.f32 %v3524_v32, %v492_v59 }
 0x297   :  { %v3597_v60 = vpop.eup %3093  ;;  %v539_v61 = vmul.f32 1.442695, %v508_v22 }
 0x298   :  { %v556_v26 = vsel %vm444_vm2, %v3597_v60, 0.0 }
 0x299   :  { %557 = vadd.xlane.f32.xlu2 %v556_v26  ;;  %3097 = vpow2.f32 %v539_v61 }
 0x29b   :  { %v3601_v62 = vpop.eup %3095  ;;  %v546_v0 = vpop.xlane.xlu0 %545 }
 0x29c   :  { %v583_v27 = vsel %vm444_vm2, %v3601_v62, 0.0  ;;  %3099 = vrcp.f32 %v546_v0  ;;  %v615_v29 = vand.u32 2147483648, %v546_v0  ;;  %vm609_vm9 = vweird.f32 %v546_v0 }
 0x29d   :  { %584 = vadd.xlane.f32.xlu0 %v583_v27  ;;  %v613_v42 = vand.u32 2147483647, %v546_v0 }
 0x29e   :  { %v616_v49 = vor.u32 1.1754944e-38, %v615_v29 }
 0x29f   :  { %v3605_v3 = vpop.eup %3097  ;;  %vm614_vm14 = vcmp.eq.f32.partialorder %v613_v42, 8.507059e+37 }
 0x2a0   :  { %v586_v32 = vsel %vm444_vm2, %v3605_v3, 0.0 }
 0x2a2   :  { %v3100_v4 = vpop.eup %3099 }
 0x2a3   :  { %v605_v6 = vmul.f32 %v3100_v4, %v546_v0  ;;  %vm610_vm6 = vweird.f32 %v3100_v4 }
 0x2a4   :  { %vm3612_vm11 = vmor %vm609_vm9, %vm610_vm6 }
 0x2a5   :  { %v543_v63 = vpop.xlane.xlu1 %542  ;;  %587 = vadd.xlane.f32.xlu0 %v586_v32  ;;  %v606_v11 = vsub.f32 1.0, %v605_v6 }
 0x2a6   :  { %3101 = vrcp.f32 %v543_v63  ;;  %v600_v15 = vand.u32 2147483648, %v543_v63  ;;  %v598_v21 = vand.u32 2147483647, %v543_v63  ;;  %vm594_vm4 = vweird.f32 %v543_v63 }
 0x2a7   :  { %v607_v20 = vmul.f32 %v3100_v4, %v606_v11 }
 0x2a8   :  { %v601_v31 = vor.u32 1.1754944e-38, %v600_v15  ;;  %vm599_vm7 = vcmp.eq.f32.partialorder %v598_v21, 8.507059e+37 }
 0x2a9   :  { %v549_v7 = vpop.xlane.xlu2 %548  ;;  %v608_v14 = vadd.f32 %v3100_v4, %v607_v20 }
 0x2aa   :  { %3103 = vrcp.f32 %v549_v7  ;;  %v630_v36 = vand.u32 2147483648, %v549_v7  ;;  %v628_v17 = vand.u32 2147483647, %v549_v7  ;;  %vm624_vm10 = vweird.f32 %v549_v7 }
 0x2ab   :  { %v612_v47 = vsel %vm3612_vm11, %v3100_v4, %v608_v14 }
 0x2ac   :  { %v3102_v9 = vpop.eup %3101  ;;  %v631_v46 = vor.u32 1.1754944e-38, %v630_v36  ;;  %vm629_vm13 = vcmp.eq.f32.partialorder %v628_v17, 8.507059e+37  ;;  %v617_v58 = vsel %vm614_vm14, %v616_v49, %v612_v47 }
 0x2ad   :  { %v590_v13 = vmul.f32 %v3102_v9, %v543_v63  ;;  %vm595_vm3 = vweird.f32 %v3102_v9  ;;  %v618_v61 = vmul.f32 %v3530_v39, %v617_v58 }
 0x2ae   :  { %vm596_vm5 = vmor %vm594_vm4, %vm595_vm3 }
 0x2af   :  { %v591_v2 = vsub.f32 1.0, %v590_v13 }
 0x2b0   :  { %v3104_v16 = vpop.eup %3103 }
 0x2b1   :  { %v592_v5 = vmul.f32 %v3102_v9, %v591_v2  ;;  %v620_v23 = vmul.f32 %v3104_v16, %v549_v7  ;;  %2998 = vrot.lane.b32.xlu2 %v3403_v24, %s4448_s29  ;;  %vm625_vm8 = vweird.f32 %v3104_v16  ;;  %v3621_v53 = vpop.xlane.xlu2 %566  ;;  %v506_v2 = vsub.f32 %v3490_v10, %v3572_v28  ;;  %s4476_s29 = sld [smem:[#allocation6_spill]] }
 0x2b2   :  { %v552_v8 = vpop.xlane.xlu1 %551  ;;  %vm626_vm12 = vmor %vm624_vm10, %vm625_vm8 }
 0x2b3   :  { %v593_v30 = vadd.f32 %v3102_v9, %v592_v5  ;;  %v621_v34 = vsub.f32 1.0, %v620_v23  ;;  %3105 = vrcp.f32 %v552_v8  ;;  %v645_v22 = vand.u32 2147483648, %v552_v8 }
 0x2b4   :  { %v643_v26 = vand.u32 2147483647, %v552_v8  ;;  %vm639_vm3 = vweird.f32 %v552_v8  ;;  %v535_v23 = vmul.f32 1.442695, %v506_v2 }
 0x2b5   :  { %v597_v35 = vsel %vm596_vm5, %v3102_v9, %v593_v30  ;;  %v622_v40 = vmul.f32 %v3104_v16, %v621_v34  ;;  %v646_v0 = vor.u32 1.1754944e-38, %v645_v22 }
 0x2b6   :  { %v602_v37 = vsel %vm599_vm7, %v601_v31, %v597_v35  ;;  %vm644_vm5 = vcmp.eq.f32.partialorder %v643_v26, 8.507059e+37 }
 0x2b7   :  { %v603_v41 = vmul.f32 %v3535_v44, %v602_v37  ;;  %v623_v43 = vadd.f32 %v3104_v16, %v622_v40 }
 0x2b9   :  { %2872 = vmatmul.msk.f32.vlgmr.msra.gmra.mxu3 %vm444_vm2, %v603_v41  ;;  %3008 = vrot.lane.b32.xlu0 %v3403_v24, %s4446_s3  ;;  %v3106_v48 = vpop.eup %3105  ;;  %v627_v44 = vsel %vm626_vm12, %v3104_v16, %v623_v43 }
 0x2ba   :  { %v632_v18 = vsel %vm629_vm13, %v631_v46, %v627_v44  ;;  %v635_v52 = vmul.f32 %v3106_v48, %v552_v8  ;;  %vm640_vm15 = vweird.f32 %v3106_v48 }
 0x2bb   :  { %v573_v54 = vpop.xlane.xlu0 %572  ;;  %v633_v56 = vmul.f32 %v3541_v50, %v632_v18  ;;  %vm641_vm4 = vmor %vm639_vm3, %vm640_vm15 }
 0x2bc   :  { %v636_v59 = vsub.f32 1.0, %v635_v52  ;;  %3107 = vrcp.f32 %v573_v54  ;;  %v750_v11 = vand.u32 2147483648, %v573_v54  ;;  %v748_v13 = vand.u32 2147483647, %v573_v54 }
 0x2bd   :  { %2876 = vmatmul.msk.f32.vlgmr.msrb.gmra.mxu1 %vm444_vm2, %v633_v56  ;;  %vm744_vm7 = vweird.f32 %v573_v54 }
 0x2be   :  { %v637_v24 = vmul.f32 %v3106_v48, %v636_v59  ;;  %v751_v20 = vor.u32 1.1754944e-38, %v750_v11  ;;  %vm749_vm9 = vcmp.eq.f32.partialorder %v748_v13, 8.507059e+37 }
 0x2c0   :  { %v638_v27 = vadd.f32 %v3106_v48, %v637_v24 }
 0x2c1   :  { %2873 = vmatmul.msk.f32.gmra.mxu3 %vm444_vm2, %v618_v61 }
 0x2c2   :  { %v3108_v32 = vpop.eup %3107  ;;  %v642_v63 = vsel %vm641_vm4, %v3106_v48, %v638_v27 }
 0x2c3   :  { %v740_v50 = vmul.f32 %v3108_v32, %v573_v54  ;;  %v576_v4 = vpop.xlane.xlu2 %575  ;;  %v647_v6 = vsel %vm644_vm5, %v646_v0, %v642_v63  ;;  %vm745_vm6 = vweird.f32 %v3108_v32 }
 0x2c4   :  { %3109 = vrcp.f32 %v576_v4  ;;  %v648_v7 = vmul.f32 %v3548_v57, %v647_v6  ;;  %vm746_vm8 = vmor %vm744_vm7, %vm745_vm6  ;;  %v765_v8 = vand.u32 2147483648, %v576_v4  ;;  %v763_v34 = vand.u32 2147483647, %v576_v4 }
 0x2c5   :  { %v741_v9 = vsub.f32 1.0, %v740_v50  ;;  %3111 = vpow2.f32 %v535_v23  ;;  %vm759_vm11 = vweird.f32 %v576_v4 }
 0x2c6   :  { %2877 = vmatmul.msk.f32.gmra.mxu1 %vm444_vm2, %v648_v7  ;;  %v766_v28 = vor.u32 1.1754944e-38, %v765_v8  ;;  %vm764_vm13 = vcmp.eq.f32.partialorder %v763_v34, 8.507059e+37 }
 0x2c7   :  { %v742_v39 = vmul.f32 %v3108_v32, %v741_v9 }
 0x2c9   :  { %v743_v15 = vadd.f32 %v3108_v32, %v742_v39 }
 0x2ca   :  { %v3110_v16 = vpop.eup %3109  ;;  %v3636_v40 = vpop.xlane.xlu1 %578 }
 0x2cb   :  { %v747_v5 = vsel %vm746_vm8, %v3108_v32, %v743_v15  ;;  %v755_v21 = vmul.f32 %v3110_v16, %v576_v4  ;;  %vm760_vm10 = vweird.f32 %v3110_v16  ;;  %v3634_v37 = vpop.eup %3111  ;;  %v720_v15 = vand.u32 2147483648, %v3621_v53 }
 0x2cc   :  { %v752_v57 = vsel %vm749_vm9, %v751_v20, %v747_v5  ;;  %vm761_vm12 = vmor %vm759_vm11, %vm760_vm10  ;;  %v580_v17 = vsel %vm444_vm2, %v3634_v37, 0.0  ;;  %vm714_vm10 = vweird.f32 %v3621_v53 }
 0x2cd   :  { %v756_v29 = vsub.f32 1.0, %v755_v21  ;;  %v753_v30 = vmul.f32 %v3555_v1, %v752_v57  ;;  %v721_v57 = vor.u32 1.1754944e-38, %v720_v15  ;;  %v778_v15 = vand.u32 2147483647, %v3636_v40 }
 0x2cf   :  { %v757_v31 = vmul.f32 %v3110_v16, %v756_v29  ;;  %2878 = vmatmul.msk.f32.vlgmr.msrb.gmra.mxu2 %vm444_vm2, %v753_v30 }
 0x2d1   :  { %v758_v10 = vadd.f32 %v3110_v16, %v757_v31 }
 0x2d2   :  { %v3641_v42 = vpop.xlane.xlu1 %569 }
 0x2d3   :  { %v762_v35 = vsel %vm761_vm12, %v3110_v16, %v758_v10 }
 0x2d4   :  { %v767_v36 = vsel %vm764_vm13, %v766_v28, %v762_v35 }
 0x2d5   :  { %v768_v14 = vmul.f32 %v3560_v12, %v767_v36 }
 0x2d7   :  { %2879 = vmatmul.msk.f32.gmra.mxu2 %vm444_vm2, %v768_v14 }
 0x2da   :  { %v561_v1 = vpop.xlane.xlu0 %560  ;;  %581 = vadd.xlane.f32.xlu2 %v580_v17 }
 0x2db   :  { %3113 = vrcp.f32 %v561_v1  ;;  %v690_v12 = vand.u32 2147483648, %v561_v1  ;;  %v688_v48 = vand.u32 2147483647, %v561_v1  ;;  %vm684_vm15 = vweird.f32 %v561_v1 }
 0x2dd   :  { %v691_v18 = vor.u32 1.1754944e-38, %v690_v12  ;;  %vm689_vm4 = vcmp.eq.f32.partialorder %v688_v48, 8.507059e+37 }
 0x2e1   :  { %v3114_v41 = vpop.eup %3113 }
 0x2e2   :  { %v680_v43 = vmul.f32 %v3114_v41, %v561_v1  ;;  %v555_v45 = vpop.xlane.xlu2 %554  ;;  %vm685_vm14 = vweird.f32 %v3114_v41 }
 0x2e3   :  { %3115 = vrcp.f32 %v555_v45  ;;  %vm686_vm3 = vmor %vm684_vm15, %vm685_vm14  ;;  %v660_v24 = vand.u32 2147483648, %v555_v45  ;;  %v658_v27 = vand.u32 2147483647, %v555_v45  ;;  %vm654_vm6 = vweird.f32 %v555_v45 }
 0x2e4   :  { %v681_v46 = vsub.f32 1.0, %v680_v43  ;;  %3117 = vrcp.f32 %v3621_v53 }
 0x2e5   :  { %v661_v63 = vor.u32 1.1754944e-38, %v660_v24  ;;  %vm659_vm8 = vcmp.eq.f32.partialorder %v658_v27, 8.507059e+37  ;;  %3119 = vrcp.f32 %v3641_v42  ;;  %v733_v24 = vand.u32 2147483647, %v3641_v42 }
 0x2e6   :  { %v682_v47 = vmul.f32 %v3114_v41, %v681_v46 }
 0x2e8   :  { %v683_v49 = vadd.f32 %v3114_v41, %v682_v47  ;;  %v735_v47 = vand.u32 2147483648, %v3641_v42 }
 0x2e9   :  { %v3116_v44 = vpop.eup %3115 }
 0x2ea   :  { %v687_v52 = vsel %vm686_vm3, %v3114_v41, %v683_v49  ;;  %v650_v54 = vmul.f32 %v3116_v44, %v555_v45  ;;  %v3004_v56 = vpop.permute.xlu1 %3003  ;;  %vm655_vm5 = vweird.f32 %v3116_v44  ;;  %v3118_v7 = vpop.eup %3117  ;;  %vm729_vm3 = vweird.f32 %v3641_v42 }
 0x2eb   :  { %v692_v58 = vsel %vm689_vm4, %v691_v18, %v687_v52  ;;  %v3005_v59 = vunpack.i.l.bf16 %v3004_v56  ;;  %v3006_v61 = vunpack.i.h.bf16 %v3004_v56  ;;  %vm656_vm7 = vmor %vm654_vm6, %vm655_vm5  ;;  %v710_v9 = vmul.f32 %v3118_v7, %v3621_v53  ;;  %v3650_v13 = vpop.eup %3119 }
 0x2ec   :  { %v651_v22 = vsub.f32 1.0, %v650_v54  ;;  %v693_v0 = vmul.f32 %v3577_v33, %v692_v58  ;;  %vm715_vm9 = vweird.f32 %v3118_v7  ;;  %v725_v16 = vmul.f32 %v3650_v13, %v3641_v42 }
 0x2ed   :  { %1065 = vmatpush.msra.mxu1 %v3005_v59  ;;  %v711_v33 = vsub.f32 1.0, %v710_v9  ;;  %vm716_vm11 = vmor %vm714_vm10, %vm715_vm9  ;;  %vm730_vm5 = vweird.f32 %v3650_v13 }
 0x2ee   :  { %v652_v26 = vmul.f32 %v3116_v44, %v651_v22  ;;  %v726_v30 = vsub.f32 1.0, %v725_v16 }
 0x2ef   :  { %1066 = vmatpush.msra.mxu1 %v3006_v61  ;;  %v712_v11 = vmul.f32 %v3118_v7, %v711_v33 }
 0x2f0   :  { %v653_v32 = vadd.f32 %v3116_v44, %v652_v26  ;;  %2884 = vmatmul.msk.f32.vlgmr.msra.gmra.mxu1 %vm444_vm2, %v693_v0  ;;  %v727_v36 = vmul.f32 %v3650_v13, %v726_v30 }
 0x2f1   :  { %v713_v2 = vadd.f32 %v3118_v7, %v712_v11 }
 0x2f2   :  { %v657_v50 = vsel %vm656_vm7, %v3116_v44, %v653_v32  ;;  %v3014_v18 = vpop.permute.xlu1 %3013  ;;  %vm3689_vm7 = vmor %vm729_vm3, %vm730_vm5 }
 0x2f3   :  { %v662_v4 = vsel %vm659_vm8, %v661_v63, %v657_v50  ;;  %v717_v5 = vsel %vm716_vm11, %v3118_v7, %v713_v2  ;;  %v736_v50 = vor.u32 1.1754944e-38, %v735_v47  ;;  %vm734_vm11 = vcmp.eq.f32.partialorder %v733_v24, 8.507059e+37 }
 0x2f4   :  { %v663_v6 = vmul.f32 %v3581_v38, %v662_v4  ;;  %v718_v38 = vand.u32 2147483647, %v3621_v53  ;;  %v3016_v4 = vunpack.i.h.bf16 %v3014_v18 }
 0x2f6   :  { %2880 = vmatmul.msk.f32.vlgmr.msrb.gmra.mxu3 %vm444_vm2, %v663_v6  ;;  %vm719_vm12 = vcmp.eq.f32.partialorder %v718_v38, 8.507059e+37 }
 0x2f7   :  { %v722_v31 = vsel %vm719_vm12, %v721_v57, %v717_v5 }
 0x2f8   :  { %v723_v41 = vmul.f32 %v3545_v55, %v722_v31  ;;  %v728_v55 = vadd.f32 %v3650_v13, %v727_v36 }
 0x2fa   :  { %v732_v63 = vsel %vm3689_vm7, %v3650_v13, %v728_v55  ;;  %v780_v13 = vand.u32 2147483648, %v3636_v40 }
 0x2fb   :  { %v737_v33 = vsel %vm734_vm11, %v736_v50, %v732_v63 }
 0x304   :  { %v564_v39 = vpop.xlane.xlu2 %563 }
 0x305   :  { %3121 = vrcp.f32 %v564_v39  ;;  %v705_v34 = vand.u32 2147483648, %v564_v39  ;;  %v703_v28 = vand.u32 2147483647, %v564_v39  ;;  %vm699_vm14 = vweird.f32 %v564_v39 }
 0x306   :  { %3123 = vrcp.f32 %v3636_v40 }
 0x307   :  { %v706_v17 = vor.u32 1.1754944e-38, %v705_v34  ;;  %vm704_vm4 = vcmp.eq.f32.partialorder %v703_v28, 8.507059e+37 }
 0x30b   :  { %v3122_v20 = vpop.eup %3121 }
 0x30c   :  { %v695_v21 = vmul.f32 %v3122_v20, %v564_v39  ;;  %v3658_v23 = vpop.xlane.xlu2 %557  ;;  %v3661_v29 = vpop.eup %3123  ;;  %vm700_vm13 = vweird.f32 %v3122_v20 }
 0x30d   :  { %3125 = vrcp.f32 %v3658_v23  ;;  %v770_v35 = vmul.f32 %v3661_v29, %v3636_v40  ;;  %vm701_vm15 = vmor %vm699_vm14, %vm700_vm13  ;;  %v675_v56 = vand.u32 2147483648, %v3658_v23  ;;  %v673_v22 = vand.u32 2147483647, %v3658_v23 }
 0x30e   :  { %v696_v8 = vsub.f32 1.0, %v695_v21  ;;  %vm669_vm8 = vweird.f32 %v3658_v23  ;;  %vm775_vm12 = vweird.f32 %v3661_v29  ;;  %vm774_vm13 = vweird.f32 %v3636_v40 }
 0x30f   :  { %v771_v12 = vsub.f32 1.0, %v770_v35  ;;  %v676_v6 = vor.u32 1.1754944e-38, %v675_v56  ;;  %vm674_vm10 = vcmp.eq.f32.partialorder %v673_v22, 8.507059e+37  ;;  %vm776_vm14 = vmor %vm774_vm13, %vm775_vm12 }
 0x310   :  { %v3663_v53 = vpop.xlane.xlu0 %584  ;;  %v697_v10 = vmul.f32 %v3122_v20, %v696_v8 }
 0x311   :  { %3127 = vrcp.f32 %v3663_v53  ;;  %v772_v0 = vmul.f32 %v3661_v29, %v771_v12  ;;  %v810_v57 = vand.u32 2147483648, %v3663_v53  ;;  %v808_v30 = vand.u32 2147483647, %v3663_v53 }
 0x312   :  { %v698_v14 = vadd.f32 %v3122_v20, %v697_v10 }
 0x313   :  { %v3126_v1 = vpop.eup %3125  ;;  %v773_v39 = vadd.f32 %v3661_v29, %v772_v0  ;;  %v811_v31 = vor.u32 1.1754944e-38, %v810_v57 }
 0x314   :  { %v665_v43 = vmul.f32 %v3126_v1, %v3658_v23  ;;  %v2999_v45 = vpop.permute.xlu2 %2998  ;;  %v702_v46 = vsel %vm701_vm15, %v3122_v20, %v698_v14  ;;  %vm670_vm6 = vweird.f32 %v3126_v1  ;;  %v738_v20 = vmul.f32 %v3570_v25, %v737_v33 }
 0x315   :  { %v3000_v48 = vunpack.i.l.bf16 %v2999_v45  ;;  %v707_v49 = vsel %vm704_vm4, %v706_v17, %v702_v46  ;;  %v3001_v58 = vunpack.i.h.bf16 %v2999_v45  ;;  %vm671_vm9 = vmor %vm669_vm8, %vm670_vm6  ;;  %v777_v5 = vsel %vm776_vm14, %v3661_v29, %v773_v39 }
 0x316   :  { %v666_v52 = vsub.f32 1.0, %v665_v43  ;;  %v708_v54 = vmul.f32 %v3591_v51, %v707_v49  ;;  %v3015_v51 = vunpack.i.l.bf16 %v3014_v18  ;;  %vm779_vm15 = vcmp.eq.f32.partialorder %v778_v15, 8.507059e+37 }
 0x317   :  { %v3673_v44 = vpop.eup %3127  ;;  %890 = vmatpush.msra.mxu0 %v3000_v48  ;;  %vm804_vm4 = vweird.f32 %v3663_v53  ;;  %vm809_vm6 = vcmp.eq.f32.partialorder %v808_v30, 8.507059e+37 }
 0x318   :  { %v3679_v59 = vpop.xlane.xlu0 %587  ;;  %v667_v61 = vmul.f32 %v3126_v1, %v666_v52  ;;  %v800_v26 = vmul.f32 %v3673_v44, %v3663_v53  ;;  %2885 = vmatmul.msk.f32.gmra.mxu1 %vm444_vm2, %v708_v54  ;;  %vm805_vm3 = vweird.f32 %v3673_v44 }
 0x319   :  { %3129 = vrcp.f32 %v3679_v59  ;;  %891 = vmatpush.msra.mxu0 %v3001_v58  ;;  %vm806_vm5 = vmor %vm804_vm4, %vm805_vm3  ;;  %v825_v36 = vand.u32 2147483648, %v3679_v59  ;;  %vm819_vm8 = vweird.f32 %v3679_v59 }
 0x31a   :  { %2874 = vmatmul.msk.f32.vlgmr.msra.gmra.mxu0 %vm444_vm2, %v723_v41  ;;  %v668_v32 = vadd.f32 %v3126_v1, %v667_v61  ;;  %v801_v42 = vsub.f32 1.0, %v800_v26 }
 0x31b   :  { %1030 = vmatpush.msrb.mxu0 %v3015_v51  ;;  %v826_v17 = vor.u32 1.1754944e-38, %v825_v36  ;;  %v3058_v36 = vld [vmem:[%s4477_s26] ss:$0 sm:$0xff] }
 0x31c   :  { %v672_v7 = vsel %vm671_vm9, %v3126_v1, %v668_v32  ;;  %v802_v38 = vmul.f32 %v3673_v44, %v801_v42  ;;  %v823_v1 = vand.u32 2147483647, %v3679_v59  ;;  %v84_v42 = vld [vmem:[%s4476_s29 + $0x8] sm:$0xff] }
 0x31d   :  { %1031 = vmatpush.msrb.mxu0 %v3016_v4  ;;  %v677_v9 = vsel %vm674_vm10, %v676_v6, %v672_v7  ;;  %v86_v4 = vld [vmem:[%s4476_s29 + $0x18] sm:$0xff]  ;;  %v85_v6 = vld [vmem:[%s4476_s29 + $0x10] sm:$0xff]  ;;  %v83_v7 = vld [vmem:[%s4476_s29] sm:$0xff]  ;;  %s4481_s29 = smov 104  }
 0x31e   :  { %v678_v2 = vmul.f32 %v3597_v60, %v677_v9  ;;  %v781_v60 = vor.u32 1.1754944e-38, %v780_v13  ;;  %v803_v21 = vadd.f32 %v3673_v44, %v802_v38  ;;  %vm824_vm10 = vcmp.eq.f32.partialorder %v823_v1, 8.507059e+37  ;;  %1197 = vmatpush.msra.mxu3 %v86_v4  ;;  %v3223_v1 = vld [vmem:[%s4469_s22] sm:$0xff] }
 0x31f   :  { %v3130_v11 = vpop.eup %3129 }
 0x320   :  { %v815_v16 = vmul.f32 %v3130_v11, %v3679_v59  ;;  %2881 = vmatmul.msk.f32.gmra.mxu3 %vm444_vm2, %v678_v2  ;;  %v782_v23 = vsel %vm779_vm15, %v781_v60, %v777_v5  ;;  %v807_v25 = vsel %vm806_vm5, %v3673_v44, %v803_v21  ;;  %vm820_vm7 = vweird.f32 %v3130_v11 }
 0x321   :  { %v783_v8 = vmul.f32 %v3565_v19, %v782_v23  ;;  %v812_v10 = vsel %vm809_vm6, %v811_v31, %v807_v25  ;;  %vm821_vm9 = vmor %vm819_vm8, %vm820_vm7  ;;  %1198 = vmatpush.msra.mxu3 %v85_v6  ;;  %vm1165_vm15 = vcmask 195584  }
 0x322   :  { %2875 = vmatmul.msk.f32.gmra.mxu0 %vm444_vm2, %v738_v20  ;;  %v816_v40 = vsub.f32 1.0, %v815_v16  ;;  %v813_v53 = vmul.f32 %v3601_v62, %v812_v10 }
 0x323   :  { %1199 = vmatpush.msra.mxu3 %v84_v42 }
 0x324   :  { %v817_v29 = vmul.f32 %v3130_v11, %v816_v40 }
 0x325   :  { %1200 = vmatpush.msra.mxu3 %v83_v7 }
 0x326   :  { %v818_v35 = vadd.f32 %v3130_v11, %v817_v29 }
 0x328   :  { %v822_v19 = vsel %vm821_vm9, %v3130_v11, %v818_v35 }
 0x329   :  { %v827_v41 = vsel %vm824_vm10, %v826_v17, %v822_v19 }
 0x32a   :  { %2882 = vmatmul.msk.f32.vlgmr.msrb.gmra.mxu0 %vm444_vm2, %v783_v8  ;;  %v828_v43 = vmul.f32 %v3605_v3, %v827_v41 }
 0x32b   :  { %v3009_v34 = vpop.permute.xlu0 %3008 }
 0x32c   :  { %v3010_v28 = vunpack.i.l.bf16 %v3009_v34  ;;  %v3011_v14 = vunpack.i.h.bf16 %v3009_v34 }
 0x32e   :  { %1100 = vmatpush.msra.mxu2 %v3010_v28 }
 0x330   :  { %1101 = vmatpush.msra.mxu2 %v3011_v14 }
 0x331   :  { %2886 = vmatmul.msk.f32.vlgmr.msra.gmra.mxu2 %vm444_vm2, %v813_v53 }
 0x339   :  { %2887 = vmatmul.msk.f32.gmra.mxu2 %vm444_vm2, %v828_v43 }
 0x33a   :  { %v928_v45 = vpop.f32.mrf.mxu1 }
 0x33b   :  { %1113 = vrot.lane.b32.xlu0 %v928_v45, %s4458_s5  ;;  %v3224_v45 = vld [vmem:[%s4469_s22 + $0x8] sm:$0xff]  ;;  %s4484_s22 = smov 40  }
 0x33c   :  { %v858_v58 = vpop.f32.mrf.mxu3 }
 0x343   :  { %v931_v46 = vpop.f32.mrf.mxu1 }
 0x344   :  { %1115 = vrot.lane.b32.xlu1 %v931_v46, %s4458_s5  ;;  %v861_v22 = vpop.f32.mrf.mxu3 }
 0x34d   :  { %v582_v62 = vpop.xlane.xlu2 %581 }
 0x34e   :  { %3131 = vrcp.f32 %v582_v62  ;;  %v795_v49 = vand.u32 2147483648, %v582_v62  ;;  %v793_v18 = vand.u32 2147483647, %v582_v62  ;;  %vm789_vm12 = vweird.f32 %v582_v62 }
 0x350   :  { %v796_v52 = vor.u32 1.1754944e-38, %v795_v49  ;;  %vm794_vm14 = vcmp.eq.f32.partialorder %v793_v18, 8.507059e+37 }
 0x352   :  { %v963_v61 = vpop.f32.mrf.mxu2 }
 0x354   :  { %v3132_v12 = vpop.eup %3131 }
 0x355   :  { %v785_v47 = vmul.f32 %v3132_v12, %v582_v62  ;;  %vm790_vm11 = vweird.f32 %v3132_v12 }
 0x356   :  { %vm791_vm13 = vmor %vm789_vm12, %vm790_vm11 }
 0x357   :  { %v786_v48 = vsub.f32 1.0, %v785_v47 }
 0x359   :  { %v787_v44 = vmul.f32 %v3132_v12, %v786_v48 }
 0x35a   :  { %v966_v32 = vpop.f32.mrf.mxu2 }
 0x35b   :  { %v788_v3 = vadd.f32 %v3132_v12, %v787_v44  ;;  %v3239_v44 = vmov 32.0  }
 0x35c   :  { %3133 = vrcp.f32 %v3239_v44 }
 0x35d   :  { %v792_v54 = vsel %vm791_vm13, %v3132_v12, %v788_v3 }
 0x35e   :  { %v797_v55 = vsel %vm794_vm14, %v796_v52, %v792_v54 }
 0x35f   :  { %v798_v56 = vmul.f32 %v3634_v37, %v797_v55 }
 0x361   :  { %2883 = vmatmul.msk.f32.gmra.mxu0 %vm444_vm2, %v798_v56 }
 0x362   :  { %v3134_v18 = vpop.eup %3133 }
 0x363   :  { %v1233_v54 = vmul.f32 32.0, %v3134_v18  ;;  %vm1237_vm3 = vweird.f32 %v3134_v18 }
 0x36d   :  { %v1068_v59 = vpop.f32.mrf.mxu1 }
 0x36e   :  { %1145 = vrot.lane.b32.xlu0 %v1068_v59, %s3237_s30 }
 0x379   :  { %v998_v24 = vpop.f32.mrf.mxu3 }
 0x37a   :  { %1129 = vrot.lane.b32.xlu1 %v998_v24, %s3238_s6 }
 0x382   :  { %1117 = vrot.lane.b32.xlu1 %v963_v61, %s4458_s5 }
 0x395   :  { %v1071_v26 = vpop.f32.mrf.mxu1 }
 0x396   :  { %1147 = vrot.lane.b32.xlu0 %v1071_v26, %s3237_s30 }
 0x397   :  { %v893_v51 = vpop.f32.mrf.mxu0 }
 0x39f   :  { %v896_v37 = vpop.f32.mrf.mxu0 }
 0x3a3   :  { %v1001_v27 = vpop.f32.mrf.mxu3 }
 0x3a4   :  { %1131 = vrot.lane.b32.xlu2 %v1001_v27, %s3238_s6 }
 0x3a7   :  { %v1033_v0 = vpop.f32.mrf.mxu0 }
 0x3a8   :  { %1133 = vrot.lane.b32.xlu0 %v1033_v0, %s3238_s6 }
 0x3ad   :  { %v1114_v11 = vpop.permute.xlu0 %1113 }
 0x3ae   :  { %v1157_v39 = vsel %vm151_vm1, %v858_v58, %v1114_v11  ;;  %v1234_v58 = vsub.f32 1.0, %v1233_v54 }
 0x3b0   :  { %1119 = vrot.lane.b32.xlu0 %v966_v32, %s4458_s5  ;;  %v1235_v59 = vmul.f32 %v3134_v18, %v1234_v58 }
 0x3b4   :  { %v1103_v63 = vpop.f32.mrf.mxu2 }
 0x3b5   :  { %1149 = vrot.lane.b32.xlu1 %v1103_v63, %s3237_s30 }
 0x3b6   :  { %v1116_v33 = vpop.permute.xlu1 %1115 }
 0x3b7   :  { %v1158_v20 = vsel %vm151_vm1, %v861_v22, %v1116_v33  ;;  %v1236_v22 = vadd.f32 %v3134_v18, %v1235_v59 }
 0x3b9   :  { %v3781_v24 = vsel %vm1237_vm3, %v3134_v18, %v1236_v22 }
 0x3bc   :  { %v1106_v50 = vpop.f32.mrf.mxu2 }
 0x3bd   :  { %1151 = vrot.lane.b32.xlu2 %v1106_v50, %s3237_s30 }
 0x3de   :  { %v1036_v9 = vpop.f32.mrf.mxu0 }
 0x3df   :  { %1135 = vrot.lane.b32.xlu1 %v1036_v9, %s3238_s6 }
 0x3e0   :  { %v1146_v13 = vpop.permute.xlu0 %1145 }
 0x3ec   :  { %v1130_v2 = vpop.permute.xlu1 %1129 }
 0x3ed   :  { %v1161_v15 = vsel %vm444_vm2, %v1157_v39, %v1130_v2 }
 0x3ee   :  { %v1166_v38 = vsel %vm1165_vm15, %v1161_v15, %v1146_v13 }
 0x3ef   :  { %2888 = vmatmul.msk.f32.vlgmr.msra.gmra.mxu3 %vm91_vm0, %v1166_v38  ;;  %v1332_v38 = vld [vmem:[%s4426_s7 + $0x18] sm:$0xff] }
 0x3f0   :  { %1378 = vmatpush.msra.mxu0 %v1332_v38 }
 0x3f4   :  { %v1118_v40 = vpop.permute.xlu1 %1117 }
 0x3f5   :  { %v1159_v57 = vsel %vm151_vm1, %v893_v51, %v1118_v40 }
 0x3fe   :  { %v1132_v16 = vpop.permute.xlu2 %1131 }
 0x3ff   :  { %v1162_v5 = vsel %vm444_vm2, %v1158_v20, %v1132_v16  ;;  %v1331_v16 = vld [vmem:[%s4426_s7 + $0x10] sm:$0xff]  ;;  %v1330_v20 = vld [vmem:[%s4426_s7 + $0x8] sm:$0xff] }
 0x400   :  { %1379 = vmatpush.msra.mxu0 %v1331_v16 }
 0x402   :  { %1380 = vmatpush.msra.mxu0 %v1330_v20 }
 0x408   :  { %v1148_v60 = vpop.permute.xlu0 %1147 }
 0x409   :  { %v1167_v21 = vsel %vm1165_vm15, %v1162_v5, %v1148_v60  ;;  %v1329_v5 = vld [vmem:[%s4426_s7] sm:$0xff]  ;;  %s4483_s7 = smov 64  }
 0x40a   :  { %2889 = vmatmul.msk.f32.gmra.mxu3 %vm91_vm0, %v1167_v21  ;;  %1381 = vmatpush.msra.mxu0 %v1329_v5  ;;  %v3061_v5 = vld [vmem:[%s4427_s8] ss:$0 sm:$0xff]  ;;  %s4479_s8 = smov 80  }
 0x417   :  { %v1152_v10 = vpop.permute.xlu2 %1151 }
 0x41a   :  { %v1134_v23 = vpop.permute.xlu0 %1133 }
 0x41b   :  { %v1163_v30 = vsel %vm444_vm2, %v1159_v57, %v1134_v23 }
 0x422   :  { %v1120_v8 = vpop.permute.xlu0 %1119 }
 0x423   :  { %v1160_v31 = vsel %vm151_vm1, %v896_v37, %v1120_v8 }
 0x427   :  { %v1150_v25 = vpop.permute.xlu1 %1149 }
 0x428   :  { %v1168_v29 = vsel %vm1165_vm15, %v1163_v30, %v1150_v25 }
 0x429   :  { %2890 = vmatmul.msk.f32.gmra.mxu3 %vm91_vm0, %v1168_v29 }
 0x451   :  { %v1136_v34 = vpop.permute.xlu1 %1135 }
 0x452   :  { %v1164_v28 = vsel %vm444_vm2, %v1160_v31, %v1136_v34  ;;  %v3059_v31 = vld [vmem:[%s4424_s15] ss:$0 sm:$0xff]  ;;  %s4492_s15 = smov 8  }
 0x453   :  { %v1169_v35 = vsel %vm1165_vm15, %v1164_v28, %v1152_v10  ;;  %v3060_v28 = vld [vmem:[%s4425_s16] ss:$0 sm:$0xff] }
 0x454   :  { %2891 = vmatmul.msk.f32.gmra.mxu3 %vm91_vm0, %v1169_v35 }
 0x472   :  { %v1202_v14 = vpop.f32.mrf.mxu3 }
 0x473   :  { %v1203_v53 = vadd.f32 %v3058_v36, %v1202_v14 }
 0x475   :  { %v1214_v19 = vadd.f32 %v3223_v1, %v1203_v53 }
 0x477   :  { %v1220_v17 = vsel %vm91_vm0, %v1214_v19, 0.0 }
 0x478   :  { %1221 = vadd.xlane.f32.xlu0 %v1220_v17 }
 0x48d   :  { %v1205_v41 = vpop.f32.mrf.mxu3 }
 0x48e   :  { %v1206_v43 = vadd.f32 %v3058_v36, %v1205_v41 }
 0x490   :  { %v1215_v46 = vadd.f32 %v3224_v45, %v1206_v43 }
 0x492   :  { %v1223_v62 = vsel %vm91_vm0, %v1215_v46, 0.0 }
 0x493   :  { %1224 = vadd.xlane.f32.xlu1 %v1223_v62 }
 0x4ac   :  { %v1208_v12 = vpop.f32.mrf.mxu3 }
 0x4ad   :  { %v1209_v47 = vadd.f32 %v3058_v36, %v1208_v12 }
 0x4af   :  { %v1216_v48 = vadd.f32 %v3223_v1, %v1209_v47 }
 0x4b1   :  { %v1226_v49 = vsel %vm91_vm0, %v1216_v48, 0.0 }
 0x4b2   :  { %1227 = vadd.xlane.f32.xlu2 %v1226_v49 }
 0x4d7   :  { %v1211_v3 = vpop.f32.mrf.mxu3 }
 0x4d8   :  { %v1212_v52 = vadd.f32 %v3058_v36, %v1211_v3 }
 0x4da   :  { %v1217_v55 = vadd.f32 %v3224_v45, %v1212_v52 }
 0x4dc   :  { %v1229_v56 = vsel %vm91_vm0, %v1217_v55, 0.0 }
 0x4dd   :  { %1230 = vadd.xlane.f32.xlu0 %v1229_v56 }
 0x4eb   :  { %v1222_v61 = vpop.xlane.xlu0 %1221 }
 0x4ec   :  { %v1239_v26 = vmul.f32 %v3781_v24, %v1222_v61 }
 0x4ee   :  { %v1243_v51 = vsub.f32 %v1214_v19, %v1239_v26 }
 0x4f0   :  { %v1247_v37 = vmul.f32 %v1243_v51, %v1243_v51 }
 0x4f2   :  { %v1251_v27 = vsel %vm91_vm0, %v1247_v37, 0.0 }
 0x4f3   :  { %1252 = vadd.xlane.f32.xlu1 %v1251_v27 }
 0x506   :  { %v1225_v0 = vpop.xlane.xlu1 %1224 }
 0x507   :  { %v1240_v32 = vmul.f32 %v3781_v24, %v1225_v0 }
 0x509   :  { %v1244_v63 = vsub.f32 %v1215_v46, %v1240_v32 }
 0x50b   :  { %v1248_v50 = vmul.f32 %v1244_v63, %v1244_v63 }
 0x50d   :  { %v1254_v4 = vsel %vm91_vm0, %v1248_v50, 0.0 }
 0x50e   :  { %1255 = vadd.xlane.f32.xlu2 %v1254_v4 }
 0x525   :  { %v1228_v6 = vpop.xlane.xlu2 %1227 }
 0x526   :  { %v1241_v42 = vmul.f32 %v3781_v24, %v1228_v6 }
 0x528   :  { %v3788_v7 = vsub.f32 %v1216_v48, %v1241_v42 }
 0x52a   :  { %v1249_v9 = vmul.f32 %v3788_v7, %v3788_v7 }
 0x52c   :  { %v1257_v33 = vsel %vm91_vm0, %v1249_v9, 0.0 }
 0x52d   :  { %1258 = vadd.xlane.f32.xlu0 %v1257_v33 }
 0x550   :  { %v1231_v11 = vpop.xlane.xlu0 %1230 }
 0x551   :  { %v1242_v39 = vmul.f32 %v3781_v24, %v1231_v11  ;;  %v72_v11 = vld [vmem:[%s4428_s1] sm:$0xff] }
 0x553   :  { %v3794_v2 = vsub.f32 %v1217_v55, %v1242_v39  ;;  %v73_v39 = vld [vmem:[%s4428_s1 + $0x8] sm:$0xff] }
 0x555   :  { %v1250_v13 = vmul.f32 %v3794_v2, %v3794_v2 }
 0x557   :  { %v1260_v15 = vsel %vm91_vm0, %v1250_v13, 0.0  ;;  %v75_v13 = vld [vmem:[%s4428_s1 + $0x18] sm:$0xff] }
 0x558   :  { %1261 = vadd.xlane.f32.xlu1 %v1260_v15 }
 0x566   :  { %v1253_v60 = vpop.xlane.xlu1 %1252 }
 0x567   :  { %v1263_v21 = vmul.f32 %v1253_v60, %v3781_v24 }
 0x569   :  { %v1267_v40 = vadd.f32 1e-05, %v1263_v21 }
 0x56b   :  { %3135 = vrsqrt.f32 %v1267_v40  ;;  %vm1277_vm5 = vweird.f32 %v1267_v40 }
 0x571   :  { %v3136_v23 = vpop.eup %3135 }
 0x572   :  { %v1272_v57 = vmul.f32 %v3136_v23, %v1267_v40  ;;  %vm1278_vm4 = vweird.f32 %v3136_v23 }
 0x573   :  { %vm1279_vm6 = vmor %vm1277_vm5, %vm1278_vm4 }
 0x574   :  { %v1273_v30 = vmul.f32 %v3136_v23, %v1272_v57 }
 0x576   :  { %v1274_v25 = vmul.f32 0.5, %v1273_v30 }
 0x578   :  { %v1275_v29 = vsub.f32 1.5, %v1274_v25 }
 0x57a   :  { %v1276_v8 = vmul.f32 %v3136_v23, %v1275_v29 }
 0x57c   :  { %v1280_v34 = vsel %vm1279_vm6, %v3136_v23, %v1276_v8 }
 0x57d   :  { %v1311_v10 = vmul.f32 %v1280_v34, %v1243_v51 }
 0x57f   :  { %v1318_v35 = vmul.f32 %v3059_v31, %v1311_v10 }
 0x581   :  { %v3818_v36 = vadd.f32 %v3060_v28, %v1318_v35  ;;  %v1256_v14 = vpop.xlane.xlu2 %1255 }
 0x582   :  { %v1264_v53 = vmul.f32 %v1256_v14, %v3781_v24 }
 0x583   :  { %2892 = vmatmul.msk.f32.vlgmr.msra.gmra.mxu0 %vm91_vm0, %v3818_v36 }
 0x584   :  { %v1268_v1 = vadd.f32 1e-05, %v1264_v53 }
 0x586   :  { %3137 = vrsqrt.f32 %v1268_v1  ;;  %vm1287_vm8 = vweird.f32 %v1268_v1 }
 0x58c   :  { %v3138_v19 = vpop.eup %3137 }
 0x58d   :  { %v1282_v17 = vmul.f32 %v3138_v19, %v1268_v1  ;;  %vm1288_vm7 = vweird.f32 %v3138_v19 }
 0x58e   :  { %vm1289_vm9 = vmor %vm1287_vm8, %vm1288_vm7 }
 0x58f   :  { %v1283_v41 = vmul.f32 %v3138_v19, %v1282_v17 }
 0x591   :  { %v1284_v43 = vmul.f32 0.5, %v1283_v41 }
 0x593   :  { %v1285_v45 = vsub.f32 1.5, %v1284_v43 }
 0x595   :  { %v1286_v46 = vmul.f32 %v3138_v19, %v1285_v45 }
 0x597   :  { %v1290_v62 = vsel %vm1289_vm9, %v3138_v19, %v1286_v46 }
 0x598   :  { %v1312_v12 = vmul.f32 %v1290_v62, %v1244_v63 }
 0x59a   :  { %v1319_v47 = vmul.f32 %v3059_v31, %v1312_v12 }
 0x59c   :  { %v3823_v48 = vadd.f32 %v3060_v28, %v1319_v47 }
 0x59e   :  { %2893 = vmatmul.msk.f32.gmra.mxu0 %vm91_vm0, %v3823_v48 }
 0x5a0   :  { %v1259_v49 = vpop.xlane.xlu0 %1258 }
 0x5a1   :  { %v1265_v44 = vmul.f32 %v1259_v49, %v3781_v24 }
 0x5a3   :  { %v1269_v18 = vadd.f32 1e-05, %v1265_v44 }
 0x5a5   :  { %3139 = vrsqrt.f32 %v1269_v18  ;;  %vm1297_vm11 = vweird.f32 %v1269_v18 }
 0x5ab   :  { %v3140_v3 = vpop.eup %3139 }
 0x5ac   :  { %v1292_v52 = vmul.f32 %v3140_v3, %v1269_v18  ;;  %vm1298_vm10 = vweird.f32 %v3140_v3 }
 0x5ad   :  { %vm1299_vm12 = vmor %vm1297_vm11, %vm1298_vm10 }
 0x5ae   :  { %v1293_v54 = vmul.f32 %v3140_v3, %v1292_v52 }
 0x5b0   :  { %v1294_v55 = vmul.f32 0.5, %v1293_v54 }
 0x5b2   :  { %v1295_v56 = vsub.f32 1.5, %v1294_v55 }
 0x5b4   :  { %v1296_v58 = vmul.f32 %v3140_v3, %v1295_v56 }
 0x5b6   :  { %v1300_v59 = vsel %vm1299_vm12, %v3140_v3, %v1296_v58 }
 0x5b7   :  { %v1313_v22 = vmul.f32 %v1300_v59, %v3788_v7 }
 0x5b9   :  { %v1320_v61 = vmul.f32 %v3059_v31, %v1313_v22 }
 0x5bb   :  { %v3829_v26 = vadd.f32 %v3060_v28, %v1320_v61 }
 0x5bd   :  { %2894 = vmatmul.msk.f32.gmra.mxu0 %vm91_vm0, %v3829_v26 }
 0x5cb   :  { %v1262_v51 = vpop.xlane.xlu1 %1261 }
 0x5cc   :  { %v1266_v37 = vmul.f32 %v1262_v51, %v3781_v24 }
 0x5ce   :  { %v1270_v27 = vadd.f32 1e-05, %v1266_v37 }
 0x5d0   :  { %3141 = vrsqrt.f32 %v1270_v27  ;;  %vm1307_vm14 = vweird.f32 %v1270_v27 }
 0x5d6   :  { %v3142_v0 = vpop.eup %3141 }
 0x5d7   :  { %v1302_v32 = vmul.f32 %v3142_v0, %v1270_v27  ;;  %vm1308_vm13 = vweird.f32 %v3142_v0 }
 0x5d8   :  { %vm1309_vm3 = vmor %vm1307_vm14, %vm1308_vm13 }
 0x5d9   :  { %v1303_v63 = vmul.f32 %v3142_v0, %v1302_v32 }
 0x5db   :  { %v1304_v50 = vmul.f32 0.5, %v1303_v63 }
 0x5dd   :  { %v1305_v4 = vsub.f32 1.5, %v1304_v50 }
 0x5df   :  { %v1306_v6 = vmul.f32 %v3142_v0, %v1305_v4 }
 0x5e1   :  { %v1310_v42 = vsel %vm1309_vm3, %v3142_v0, %v1306_v6 }
 0x5e2   :  { %v1314_v7 = vmul.f32 %v1310_v42, %v3794_v2  ;;  %v74_v2 = vld [vmem:[%s4428_s1 + $0x10] sm:$0xff]  ;;  %s4478_s1 = smov 120  }
 0x5e4   :  { %v1321_v9 = vmul.f32 %v3059_v31, %v1314_v7 }
 0x5e6   :  { %v3835_v33 = vadd.f32 %v3060_v28, %v1321_v9 }
 0x5e8   :  { %2895 = vmatmul.msk.f32.gmra.mxu0 %vm91_vm0, %v3835_v33 }
 0x5f0   :  { %2896 = vmatmul.msk.f32.gmra.mxu0 %vm91_vm0, %v72_v11 }
 0x5f8   :  { %2897 = vmatmul.msk.f32.gmra.mxu0 %vm91_vm0, %v73_v39 }
 0x600   :  { %2898 = vmatmul.msk.f32.gmra.mxu0 %vm91_vm0, %v74_v2  ;;  %v1383_v15 = vpop.f32.mrf.mxu0 }
 0x601   :  { %v1384_v10 = vadd.f32 %v3061_v5, %v1383_v15 }
 0x608   :  { %2899 = vmatmul.msk.f32.gmra.mxu0 %vm91_vm0, %v75_v13 }
 0x61b   :  { %v1386_v38 = vpop.f32.mrf.mxu0 }
 0x61c   :  { %v1387_v35 = vadd.f32 %v3061_v5, %v1386_v38 }
 0x63a   :  { %v1389_v16 = vpop.f32.mrf.mxu0 }
 0x63b   :  { %v1390_v34 = vadd.f32 %v3061_v5, %v1389_v16 }
 0x665   :  { %v1392_v20 = vpop.f32.mrf.mxu0 }
 0x666   :  { %v1393_v28 = vadd.f32 %v3061_v5, %v1392_v20 }
 0x66d   :  { %v1395_v60 = vpop.f32.mrf.mxu0 }
 0x66e   :  { %v1396_v21 = vadd.f32 %v3061_v5, %v1395_v60 }
 0x670   :  { %1409 = vrot.lane.b32.xlu0 %v1396_v21, %s3226_s2 }
 0x675   :  { %v1398_v40 = vpop.f32.mrf.mxu0 }
 0x676   :  { %v1399_v23 = vadd.f32 %v3061_v5, %v1398_v40 }
 0x678   :  { %1411 = vrot.lane.b32.xlu1 %v1399_v23, %s3226_s2  ;;  %v3860_v57 = vpack.i.bf16 %v1396_v21, %v1399_v23 }
 0x67d   :  { %v1401_v30 = vpop.f32.mrf.mxu0 }
 0x67e   :  { %v1402_v25 = vadd.f32 %v3061_v5, %v1401_v30 }
 0x680   :  { %1528 = vrot.lane.b32.xlu1 %v1402_v25, %s3227_s24  ;;  %1448 = vrot.lane.b32.xlu0 %v1402_v25, %s3226_s2 }
 0x685   :  { %v1404_v29 = vpop.f32.mrf.mxu0 }
 0x686   :  { %v1405_v8 = vadd.f32 %v3061_v5, %v1404_v29 }
 0x688   :  { %1450 = vrot.lane.b32.xlu2 %v1405_v8, %s3226_s2  ;;  %1489 = vrot.lane.b32.xlu1 %v1396_v21, %s3227_s24  ;;  %v3866_v31 = vpack.i.bf16 %v1402_v25, %v1405_v8  ;;  %s4480_s2 = smov 112  }
 0x689   :  { %1491 = vrot.lane.b32.xlu0 %v1399_v23, %s3227_s24 }
 0x690   :  { %1647 = vrot.lane.b32.xlu1 %v1399_v23, %s3229_s25  ;;  %1524 = vrot.lane.b32.xlu2 %v1390_v34, %s4478_s1 }
 0x691   :  { %1485 = vrot.lane.b32.xlu0 %v1384_v10, %s4478_s1 }
 0x698   :  { %1569 = vrot.lane.b32.xlu1 %v1399_v23, %s4479_s8  ;;  %1530 = vrot.lane.b32.xlu2 %v1405_v8, %s3227_s24  ;;  %s4482_s24 = smov 56  }
 0x699   :  { %1645 = vrot.lane.b32.xlu0 %v1396_v21, %s3229_s25 }
 0x6a0   :  { %1563 = vrot.lane.b32.xlu1 %v1384_v10, %s4480_s2  ;;  %1526 = vrot.lane.b32.xlu2 %v1393_v28, %s4478_s1 }
 0x6a1   :  { %1641 = vrot.lane.b32.xlu0 %v1384_v10, %s4481_s29 }
 0x6a8   :  { %1608 = vrot.lane.b32.xlu1 %v1405_v8, %s4479_s8  ;;  %1487 = vrot.lane.b32.xlu2 %v1387_v35, %s4478_s1 }
 0x6a9   :  { %1643 = vrot.lane.b32.xlu0 %v1387_v35, %s4481_s29 }
 0x6b0   :  { %1684 = vrot.lane.b32.xlu1 %v1402_v25, %s3229_s25  ;;  %1567 = vrot.lane.b32.xlu2 %v1396_v21, %s4479_s8 }
 0x6b1   :  { %1686 = vrot.lane.b32.xlu0 %v1405_v8, %s3229_s25  ;;  %s4485_s25 = smov 48  }
 0x6b8   :  { %1604 = vrot.lane.b32.xlu1 %v1393_v28, %s4480_s2  ;;  %1565 = vrot.lane.b32.xlu2 %v1387_v35, %s4480_s2 }
 0x6b9   :  { %1602 = vrot.lane.b32.xlu0 %v1390_v34, %s4480_s2 }
 0x6c0   :  { %3018 = vrot.lane.b32.xlu1 %v3860_v57, %s4482_s24  ;;  %1606 = vrot.lane.b32.xlu2 %v1402_v25, %s4479_s8 }
 0x6c1   :  { %1682 = vrot.lane.b32.xlu0 %v1393_v28, %s4481_s29 }
 0x6c8   :  { %1680 = vrot.lane.b32.xlu2 %v1390_v34, %s4481_s29 }
 0x6c9   :  { %3023 = vrot.lane.b32.xlu0 %v3860_v57, %s4483_s7 }
 0x6d0   :  { %3028 = vrot.lane.b32.xlu2 %v3860_v57, %s4484_s22 }
 0x6d8   :  { %3033 = vrot.lane.b32.xlu2 %v3866_v31, %s4483_s7 }
 0x6e2   :  { %v1451_v14 = vpop.permute.xlu2 %1450  ;;  %v1410_v53 = vpop.permute.xlu0 %1409 }
 0x6e3   :  { %2904 = vmatpush.xpose.msk.msrb.mxu2 %vm151_vm1, %v1451_v14 }
 0x6ea   :  { %v1412_v1 = vpop.permute.xlu1 %1411  ;;  %v1525_v19 = vpop.permute.xlu2 %1524 }
 0x6eb   :  { %2900 = vmatpush.xpose.msk.msrb.mxu1 %vm151_vm1, %v1412_v1 }
 0x6ef   :  { %2901 = vmatpush.xpose.msk.msrb.mxu1 %vm151_vm1, %v1410_v53 }
 0x6f2   :  { %v1529_v17 = vpop.permute.xlu1 %1528  ;;  %2902 = vmatmul.msk.f32.vlgmr.msrb.gmra.mxu1 %vm151_vm1, %v1384_v10  ;;  %v1449_v41 = vpop.permute.xlu0 %1448 }
 0x6f3   :  { %v1531_v43 = vpop.permute.xlu2 %1530  ;;  %2905 = vmatpush.xpose.msk.msrb.mxu2 %vm151_vm1, %v1449_v41 }
 0x6f6   :  { %2906 = vmatmul.msk.f32.vlgmr.msrb.gmra.mxu2 %vm151_vm1, %v1390_v34 }
 0x6f7   :  { %2912 = vmatpush.xpose.msk.msra.mxu2 %vm151_vm1, %v1531_v43 }
 0x6fa   :  { %v1490_v45 = vpop.permute.xlu1 %1489  ;;  %2903 = vmatmul.msk.f32.gmra.mxu1 %vm151_vm1, %v1387_v35 }
 0x6fb   :  { %2913 = vmatpush.xpose.msk.msra.mxu2 %vm151_vm1, %v1529_v17  ;;  %v1492_v46 = vpop.permute.xlu0 %1491  ;;  %v1527_v62 = vpop.permute.xlu2 %1526 }
 0x6fc   :  { %2908 = vmatpush.xpose.msk.msra.mxu1 %vm151_vm1, %v1492_v46 }
 0x6fe   :  { %2907 = vmatmul.msk.f32.gmra.mxu2 %vm151_vm1, %v1393_v28 }
 0x700   :  { %2909 = vmatpush.xpose.msk.msra.mxu1 %vm151_vm1, %v1490_v45 }
 0x702   :  { %v1648_v12 = vpop.permute.xlu1 %1647 }
 0x703   :  { %v1486_v47 = vpop.permute.xlu0 %1485  ;;  %v1488_v49 = vpop.permute.xlu2 %1487  ;;  %2924 = vmatpush.xpose.msk.msrb.mxu2 %vm151_vm1, %v1648_v12 }
 0x704   :  { %2910 = vmatmul.msk.f32.vlgmr.msra.gmra.mxu1 %vm151_vm1, %v1486_v47 }
 0x706   :  { %2914 = vmatmul.msk.f32.vlgmr.msra.gmra.mxu2 %vm151_vm1, %v1525_v19 }
 0x70a   :  { %v1570_v44 = vpop.permute.xlu1 %1569 }
 0x70b   :  { %v1646_v18 = vpop.permute.xlu0 %1645  ;;  %v1568_v3 = vpop.permute.xlu2 %1567  ;;  %2916 = vmatpush.xpose.msk.msrb.mxu3 %vm151_vm1, %v1570_v44 }
 0x70c   :  { %2911 = vmatmul.msk.f32.gmra.mxu1 %vm151_vm1, %v1488_v49  ;;  %2925 = vmatpush.xpose.msk.msrb.mxu2 %vm151_vm1, %v1646_v18 }
 0x70e   :  { %2915 = vmatmul.msk.f32.gmra.mxu2 %vm151_vm1, %v1527_v62 }
 0x70f   :  { %2917 = vmatpush.xpose.msk.msrb.mxu3 %vm151_vm1, %v1568_v3 }
 0x712   :  { %v1564_v52 = vpop.permute.xlu1 %1563 }
 0x713   :  { %v1642_v54 = vpop.permute.xlu0 %1641  ;;  %v1566_v55 = vpop.permute.xlu2 %1565  ;;  %2918 = vmatmul.msk.f32.vlgmr.msrb.gmra.mxu3 %vm151_vm1, %v1564_v52 }
 0x716   :  { %2926 = vmatmul.msk.f32.vlgmr.msrb.gmra.mxu2 %vm151_vm1, %v1642_v54 }
 0x71a   :  { %v1609_v56 = vpop.permute.xlu1 %1608 }
 0x71b   :  { %v1644_v58 = vpop.permute.xlu0 %1643  ;;  %v1607_v59 = vpop.permute.xlu2 %1606  ;;  %2919 = vmatmul.msk.f32.gmra.mxu3 %vm151_vm1, %v1566_v55  ;;  %2920 = vmatpush.xpose.msk.msrb.mxu1 %vm151_vm1, %v1609_v56 }
 0x71e   :  { %2927 = vmatmul.msk.f32.gmra.mxu2 %vm151_vm1, %v1644_v58 }
 0x71f   :  { %2921 = vmatpush.xpose.msk.msrb.mxu1 %vm151_vm1, %v1607_v59 }
 0x722   :  { %v1685_v22 = vpop.permute.xlu1 %1684 }
 0x723   :  { %v1687_v61 = vpop.permute.xlu0 %1686  ;;  %v1681_v51 = vpop.permute.xlu2 %1680 }
 0x724   :  { %2928 = vmatpush.xpose.msk.msra.mxu3 %vm151_vm1, %v1687_v61 }
 0x728   :  { %2929 = vmatpush.xpose.msk.msra.mxu3 %vm151_vm1, %v1685_v22 }
 0x72a   :  { %v1605_v37 = vpop.permute.xlu1 %1604 }
 0x72b   :  { %v1603_v27 = vpop.permute.xlu0 %1602  ;;  %2930 = vmatmul.msk.f32.vlgmr.msra.gmra.mxu3 %vm151_vm1, %v1681_v51  ;;  %v3029_v0 = vpop.permute.xlu2 %3028 }
 0x72c   :  { %2922 = vmatmul.msk.f32.vlgmr.msrb.gmra.mxu1 %vm151_vm1, %v1603_v27  ;;  %v3030_v7 = vunpack.i.l.bf16 %v3029_v0  ;;  %v3031_v11 = vunpack.i.h.bf16 %v3029_v0 }
 0x732   :  { %v3019_v32 = vpop.permute.xlu1 %3018 }
 0x733   :  { %v3020_v63 = vunpack.i.l.bf16 %v3019_v32  ;;  %v1683_v50 = vpop.permute.xlu0 %1682  ;;  %v3034_v4 = vpop.permute.xlu2 %3033  ;;  %v3021_v42 = vunpack.i.h.bf16 %v3019_v32 }
 0x734   :  { %v3035_v6 = vunpack.i.l.bf16 %v3034_v4  ;;  %2923 = vmatmul.msk.f32.gmra.mxu1 %vm151_vm1, %v1605_v37  ;;  %2931 = vmatmul.msk.f32.gmra.mxu3 %vm151_vm1, %v1683_v50  ;;  %v3036_v9 = vunpack.i.h.bf16 %v3034_v4 }
 0x735   :  { %2215 = vmatpush.msrb.mxu3 %v3020_v63 }
 0x736   :  { %2180 = vmatpush.msra.mxu2 %v3035_v6 }
 0x737   :  { %2216 = vmatpush.msrb.mxu3 %v3021_v42 }
 0x738   :  { %2181 = vmatpush.msra.mxu2 %v3036_v9 }
 0x739   :  { %2355 = vmatpush.msra.mxu3 %v3030_v7 }
 0x73b   :  { %2356 = vmatpush.msra.mxu3 %v3031_v11  ;;  %v3024_v39 = vpop.permute.xlu0 %3023 }
 0x73c   :  { %v3025_v2 = vunpack.i.l.bf16 %v3024_v39  ;;  %v3026_v13 = vunpack.i.h.bf16 %v3024_v39 }
 0x73e   :  { %2145 = vmatpush.msra.mxu1 %v3025_v2 }
 0x740   :  { %2146 = vmatpush.msra.mxu1 %v3026_v13 }
 0x76f   :  { %v1440_v15 = vpop.f32.mrf.mxu1 }
 0x770   :  { %v3930_v38 = vmul.f32 0.35355338, %v1440_v15 }
 0x772   :  { %v1735_v16 = vsel %vm444_vm2, %v3930_v38, -inf }
 0x773   :  { %1736 = vmax.xlane.f32.xlu1 %v1735_v16 }
 0x777   :  { %v1443_v20 = vpop.f32.mrf.mxu1 }
 0x778   :  { %v1720_v28 = vmul.f32 0.35355338, %v1443_v20 }
 0x779   :  { %v1479_v60 = vpop.f32.mrf.mxu2 }
 0x77a   :  { %v1738_v53 = vsel %vm444_vm2, %v1720_v28, -inf  ;;  %v3948_v19 = vmul.f32 0.35355338, %v1479_v60 }
 0x77c   :  { %v1759_v46 = vsel %vm444_vm2, %v3948_v19, -inf }
 0x781   :  { %v1518_v5 = vpop.f32.mrf.mxu1  ;;  %v1482_v30 = vpop.f32.mrf.mxu2 }
 0x782   :  { %v3938_v25 = vmul.f32 0.35355338, %v1482_v30  ;;  %v3950_v17 = vmul.f32 0.35355338, %v1518_v5 }
 0x784   :  { %v1762_v29 = vsel %vm444_vm2, %v3938_v25, -inf  ;;  %v1741_v45 = vsel %vm444_vm2, %v3950_v17, -inf }
 0x789   :  { %v1521_v21 = vpop.f32.mrf.mxu1  ;;  %v1557_v41 = vpop.f32.mrf.mxu2 }
 0x78a   :  { %v3934_v40 = vmul.f32 0.35355338, %v1521_v21  ;;  %v3961_v52 = vmul.f32 0.35355338, %v1557_v41 }
 0x78c   :  { %v1744_v23 = vsel %vm444_vm2, %v3934_v40, -inf  ;;  %v1765_v59 = vsel %vm444_vm2, %v3961_v52, -inf }
 0x78d   :  { %1745 = vmax.xlane.f32.xlu0 %v1744_v23 }
 0x791   :  { %v1560_v12 = vpop.f32.mrf.mxu2 }
 0x792   :  { %v3963_v55 = vmul.f32 0.35355338, %v1560_v12 }
 0x794   :  { %v1768_v61 = vsel %vm444_vm2, %v3963_v55, -inf }
 0x795   :  { %1763 = vmax.xlane.f32.xlu0 %v1762_v29 }
 0x796   :  { %v1596_v8 = vpop.f32.mrf.mxu3 }
 0x797   :  { %v1723_v34 = vmul.f32 0.35355338, %v1596_v8 }
 0x799   :  { %v1747_v10 = vsel %vm444_vm2, %v1723_v34, -inf  ;;  %v1674_v58 = vpop.f32.mrf.mxu2 }
 0x79a   :  { %1748 = vmax.xlane.f32.xlu2 %v1747_v10  ;;  %v3975_v37 = vmul.f32 0.35355338, %v1674_v58 }
 0x79c   :  { %v1753_v32 = vsel %vm444_vm2, %v3975_v37, -inf }
 0x79e   :  { %v1599_v35 = vpop.f32.mrf.mxu3 }
 0x79f   :  { %v3943_v14 = vmul.f32 0.35355338, %v1599_v35 }
 0x7a1   :  { %v1750_v1 = vsel %vm444_vm2, %v3943_v14, -inf  ;;  %v1677_v0 = vpop.f32.mrf.mxu2 }
 0x7a2   :  { %1739 = vmax.xlane.f32.xlu2 %v1738_v53  ;;  %1751 = vmax.xlane.f32.xlu1 %v1750_v1  ;;  %v3981_v63 = vmul.f32 0.35355338, %v1677_v0 }
 0x7a4   :  { %v1756_v50 = vsel %vm444_vm2, %v3981_v63, -inf }
 0x7a9   :  { %v1635_v43 = vpop.f32.mrf.mxu1 }
 0x7aa   :  { %1742 = vmax.xlane.f32.xlu2 %v1741_v45  ;;  %1760 = vmax.xlane.f32.xlu1 %v1759_v46  ;;  %v3973_v51 = vmul.f32 0.35355338, %v1635_v43 }
 0x7ac   :  { %v1771_v27 = vsel %vm444_vm2, %v3973_v51, -inf }
 0x7ae   :  { %v1713_v62 = vpop.f32.mrf.mxu3 }
 0x7af   :  { %v1733_v47 = vmul.f32 0.35355338, %v1713_v62 }
 0x7b1   :  { %v1638_v49 = vpop.f32.mrf.mxu1  ;;  %v1777_v44 = vsel %vm444_vm2, %v1733_v47, -inf }
 0x7b2   :  { %v3957_v18 = vmul.f32 0.35355338, %v1638_v49  ;;  %1778 = vmax.xlane.f32.xlu1 %v1777_v44 }
 0x7b4   :  { %v1774_v3 = vsel %vm444_vm2, %v3957_v18, -inf }
 0x7b5   :  { %1775 = vmax.xlane.f32.xlu0 %v1774_v3 }
 0x7b7   :  { %v1716_v54 = vpop.f32.mrf.mxu3 }
 0x7b8   :  { %v3965_v56 = vmul.f32 0.35355338, %v1716_v54 }
 0x7ba   :  { %v1780_v22 = vsel %vm444_vm2, %v3965_v56, -inf  ;;  %1766 = vmax.xlane.f32.xlu1 %v1765_v59 }
 0x7bb   :  { %1781 = vmax.xlane.f32.xlu2 %v1780_v22 }
 0x7bd   :  { %1769 = vmax.xlane.f32.xlu0 %v1768_v61 }
 0x7c3   :  { %1772 = vmax.xlane.f32.xlu2 %v1771_v27 }
 0x7c5   :  { %1754 = vmax.xlane.f32.xlu0 %v1753_v32 }
 0x7cb   :  { %1757 = vmax.xlane.f32.xlu2 %v1756_v50 }
 0x7e6   :  { %v1737_v4 = vpop.xlane.xlu1 %1736 }
 0x7e7   :  { %v1783_v6 = vsub.f32 %v3930_v38, %v1737_v4 }
 0x7e9   :  { %v1799_v42 = vmul.f32 1.442695, %v1783_v6 }
 0x7eb   :  { %3143 = vpow2.f32 %v1799_v42 }
 0x7f1   :  { %v3986_v7 = vpop.eup %3143 }
 0x7f2   :  { %v1831_v9 = vsel %vm444_vm2, %v3986_v7, 0.0 }
 0x7f3   :  { %1832 = vadd.xlane.f32.xlu0 %v1831_v9 }
 0x800   :  { %v1746_v29 = vpop.xlane.xlu0 %1745 }
 0x801   :  { %v1786_v1 = vsub.f32 %v3934_v40, %v1746_v29 }
 0x808   :  { %v1764_v43 = vpop.xlane.xlu0 %1763 }
 0x809   :  { %v1792_v12 = vsub.f32 %v3938_v25, %v1764_v43 }
 0x80b   :  { %v1817_v44 = vmul.f32 1.442695, %v1792_v12 }
 0x80d   :  { %v1749_v11 = vpop.xlane.xlu2 %1748 }
 0x80e   :  { %v1787_v39 = vsub.f32 %v1723_v34, %v1749_v11 }
 0x810   :  { %v1807_v2 = vmul.f32 1.442695, %v1787_v39 }
 0x812   :  { %3145 = vpow2.f32 %v1807_v2 }
 0x815   :  { %v1752_v13 = vpop.xlane.xlu1 %1751  ;;  %v1740_v15 = vpop.xlane.xlu2 %1739 }
 0x816   :  { %v1784_v16 = vsub.f32 %v1720_v28, %v1740_v15  ;;  %v1788_v38 = vsub.f32 %v3943_v14, %v1752_v13 }
 0x818   :  { %v3990_v20 = vpop.eup %3145  ;;  %v1801_v5 = vmul.f32 1.442695, %v1784_v16  ;;  %v1809_v21 = vmul.f32 1.442695, %v1788_v38 }
 0x819   :  { %v1843_v60 = vsel %vm444_vm2, %v3990_v20, 0.0 }
 0x81a   :  { %1844 = vadd.xlane.f32.xlu0 %v1843_v60  ;;  %3147 = vpow2.f32 %v1801_v5 }
 0x81b   :  { %3149 = vpow2.f32 %v1809_v21 }
 0x81d   :  { %v1761_v23 = vpop.xlane.xlu1 %1760  ;;  %v1743_v30 = vpop.xlane.xlu2 %1742 }
 0x81e   :  { %v1785_v34 = vsub.f32 %v3950_v17, %v1743_v30  ;;  %v1805_v17 = vmul.f32 1.442695, %v1786_v1  ;;  %v1791_v42 = vsub.f32 %v3948_v19, %v1761_v23 }
 0x820   :  { %v3995_v8 = vpop.eup %3147  ;;  %v1803_v28 = vmul.f32 1.442695, %v1785_v34  ;;  %v1815_v39 = vmul.f32 1.442695, %v1791_v42 }
 0x821   :  { %v1834_v10 = vsel %vm444_vm2, %v3995_v8, 0.0  ;;  %v4000_v53 = vpop.eup %3149 }
 0x822   :  { %1835 = vadd.xlane.f32.xlu1 %v1834_v10  ;;  %3151 = vpow2.f32 %v1803_v28  ;;  %v1846_v45 = vsel %vm444_vm2, %v4000_v53, 0.0 }
 0x825   :  { %v1779_v35 = vpop.xlane.xlu1 %1778 }
 0x826   :  { %v1797_v14 = vsub.f32 %v1733_v47, %v1779_v35 }
 0x828   :  { %v1827_v41 = vmul.f32 1.442695, %v1797_v14  ;;  %v4007_v46 = vpop.eup %3151  ;;  %v1776_v40 = vpop.xlane.xlu0 %1775 }
 0x829   :  { %v1837_v49 = vsel %vm444_vm2, %v4007_v46, 0.0 }
 0x82a   :  { %3153 = vpow2.f32 %v1827_v41  ;;  %1847 = vadd.xlane.f32.xlu1 %v1846_v45 }
 0x82b   :  { %3155 = vpow2.f32 %v1805_v17 }
 0x82c   :  { %3157 = vpow2.f32 %v1817_v44 }
 0x82d   :  { %v1767_v3 = vpop.xlane.xlu1 %1766 }
 0x82e   :  { %3043 = vrot.lane.b32.xlu0 %v3866_v31, %s4482_s24  ;;  %v1793_v58 = vsub.f32 %v3961_v52, %v1767_v3  ;;  %v1782_v59 = vpop.xlane.xlu2 %1781 }
 0x82f   :  { %v1798_v10 = vsub.f32 %v3965_v56, %v1782_v59 }
 0x830   :  { %v4009_v62 = vpop.eup %3153  ;;  %v1770_v22 = vpop.xlane.xlu0 %1769  ;;  %v1819_v61 = vmul.f32 1.442695, %v1793_v58 }
 0x831   :  { %v1873_v47 = vsel %vm444_vm2, %v4009_v62, 0.0  ;;  %v4016_v54 = vpop.eup %3155  ;;  %v1794_v0 = vsub.f32 %v3963_v55, %v1770_v22  ;;  %v1829_v14 = vmul.f32 1.442695, %v1798_v10 }
 0x832   :  { %1874 = vadd.xlane.f32.xlu2 %v1873_v47  ;;  %1838 = vadd.xlane.f32.xlu1 %v1837_v49  ;;  %v1840_v25 = vsel %vm444_vm2, %v4016_v54, 0.0  ;;  %v4021_v27 = vpop.eup %3157  ;;  %3159 = vpow2.f32 %v1819_v61 }
 0x833   :  { %v1858_v32 = vsel %vm444_vm2, %v4021_v27, 0.0  ;;  %v1821_v4 = vmul.f32 1.442695, %v1794_v0 }
 0x835   :  { %3161 = vpow2.f32 %v1821_v4 }
 0x836   :  { %v1773_v50 = vpop.xlane.xlu2 %1772  ;;  %3163 = vpow2.f32 %v1815_v39 }
 0x837   :  { %v1795_v15 = vsub.f32 %v3973_v51, %v1773_v50 }
 0x838   :  { %v1755_v6 = vpop.xlane.xlu0 %1754  ;;  %v4026_v52 = vpop.eup %3159 }
 0x839   :  { %v1789_v9 = vsub.f32 %v3975_v37, %v1755_v6  ;;  %v1861_v11 = vsel %vm444_vm2, %v4026_v52, 0.0  ;;  %v1823_v16 = vmul.f32 1.442695, %v1795_v15 }
 0x83a   :  { %1841 = vadd.xlane.f32.xlu2 %v1840_v25 }
 0x83b   :  { %v1811_v55 = vmul.f32 1.442695, %v1789_v9  ;;  %v4034_v13 = vpop.eup %3161 }
 0x83c   :  { %v1864_v37 = vsel %vm444_vm2, %v4034_v13, 0.0  ;;  %v4040_v5 = vpop.eup %3163 }
 0x83d   :  { %3165 = vpow2.f32 %v1811_v55  ;;  %v1855_v21 = vsel %vm444_vm2, %v4040_v5, 0.0 }
 0x83e   :  { %v1758_v2 = vpop.xlane.xlu2 %1757  ;;  %3167 = vpow2.f32 %v1823_v16 }
 0x83f   :  { %v1790_v19 = vsub.f32 %v3981_v63, %v1758_v2 }
 0x841   :  { %v1813_v38 = vmul.f32 1.442695, %v1790_v19 }
 0x842   :  { %1859 = vadd.xlane.f32.xlu2 %v1858_v32 }
 0x843   :  { %v4042_v60 = vpop.eup %3165  ;;  %3169 = vpow2.f32 %v1813_v38 }
 0x844   :  { %v1849_v51 = vsel %vm444_vm2, %v4042_v60, 0.0  ;;  %v4049_v23 = vpop.eup %3167 }
 0x845   :  { %v1867_v29 = vsel %vm444_vm2, %v4049_v23, 0.0 }
 0x849   :  { %v4051_v30 = vpop.eup %3169 }
 0x84a   :  { %1862 = vadd.xlane.f32.xlu2 %v1861_v11 }
 0x84b   :  { %3038 = vrot.lane.b32.xlu1 %v3860_v57, %s4485_s25  ;;  %v1796_v57 = vsub.f32 %v3957_v18, %v1776_v40  ;;  %v1852_v18 = vsel %vm444_vm2, %v4051_v30, 0.0 }
 0x84d   :  { %v1825_v63 = vmul.f32 1.442695, %v1796_v57 }
 0x84f   :  { %3171 = vpow2.f32 %v1825_v63 }
 0x852   :  { %1865 = vadd.xlane.f32.xlu2 %v1864_v37 }
 0x855   :  { %v4057_v34 = vpop.eup %3171 }
 0x856   :  { %v1870_v35 = vsel %vm444_vm2, %v4057_v34, 0.0 }
 0x858   :  { %1856 = vadd.xlane.f32.xlu0 %v1855_v21 }
 0x85a   :  { %1850 = vadd.xlane.f32.xlu2 %v1849_v51 }
 0x860   :  { %1868 = vadd.xlane.f32.xlu0 %v1867_v29 }
 0x862   :  { %1853 = vadd.xlane.f32.xlu2 %v1852_v18 }
 0x866   :  { %v1833_v28 = vpop.xlane.xlu0 %1832 }
 0x867   :  { %3173 = vrcp.f32 %v1833_v28  ;;  %v1890_v45 = vand.u32 2147483648, %v1833_v28  ;;  %v1888_v40 = vand.u32 2147483647, %v1833_v28  ;;  %vm1884_vm5 = vweird.f32 %v1833_v28 }
 0x868   :  { %1871 = vadd.xlane.f32.xlu0 %v1870_v35  ;;  %3175 = vpow2.f32 %v1829_v14 }
 0x869   :  { %v1891_v56 = vor.u32 1.1754944e-38, %v1890_v45  ;;  %vm1889_vm7 = vcmp.eq.f32.partialorder %v1888_v40, 8.507059e+37 }
 0x86d   :  { %v3174_v1 = vpop.eup %3173 }
 0x86e   :  { %v1880_v41 = vmul.f32 %v3174_v1, %v1833_v28  ;;  %v4062_v17 = vpop.eup %3175  ;;  %vm1885_vm4 = vweird.f32 %v3174_v1 }
 0x86f   :  { %vm1886_vm6 = vmor %vm1884_vm5, %vm1885_vm4  ;;  %v1876_v49 = vsel %vm444_vm2, %v4062_v17, 0.0 }
 0x870   :  { %v1881_v43 = vsub.f32 1.0, %v1880_v41 }
 0x872   :  { %v1882_v12 = vmul.f32 %v3174_v1, %v1881_v43 }
 0x874   :  { %v1883_v47 = vadd.f32 %v3174_v1, %v1882_v12 }
 0x875   :  { %1877 = vadd.xlane.f32.xlu1 %v1876_v49 }
 0x876   :  { %v1887_v44 = vsel %vm1886_vm6, %v3174_v1, %v1883_v47 }
 0x877   :  { %v1892_v3 = vsel %vm1889_vm7, %v1891_v56, %v1887_v44 }
 0x878   :  { %v1893_v58 = vmul.f32 %v3986_v7, %v1892_v3 }
 0x87a   :  { %2932 = vmatmul.msk.f32.vlgmr.msra.gmra.mxu1 %vm444_vm2, %v1893_v58  ;;  %3053 = vrot.lane.b32.xlu2 %v3866_v31, %s4484_s22 }
 0x87c   :  { %3048 = vrot.lane.b32.xlu0 %v3866_v31, %s4485_s25 }
 0x88d   :  { %v4072_v25 = vpop.xlane.xlu0 %1844 }
 0x88e   :  { %v1950_v3 = vand.u32 2147483648, %v4072_v25  ;;  %vm1944_vm6 = vweird.f32 %v4072_v25 }
 0x895   :  { %v1836_v59 = vpop.xlane.xlu1 %1835 }
 0x896   :  { %3177 = vrcp.f32 %v1836_v59  ;;  %v1905_v6 = vand.u32 2147483648, %v1836_v59  ;;  %v1903_v31 = vand.u32 2147483647, %v1836_v59  ;;  %vm1899_vm9 = vweird.f32 %v1836_v59 }
 0x897   :  { %3179 = vrcp.f32 %v4072_v25 }
 0x898   :  { %v1906_v55 = vor.u32 1.1754944e-38, %v1905_v6  ;;  %vm1904_vm11 = vcmp.eq.f32.partialorder %v1903_v31, 8.507059e+37 }
 0x89c   :  { %v3178_v22 = vpop.eup %3177 }
 0x89d   :  { %v1895_v61 = vmul.f32 %v3178_v22, %v1836_v59  ;;  %v4074_v0 = vpop.xlane.xlu1 %1847  ;;  %vm1900_vm8 = vweird.f32 %v3178_v22  ;;  %v3180_v15 = vpop.eup %3179 }
 0x89e   :  { %vm1901_vm10 = vmor %vm1899_vm9, %vm1900_vm8  ;;  %v1940_v16 = vmul.f32 %v3180_v15, %v4072_v25  ;;  %vm1945_vm4 = vweird.f32 %v3180_v15 }
 0x89f   :  { %v1896_v32 = vsub.f32 1.0, %v1895_v61  ;;  %vm4096_vm7 = vmor %vm1944_vm6, %vm1945_vm4 }
 0x8a0   :  { %v3044_v50 = vpop.permute.xlu0 %3043  ;;  %v1941_v51 = vsub.f32 1.0, %v1940_v16 }
 0x8a1   :  { %v3045_v4 = vunpack.i.l.bf16 %v3044_v50  ;;  %v1897_v7 = vmul.f32 %v3178_v22, %v1896_v32  ;;  %v3046_v42 = vunpack.i.h.bf16 %v3044_v50 }
 0x8a3   :  { %2250 = vmatpush.msrb.mxu0 %v3045_v4  ;;  %v1898_v9 = vadd.f32 %v3178_v22, %v1897_v7  ;;  %v1951_v7 = vor.u32 1.1754944e-38, %v1950_v3 }
 0x8a5   :  { %2251 = vmatpush.msrb.mxu0 %v3046_v42  ;;  %v4077_v11 = vpop.xlane.xlu2 %1874  ;;  %v1839_v39 = vpop.xlane.xlu1 %1838  ;;  %v1902_v2 = vsel %vm1901_vm10, %v3178_v22, %v1898_v9  ;;  %v1948_v22 = vand.u32 2147483647, %v4072_v25 }
 0x8a6   :  { %3181 = vrcp.f32 %v1839_v39  ;;  %v1907_v19 = vsel %vm1904_vm11, %v1906_v55, %v1902_v2  ;;  %v1920_v18 = vand.u32 2147483648, %v1839_v39  ;;  %v1918_v28 = vand.u32 2147483647, %v1839_v39 }
 0x8a7   :  { %v1908_v37 = vmul.f32 %v3995_v8, %v1907_v19  ;;  %3183 = vrcp.f32 %v4074_v0  ;;  %v1942_v8 = vmul.f32 %v3180_v15, %v1941_v51  ;;  %vm1914_vm13 = vweird.f32 %v1839_v39 }
 0x8a8   :  { %v1921_v41 = vor.u32 1.1754944e-38, %v1920_v18  ;;  %vm1919_vm3 = vcmp.eq.f32.partialorder %v1918_v28, 8.507059e+37  ;;  %vm1949_vm10 = vcmp.eq.f32.partialorder %v1948_v22, 8.507059e+37  ;;  %v2098_v22 = vand.u32 2147483647, %v4077_v11 }
 0x8a9   :  { %2933 = vmatmul.msk.f32.gmra.mxu1 %vm444_vm2, %v1908_v37  ;;  %v1943_v56 = vadd.f32 %v3180_v15, %v1942_v8  ;;  %v1965_v37 = vand.u32 2147483648, %v4074_v0 }
 0x8ac   :  { %v3182_v38 = vpop.eup %3181 }
 0x8ad   :  { %v1842_v57 = vpop.xlane.xlu2 %1841  ;;  %v1910_v21 = vmul.f32 %v3182_v38, %v1839_v39  ;;  %v4083_v29 = vpop.eup %3183  ;;  %vm1915_vm12 = vweird.f32 %v3182_v38 }
 0x8ae   :  { %3185 = vrcp.f32 %v1842_v57  ;;  %v1955_v14 = vmul.f32 %v4083_v29, %v4074_v0  ;;  %vm1916_vm14 = vmor %vm1914_vm13, %vm1915_vm12  ;;  %v1935_v59 = vand.u32 2147483648, %v1842_v57  ;;  %v1933_v61 = vand.u32 2147483647, %v1842_v57 }
 0x8af   :  { %v1911_v63 = vsub.f32 1.0, %v1910_v21  ;;  %3187 = vrcp.f32 %v4077_v11  ;;  %vm1929_vm8 = vweird.f32 %v1842_v57  ;;  %vm1960_vm12 = vweird.f32 %v4083_v29 }
 0x8b0   :  { %v1956_v49 = vsub.f32 1.0, %v1955_v14  ;;  %v1936_v6 = vor.u32 1.1754944e-38, %v1935_v59  ;;  %vm1934_vm11 = vcmp.eq.f32.partialorder %v1933_v61, 8.507059e+37  ;;  %vm1959_vm13 = vweird.f32 %v4074_v0 }
 0x8b1   :  { %v1912_v10 = vmul.f32 %v3182_v38, %v1911_v63  ;;  %v1963_v21 = vand.u32 2147483647, %v4074_v0  ;;  %v1966_v63 = vor.u32 1.1754944e-38, %v1965_v37 }
 0x8b2   :  { %v1957_v4 = vmul.f32 %v4083_v29, %v1956_v49 }
 0x8b3   :  { %v1913_v1 = vadd.f32 %v3182_v38, %v1912_v10 }
 0x8b4   :  { %v3186_v35 = vpop.eup %3185 }
 0x8b5   :  { %v1925_v43 = vmul.f32 %v3186_v35, %v1842_v57  ;;  %v4087_v45 = vpop.xlane.xlu2 %1859  ;;  %v1917_v12 = vsel %vm1916_vm14, %v3182_v38, %v1913_v1  ;;  %vm1930_vm5 = vweird.f32 %v3186_v35  ;;  %v4103_v9 = vpop.eup %3187  ;;  %vm1961_vm14 = vmor %vm1959_vm13, %vm1960_vm12  ;;  %vm2099_vm12 = vcmp.eq.f32.partialorder %v2098_v22, 8.507059e+37 }
 0x8b6   :  { %v1922_v40 = vsel %vm1919_vm3, %v1921_v41, %v1917_v12  ;;  %vm1931_vm9 = vmor %vm1929_vm8, %vm1930_vm5  ;;  %v2090_v16 = vmul.f32 %v4103_v9, %v4077_v11  ;;  %vm1964_vm3 = vcmp.eq.f32.partialorder %v1963_v21, 8.507059e+37  ;;  %vm2095_vm6 = vweird.f32 %v4103_v9 }
 0x8b7   :  { %v1926_v47 = vsub.f32 1.0, %v1925_v43  ;;  %v1923_v44 = vmul.f32 %v4007_v46, %v1922_v40  ;;  %v1947_v46 = vsel %vm4096_vm7, %v3180_v15, %v1943_v56  ;;  %v1958_v15 = vadd.f32 %v4083_v29, %v1957_v4 }
 0x8b8   :  { %v1952_v39 = vsel %vm1949_vm10, %v1951_v7, %v1947_v46  ;;  %v2091_v18 = vsub.f32 1.0, %v2090_v16 }
 0x8b9   :  { %v1927_v58 = vmul.f32 %v3186_v35, %v1926_v47  ;;  %2936 = vmatmul.msk.f32.vlgmr.msrb.gmra.mxu3 %vm444_vm2, %v1923_v44  ;;  %v1953_v57 = vmul.f32 %v3990_v20, %v1952_v39  ;;  %v1962_v51 = vsel %vm1961_vm14, %v4083_v29, %v1958_v15 }
 0x8ba   :  { %v2092_v14 = vmul.f32 %v4103_v9, %v2091_v18  ;;  %v2025_v18 = vand.u32 2147483648, %v4087_v45 }
 0x8bb   :  { %v1928_v50 = vadd.f32 %v3186_v35, %v1927_v58  ;;  %v2100_v58 = vand.u32 2147483648, %v4077_v11 }
 0x8bc   :  { %v2093_v49 = vadd.f32 %v4103_v9, %v2092_v14 }
 0x8bd   :  { %v1863_v42 = vpop.xlane.xlu2 %1862  ;;  %v1932_v25 = vsel %vm1931_vm9, %v3186_v35, %v1928_v50  ;;  %v3039_v31 = vpop.permute.xlu1 %3038  ;;  %v1967_v35 = vsel %vm1964_vm3, %v1966_v63, %v1962_v51  ;;  %vm2094_vm9 = vweird.f32 %v4077_v11  ;;  %v2101_v11 = vor.u32 1.1754944e-38, %v2100_v58 }
 0x8be   :  { %3189 = vrcp.f32 %v1863_v42  ;;  %v3040_v55 = vunpack.i.l.bf16 %v3039_v31  ;;  %v1937_v2 = vsel %vm1934_vm11, %v1936_v6, %v1932_v25  ;;  %v3041_v38 = vunpack.i.h.bf16 %v3039_v31  ;;  %vm4142_vm10 = vmor %vm2094_vm9, %vm2095_vm6 }
 0x8bf   :  { %v1938_v19 = vmul.f32 %v4016_v54, %v1937_v2  ;;  %3191 = vrcp.f32 %v4087_v45  ;;  %v2040_v0 = vand.u32 2147483648, %v1863_v42  ;;  %v2038_v41 = vand.u32 2147483647, %v1863_v42 }
 0x8c0   :  { %2285 = vmatpush.msrb.mxu1 %v3040_v55  ;;  %v1968_v29 = vmul.f32 %v4000_v53, %v1967_v35  ;;  %vm2034_vm5 = vweird.f32 %v1863_v42  ;;  %v2097_v4 = vsel %vm4142_vm10, %v4103_v9, %v2093_v49  ;;  %vm2019_vm3 = vweird.f32 %v4087_v45 }
 0x8c1   :  { %2937 = vmatmul.msk.f32.gmra.mxu3 %vm444_vm2, %v1938_v19  ;;  %v2041_v56 = vor.u32 1.1754944e-38, %v2040_v0  ;;  %vm2039_vm8 = vcmp.eq.f32.partialorder %v2038_v41, 8.507059e+37  ;;  %v2102_v9 = vsel %vm2099_vm12, %v2101_v11, %v2097_v4  ;;  %v2026_v4 = vor.u32 1.1754944e-38, %v2025_v18 }
 0x8c2   :  { %2286 = vmatpush.msrb.mxu1 %v3041_v38 }
 0x8c3   :  { %2940 = vmatmul.msk.f32.vlgmr.msrb.gmra.mxu1 %vm444_vm2, %v1953_v57 }
 0x8c4   :  { %v3190_v54 = vpop.eup %3189 }
 0x8c5   :  { %v2030_v10 = vmul.f32 %v3190_v54, %v1863_v42  ;;  %v4118_v28 = vpop.xlane.xlu2 %1865  ;;  %v4121_v8 = vpop.eup %3191  ;;  %vm2035_vm4 = vweird.f32 %v3190_v54 }
 0x8c6   :  { %3193 = vrcp.f32 %v4118_v28  ;;  %v2015_v47 = vmul.f32 %v4121_v8, %v4087_v45  ;;  %vm2036_vm7 = vmor %vm2034_vm5, %vm2035_vm4  ;;  %v2055_v6 = vand.u32 2147483648, %v4118_v28  ;;  %v2053_v25 = vand.u32 2147483647, %v4118_v28 }
 0x8c7   :  { %v2031_v20 = vsub.f32 1.0, %v2030_v10  ;;  %vm2049_vm13 = vweird.f32 %v4118_v28  ;;  %vm2020_vm9 = vweird.f32 %v4121_v8 }
 0x8c8   :  { %v2016_v50 = vsub.f32 1.0, %v2015_v47  ;;  %v2056_v19 = vor.u32 1.1754944e-38, %v2055_v6  ;;  %vm2054_vm4 = vcmp.eq.f32.partialorder %v2053_v25, 8.507059e+37 }
 0x8c9   :  { %v2032_v1 = vmul.f32 %v3190_v54, %v2031_v20 }
 0x8ca   :  { %v2017_v2 = vmul.f32 %v4121_v8, %v2016_v50 }
 0x8cb   :  { %v2033_v43 = vadd.f32 %v3190_v54, %v2032_v1  ;;  %v4125_v12 = vpop.xlane.xlu0 %1856  ;;  %2941 = vmatmul.msk.f32.gmra.mxu1 %vm444_vm2, %v1968_v29  ;;  %v2023_v29 = vand.u32 2147483647, %v4087_v45 }
 0x8cc   :  { %v3194_v40 = vpop.eup %3193  ;;  %3195 = vrcp.f32 %v4125_v12  ;;  %v2008_v57 = vand.u32 2147483647, %v4125_v12  ;;  %v2010_v21 = vand.u32 2147483648, %v4125_v12  ;;  %vm2004_vm6 = vweird.f32 %v4125_v12 }
 0x8cd   :  { %v2037_v44 = vsel %vm2036_vm7, %v3190_v54, %v2033_v43  ;;  %v2045_v53 = vmul.f32 %v3194_v40, %v4118_v28  ;;  %v4134_v3 = vpop.xlane.xlu2 %1850  ;;  %vm2050_vm11 = vweird.f32 %v3194_v40  ;;  %v2018_v41 = vadd.f32 %v4121_v8, %v2017_v2 }
 0x8ce   :  { %v2042_v59 = vsel %vm2039_vm8, %v2041_v56, %v2037_v44  ;;  %3197 = vrcp.f32 %v4134_v3  ;;  %vm2051_vm14 = vmor %vm2049_vm13, %vm2050_vm11  ;;  %v1980_v10 = vand.u32 2147483648, %v4134_v3  ;;  %v1978_v0 = vand.u32 2147483647, %v4134_v3 }
 0x8cf   :  { %v2046_v61 = vsub.f32 1.0, %v2045_v53  ;;  %v2043_v46 = vmul.f32 %v4026_v52, %v2042_v59  ;;  %v2011_v1 = vor.u32 1.1754944e-38, %v2010_v21  ;;  %vm2009_vm10 = vcmp.eq.f32.partialorder %v2008_v57, 8.507059e+37 }
 0x8d0   :  { %vm1974_vm11 = vweird.f32 %v4134_v3  ;;  %v1981_v56 = vor.u32 1.1754944e-38, %v1980_v10  ;;  %vm1979_vm13 = vcmp.eq.f32.partialorder %v1978_v0, 8.507059e+37 }
 0x8d1   :  { %v2047_v7 = vmul.f32 %v3194_v40, %v2046_v61  ;;  %2938 = vmatmul.msk.f32.vlgmr.msrb.gmra.mxu0 %vm444_vm2, %v2043_v46  ;;  %v2103_v46 = vmul.f32 %v4009_v62, %v2102_v9 }
 0x8d2   :  { %v3196_v42 = vpop.eup %3195 }
 0x8d3   :  { %v2000_v31 = vmul.f32 %v3196_v42, %v4125_v12  ;;  %v4155_v52 = vpop.xlane.xlu0 %1868  ;;  %v2048_v39 = vadd.f32 %v3194_v40, %v2047_v7  ;;  %vm2005_vm5 = vweird.f32 %v3196_v42 }
 0x8d4   :  { %v3198_v55 = vpop.eup %3197  ;;  %3199 = vrcp.f32 %v4155_v52  ;;  %vm2006_vm8 = vmor %vm2004_vm6, %vm2005_vm5 }
 0x8d5   :  { %v2001_v15 = vsub.f32 1.0, %v2000_v31  ;;  %v1970_v37 = vmul.f32 %v3198_v55, %v4134_v3  ;;  %v4161_v16 = vpop.xlane.xlu2 %1853  ;;  %v2052_v38 = vsel %vm2051_vm14, %v3194_v40, %v2048_v39  ;;  %vm1975_vm7 = vweird.f32 %v3198_v55  ;;  %vm4190_vm14 = vmor %vm2019_vm3, %vm2020_vm9 }
 0x8d6   :  { %3201 = vrcp.f32 %v4161_v16  ;;  %v2057_v63 = vsel %vm2054_vm4, %v2056_v19, %v2052_v38  ;;  %vm1976_vm12 = vmor %vm1974_vm11, %vm1975_vm7  ;;  %v1995_v6 = vand.u32 2147483648, %v4161_v16  ;;  %vm2024_vm3 = vcmp.eq.f32.partialorder %v2023_v29, 8.507059e+37 }
 0x8d7   :  { %v2002_v54 = vmul.f32 %v3196_v42, %v2001_v15  ;;  %v1971_v51 = vsub.f32 1.0, %v1970_v37  ;;  %v2058_v28 = vmul.f32 %v4034_v13, %v2057_v63  ;;  %v1993_v11 = vand.u32 2147483647, %v4161_v16 }
 0x8d8   :  { %vm1989_vm5 = vweird.f32 %v4161_v16  ;;  %v1996_v31 = vor.u32 1.1754944e-38, %v1995_v6  ;;  %vm2064_vm9 = vweird.f32 %v4155_v52 }
 0x8d9   :  { %v2003_v20 = vadd.f32 %v3196_v42, %v2002_v54  ;;  %v1972_v35 = vmul.f32 %v3198_v55, %v1971_v51  ;;  %2939 = vmatmul.msk.f32.gmra.mxu0 %vm444_vm2, %v2058_v28  ;;  %vm1994_vm7 = vcmp.eq.f32.partialorder %v1993_v11, 8.507059e+37  ;;  %v1336_v11 = vld [vmem:[%s4430_s9 + $0x10] sm:$0xff] }
 0x8da   :  { %v4171_v14 = vpop.eup %3199 }
 0x8db   :  { %v2007_v43 = vsel %vm2006_vm8, %v3196_v42, %v2003_v20  ;;  %v1973_v13 = vadd.f32 %v3198_v55, %v1972_v35  ;;  %v4178_v12 = vpop.xlane.xlu0 %1871  ;;  %v2060_v49 = vmul.f32 %v4171_v14, %v4155_v52  ;;  %vm2065_vm8 = vweird.f32 %v4171_v14 }
 0x8dc   :  { %v3202_v40 = vpop.eup %3201  ;;  %v2012_v47 = vsel %vm2009_vm10, %v2011_v1, %v2007_v43  ;;  %3203 = vrcp.f32 %v4178_v12  ;;  %vm2066_vm10 = vmor %vm2064_vm9, %vm2065_vm8  ;;  %v2085_v28 = vand.u32 2147483648, %v4178_v12  ;;  %v2083_v0 = vand.u32 2147483647, %v4178_v12 }
 0x8dd   :  { %v1977_v44 = vsel %vm1976_vm12, %v3198_v55, %v1973_v13  ;;  %v1985_v53 = vmul.f32 %v3202_v40, %v4161_v16  ;;  %v3054_v58 = vpop.permute.xlu2 %3053  ;;  %v2013_v59 = vmul.f32 %v4040_v5, %v2012_v47  ;;  %v2022_v5 = vsel %vm4190_vm14, %v4121_v8, %v2018_v41 }
 0x8de   :  { %v1982_v3 = vsel %vm1979_vm13, %v1981_v56, %v1977_v44  ;;  %v3055_v22 = vunpack.i.l.bf16 %v3054_v58  ;;  %v2061_v7 = vsub.f32 1.0, %v2060_v49  ;;  %v3056_v45 = vunpack.i.h.bf16 %v3054_v58 }
 0x8df   :  { %v1986_v32 = vsub.f32 1.0, %v1985_v53  ;;  %2934 = vmatmul.msk.f32.vlgmr.msra.gmra.mxu2 %vm444_vm2, %v2013_v59  ;;  %v1983_v50 = vmul.f32 %v4042_v60, %v1982_v3  ;;  %vm1990_vm4 = vweird.f32 %v3202_v40  ;;  %v2027_v62 = vsel %vm2024_vm3, %v2026_v4, %v2022_v5 }
 0x8e0   :  { %2390 = vmatpush.msra.mxu0 %v3055_v22  ;;  %v2062_v25 = vmul.f32 %v4171_v14, %v2061_v7  ;;  %vm1991_vm6 = vmor %vm1989_vm5, %vm1990_vm4  ;;  %v2028_v55 = vmul.f32 %v4021_v27, %v2027_v62  ;;  %v2070_v16 = vand.u32 2147483648, %v4155_v52  ;;  %v2068_v27 = vand.u32 2147483647, %v4155_v52  ;;  %v1334_v62 = vld [vmem:[%s4430_s9] sm:$0xff] }
 0x8e1   :  { %v1987_v42 = vmul.f32 %v3202_v40, %v1986_v32  ;;  %2944 = vmatmul.msk.f32.vlgmr.msra.gmra.mxu3 %vm444_vm2, %v1983_v50  ;;  %vm2079_vm13 = vweird.f32 %v4178_v12  ;;  %v2086_v29 = vor.u32 1.1754944e-38, %v2085_v28  ;;  %vm2084_vm4 = vcmp.eq.f32.partialorder %v2083_v0, 8.507059e+37 }
 0x8e2   :  { %v3204_v60 = vpop.eup %3203  ;;  %2391 = vmatpush.msra.mxu0 %v3056_v45  ;;  %v2063_v15 = vadd.f32 %v4171_v14, %v2062_v25  ;;  %vm2069_vm11 = vcmp.eq.f32.partialorder %v2068_v27, 8.507059e+37 }
 0x8e3   :  { %2946 = vmatmul.msk.f32.vlgmr.msra.gmra.mxu0 %vm444_vm2, %v2103_v46  ;;  %v1988_v8 = vadd.f32 %v3202_v40, %v1987_v42  ;;  %v2075_v39 = vmul.f32 %v3204_v60, %v4178_v12  ;;  %vm2080_vm12 = vweird.f32 %v3204_v60  ;;  %v1337_v42 = vld [vmem:[%s4430_s9 + $0x18] sm:$0xff] }
 0x8e4   :  { %v2067_v57 = vsel %vm2066_vm10, %v4171_v14, %v2063_v15  ;;  %vm2081_vm14 = vmor %vm2079_vm13, %vm2080_vm12  ;;  %2486 = vmatpush.msra.mxu1 %v1337_v42 }
 0x8e5   :  { %v1992_v9 = vsel %vm1991_vm6, %v3202_v40, %v1988_v8  ;;  %v2076_v37 = vsub.f32 1.0, %v2075_v39 }
 0x8e6   :  { %v1997_v2 = vsel %vm1994_vm7, %v1996_v31, %v1992_v9  ;;  %2487 = vmatpush.msra.mxu1 %v1336_v11 }
 0x8e7   :  { %2935 = vmatmul.msk.f32.gmra.mxu2 %vm444_vm2, %v2028_v55  ;;  %v1998_v19 = vmul.f32 %v4051_v30, %v1997_v2  ;;  %v2077_v21 = vmul.f32 %v3204_v60, %v2076_v37  ;;  %v2071_v30 = vor.u32 1.1754944e-38, %v2070_v16 }
 0x8e8   :  { %v1878_v38 = vpop.xlane.xlu1 %1877 }
 0x8e9   :  { %2945 = vmatmul.msk.f32.gmra.mxu3 %vm444_vm2, %v1998_v19  ;;  %3205 = vrcp.f32 %v1878_v38  ;;  %v2072_v51 = vsel %vm2069_vm11, %v2071_v30, %v2067_v57  ;;  %v2078_v10 = vadd.f32 %v3204_v60, %v2077_v21  ;;  %v2115_v1 = vand.u32 2147483648, %v1878_v38 }
 0x8ea   :  { %v2073_v52 = vmul.f32 %v4049_v23, %v2072_v51  ;;  %v2113_v13 = vand.u32 2147483647, %v1878_v38  ;;  %vm2109_vm5 = vweird.f32 %v1878_v38 }
 0x8eb   :  { %v2082_v41 = vsel %vm2081_vm14, %v3204_v60, %v2078_v10  ;;  %v2116_v56 = vor.u32 1.1754944e-38, %v2115_v1  ;;  %v1335_v60 = vld [vmem:[%s4430_s9 + $0x8] sm:$0xff] }
 0x8ec   :  { %v2087_v40 = vsel %vm2084_vm4, %v2086_v29, %v2082_v41  ;;  %vm2114_vm7 = vcmp.eq.f32.partialorder %v2113_v13, 8.507059e+37  ;;  %2488 = vmatpush.msra.mxu1 %v1335_v60  ;;  %v2614_v60 = vld [vmem:[%s4434_s11 + $0x18] sm:$0xff] }
 0x8ed   :  { %v2088_v12 = vmul.f32 %v4057_v34, %v2087_v40 }
 0x8ee   :  { %v3049_v54 = vpop.permute.xlu0 %3048  ;;  %2489 = vmatpush.msra.mxu1 %v1334_v62  ;;  %v2613_v62 = vld [vmem:[%s4434_s11 + $0x10] sm:$0xff] }
 0x8ef   :  { %v3050_v63 = vunpack.i.l.bf16 %v3049_v54  ;;  %v3206_v18 = vpop.eup %3205  ;;  %v3051_v35 = vunpack.i.h.bf16 %v3049_v54 }
 0x8f0   :  { %v2105_v20 = vmul.f32 %v3206_v18, %v1878_v38  ;;  %vm2110_vm3 = vweird.f32 %v3206_v18 }
 0x8f1   :  { %2320 = vmatpush.msrb.mxu2 %v3050_v63  ;;  %vm2111_vm6 = vmor %vm2109_vm5, %vm2110_vm3  ;;  %vm2676_vm5 = vcmask 523264  }
 0x8f2   :  { %v2106_v14 = vsub.f32 1.0, %v2105_v20 }
 0x8f3   :  { %2321 = vmatpush.msrb.mxu2 %v3051_v35 }
 0x8f4   :  { %2942 = vmatmul.msk.f32.vlgmr.msrb.gmra.mxu2 %vm444_vm2, %v2073_v52  ;;  %v2107_v43 = vmul.f32 %v3206_v18, %v2106_v14  ;;  %v3062_v52 = vld [vmem:[%s4429_s10] ss:$0 sm:$0xff] }
 0x8f5   :  { %2643 = vmatpush.msra.mxu2 %v2614_v60 }
 0x8f6   :  { %v2108_v47 = vadd.f32 %v3206_v18, %v2107_v43 }
 0x8f7   :  { %v2148_v53 = vpop.f32.mrf.mxu1  ;;  %2644 = vmatpush.msra.mxu2 %v2613_v62  ;;  %v2666_v62 = vld [vmem:[%s4435_s13 + $0x10] sm:$0xff] }
 0x8f8   :  { %v2112_v23 = vsel %vm2111_vm6, %v3206_v18, %v2108_v47 }
 0x8f9   :  { %v2117_v49 = vsel %vm2114_vm7, %v2116_v56, %v2112_v23 }
 0x8fa   :  { %v2118_v44 = vmul.f32 %v4062_v17, %v2117_v49 }
 0x8fc   :  { %2943 = vmatmul.msk.f32.gmra.mxu2 %vm444_vm2, %v2088_v12  ;;  %2947 = vmatmul.msk.f32.gmra.mxu0 %vm444_vm2, %v2118_v44 }
 0x926   :  { %v2151_v58 = vpop.f32.mrf.mxu1 }
 0x93c   :  { %v2218_v59 = vpop.f32.mrf.mxu3 }
 0x940   :  { %v2288_v3 = vpop.f32.mrf.mxu1 }
 0x941   :  { %2419 = vrot.lane.b32.xlu0 %v2288_v3, %s3238_s6 }
 0x944   :  { %v2221_v22 = vpop.f32.mrf.mxu3 }
 0x945   :  { %2405 = vrot.lane.b32.xlu2 %v2221_v22, %s4492_s15 }
 0x948   :  { %v2291_v34 = vpop.f32.mrf.mxu1 }
 0x949   :  { %2403 = vrot.lane.b32.xlu0 %v2218_v59, %s4492_s15 }
 0x94e   :  { %v2253_v61 = vpop.f32.mrf.mxu0 }
 0x94f   :  { %2407 = vrot.lane.b32.xlu2 %v2253_v61, %s4492_s15 }
 0x951   :  { %2421 = vrot.lane.b32.xlu0 %v2291_v34, %s3238_s6 }
 0x956   :  { %v2256_v17 = vpop.f32.mrf.mxu0 }
 0x960   :  { %v2393_v32 = vpop.f32.mrf.mxu0 }
 0x961   :  { %2439 = vrot.lane.b32.xlu2 %v2393_v32, %s3237_s30 }
 0x962   :  { %v2183_v46 = vpop.f32.mrf.mxu2 }
 0x964   :  { %v2358_v50 = vpop.f32.mrf.mxu3 }
 0x965   :  { %2435 = vrot.lane.b32.xlu0 %v2358_v50, %s3237_s30 }
 0x96a   :  { %v2186_v4 = vpop.f32.mrf.mxu2 }
 0x96c   :  { %v2361_v5 = vpop.f32.mrf.mxu3 }
 0x96d   :  { %2437 = vrot.lane.b32.xlu1 %v2361_v5, %s3237_s30 }
 0x977   :  { %v2323_v7 = vpop.f32.mrf.mxu2 }
 0x978   :  { %2423 = vrot.lane.b32.xlu0 %v2323_v7, %s3238_s6 }
 0x979   :  { %v2396_v45 = vpop.f32.mrf.mxu0 }
 0x97f   :  { %v2326_v6 = vpop.f32.mrf.mxu2 }
 0x980   :  { %2409 = vrot.lane.b32.xlu0 %v2256_v17, %s4492_s15  ;;  %2425 = vrot.lane.b32.xlu2 %v2326_v6, %s3238_s6 }
 0x988   :  { %2441 = vrot.lane.b32.xlu0 %v2396_v45, %s3237_s30 }
 0x99f   :  { %v2406_v19 = vpop.permute.xlu2 %2405 }
 0x9a0   :  { %v2448_v15 = vsel %vm151_vm1, %v2151_v58, %v2406_v19 }
 0x9a9   :  { %v2408_v27 = vpop.permute.xlu2 %2407 }
 0x9aa   :  { %v2449_v57 = vsel %vm151_vm1, %v2183_v46, %v2408_v27 }
 0x9b3   :  { %v2420_v8 = vpop.permute.xlu0 %2419 }
 0x9bb   :  { %v2404_v25 = vpop.permute.xlu0 %2403  ;;  %v2440_v30 = vpop.permute.xlu2 %2439 }
 0x9bc   :  { %v2447_v39 = vsel %vm151_vm1, %v2148_v53, %v2404_v25  ;;  %v2611_v25 = vld [vmem:[%s4434_s11] sm:$0xff] }
 0x9bd   :  { %v2451_v55 = vsel %vm444_vm2, %v2447_v39, %v2420_v8  ;;  %v2612_v8 = vld [vmem:[%s4434_s11 + $0x8] sm:$0xff] }
 0x9be   :  { %2645 = vmatpush.msra.mxu2 %v2612_v8  ;;  %v2665_v8 = vld [vmem:[%s4435_s13 + $0x8] sm:$0xff] }
 0x9c0   :  { %2646 = vmatpush.msra.mxu2 %v2611_v25  ;;  %v2664_v25 = vld [vmem:[%s4435_s13] sm:$0xff] }
 0x9c3   :  { %v2422_v31 = vpop.permute.xlu0 %2421 }
 0x9c4   :  { %v2452_v37 = vsel %vm444_vm2, %v2448_v15, %v2422_v31 }
 0x9d7   :  { %v2436_v9 = vpop.permute.xlu0 %2435 }
 0x9d8   :  { %v2455_v2 = vsel %vm1165_vm15, %v2451_v55, %v2436_v9 }
 0x9d9   :  { %2948 = vmatmul.msk.f32.vlgmr.msra.gmra.mxu1 %vm91_vm0, %v2455_v2 }
 0x9da   :  { %v2426_v10 = vpop.permute.xlu2 %2425 }
 0x9df   :  { %v2438_v16 = vpop.permute.xlu1 %2437 }
 0x9e0   :  { %v2456_v38 = vsel %vm1165_vm15, %v2452_v37, %v2438_v16 }
 0x9e1   :  { %2949 = vmatmul.msk.f32.gmra.mxu1 %vm91_vm0, %v2456_v38 }
 0x9ea   :  { %v2424_v21 = vpop.permute.xlu0 %2423 }
 0x9eb   :  { %v2453_v54 = vsel %vm444_vm2, %v2449_v57, %v2424_v21 }
 0x9ec   :  { %v2457_v51 = vsel %vm1165_vm15, %v2453_v54, %v2440_v30 }
 0x9ed   :  { %2950 = vmatmul.msk.f32.gmra.mxu1 %vm91_vm0, %v2457_v51  ;;  %v4314_v51 = vld [vmem:[%s4431_s17] ss:$0 sm:$0xff] }
 0x9f2   :  { %v2410_v63 = vpop.permute.xlu0 %2409 }
 0x9f3   :  { %v2450_v18 = vsel %vm151_vm1, %v2186_v4, %v2410_v63 }
 0x9f4   :  { %v2454_v20 = vsel %vm444_vm2, %v2450_v18, %v2426_v10 }
 0x9fa   :  { %v2442_v28 = vpop.permute.xlu0 %2441 }
 0x9fb   :  { %v2458_v35 = vsel %vm1165_vm15, %v2454_v20, %v2442_v28 }
 0x9fc   :  { %2951 = vmatmul.msk.f32.gmra.mxu1 %vm91_vm0, %v2458_v35  ;;  %v3064_v35 = vld [vmem:[%s4432_s18] ss:$0 sm:$0xff] }
 0xa56   :  { %v2491_v0 = vpop.f32.mrf.mxu1 }
 0xa57   :  { %v2492_v14 = vadd.f32 %v3062_v52, %v2491_v0 }
 0xa59   :  { %v2503_v1 = vadd.f32 %v2492_v14, %v3818_v36 }
 0xa5b   :  { %v2509_v41 = vsel %vm91_vm0, %v2503_v1, 0.0 }
 0xa5c   :  { %2510 = vadd.xlane.f32.xlu1 %v2509_v41 }
 0xa5e   :  { %v2494_v29 = vpop.f32.mrf.mxu1 }
 0xa5f   :  { %v2495_v43 = vadd.f32 %v3062_v52, %v2494_v29 }
 0xa61   :  { %v2504_v13 = vadd.f32 %v2495_v43, %v3823_v48 }
 0xa63   :  { %v2512_v40 = vsel %vm91_vm0, %v2504_v13, 0.0 }
 0xa64   :  { %2513 = vadd.xlane.f32.xlu2 %v2512_v40 }
 0xa6a   :  { %v2497_v47 = vpop.f32.mrf.mxu1 }
 0xa6b   :  { %v2498_v56 = vadd.f32 %v3062_v52, %v2497_v47  ;;  %v2671_v47 = vld [vmem:[%s4435_s13 + $0x38] sm:$0xff] }
 0xa6c   :  { %2697 = vmatpush.msrb.mxu3 %v2671_v47 }
 0xa6d   :  { %v2505_v23 = vadd.f32 %v2498_v56, %v3829_v26  ;;  %v2670_v56 = vld [vmem:[%s4435_s13 + $0x30] sm:$0xff] }
 0xa6e   :  { %2698 = vmatpush.msrb.mxu3 %v2670_v56 }
 0xa6f   :  { %v2515_v12 = vsel %vm91_vm0, %v2505_v23, 0.0 }
 0xa70   :  { %2516 = vadd.xlane.f32.xlu0 %v2515_v12 }
 0xa79   :  { %v2500_v49 = vpop.f32.mrf.mxu1 }
 0xa7a   :  { %v2501_v44 = vadd.f32 %v3062_v52, %v2500_v49  ;;  %v2669_v49 = vld [vmem:[%s4435_s13 + $0x28] sm:$0xff] }
 0xa7b   :  { %2699 = vmatpush.msrb.mxu3 %v2669_v49 }
 0xa7c   :  { %v2506_v36 = vadd.f32 %v2501_v44, %v3835_v33 }
 0xa7e   :  { %v2518_v53 = vsel %vm91_vm0, %v2506_v36, 0.0 }
 0xa7f   :  { %2519 = vadd.xlane.f32.xlu1 %v2518_v53 }
 0xacf   :  { %v2511_v58 = vpop.xlane.xlu1 %2510 }
 0xad0   :  { %v2521_v48 = vmul.f32 %v2511_v58, %v3781_v24 }
 0xad2   :  { %v2525_v59 = vsub.f32 %v2503_v1, %v2521_v48  ;;  %v2668_v48 = vld [vmem:[%s4435_s13 + $0x20] sm:$0xff] }
 0xad3   :  { %2700 = vmatpush.msrb.mxu3 %v2668_v48 }
 0xad4   :  { %v2529_v3 = vmul.f32 %v2525_v59, %v2525_v59 }
 0xad6   :  { %v2533_v22 = vsel %vm91_vm0, %v2529_v3, 0.0 }
 0xad7   :  { %2534 = vadd.xlane.f32.xlu2 %v2533_v22  ;;  %v2514_v61 = vpop.xlane.xlu2 %2513  ;;  %v2667_v22 = vld [vmem:[%s4435_s13 + $0x18] sm:$0xff] }
 0xad8   :  { %v2522_v26 = vmul.f32 %v2514_v61, %v3781_v24  ;;  %2701 = vmatpush.msrb.mxu3 %v2667_v22 }
 0xada   :  { %v4280_v34 = vsub.f32 %v2504_v13, %v2522_v26  ;;  %2702 = vmatpush.msrb.mxu3 %v2666_v62 }
 0xadc   :  { %v2530_v17 = vmul.f32 %v4280_v34, %v4280_v34  ;;  %2703 = vmatpush.msrb.mxu3 %v2665_v8 }
 0xade   :  { %v2536_v33 = vsel %vm91_vm0, %v2530_v17, 0.0  ;;  %2704 = vmatpush.msrb.mxu3 %v2664_v25 }
 0xadf   :  { %2537 = vadd.xlane.f32.xlu0 %v2536_v33 }
 0xae3   :  { %v2517_v32 = vpop.xlane.xlu0 %2516 }
 0xae4   :  { %v2523_v50 = vmul.f32 %v2517_v32, %v3781_v24 }
 0xae6   :  { %v4286_v46 = vsub.f32 %v2505_v23, %v2523_v50 }
 0xae8   :  { %v2531_v5 = vmul.f32 %v4286_v46, %v4286_v46 }
 0xaea   :  { %v2539_v4 = vsel %vm91_vm0, %v2531_v5, 0.0 }
 0xaeb   :  { %2540 = vadd.xlane.f32.xlu1 %v2539_v4 }
 0xaf2   :  { %v2520_v7 = vpop.xlane.xlu1 %2519 }
 0xaf3   :  { %v2524_v6 = vmul.f32 %v2520_v7, %v3781_v24 }
 0xaf5   :  { %v4292_v45 = vsub.f32 %v2506_v36, %v2524_v6 }
 0xaf7   :  { %v2532_v42 = vmul.f32 %v4292_v45, %v4292_v45 }
 0xaf9   :  { %v2542_v11 = vsel %vm91_vm0, %v2532_v42, 0.0 }
 0xafa   :  { %2543 = vadd.xlane.f32.xlu2 %v2542_v11 }
 0xb4a   :  { %v2535_v31 = vpop.xlane.xlu2 %2534 }
 0xb4b   :  { %v2545_v39 = vmul.f32 %v2535_v31, %v3781_v24 }
 0xb4d   :  { %v2549_v55 = vadd.f32 1e-05, %v2545_v39 }
 0xb4f   :  { %3207 = vrsqrt.f32 %v2549_v55  ;;  %vm2559_vm2 = vweird.f32 %v2549_v55 }
 0xb52   :  { %v2538_v9 = vpop.xlane.xlu0 %2537 }
 0xb53   :  { %v2546_v2 = vmul.f32 %v2538_v9, %v3781_v24 }
 0xb55   :  { %v3208_v19 = vpop.eup %3207  ;;  %v2550_v15 = vadd.f32 1e-05, %v2546_v2 }
 0xb56   :  { %v2554_v37 = vmul.f32 %v3208_v19, %v2549_v55  ;;  %vm2560_vm1 = vweird.f32 %v3208_v19 }
 0xb57   :  { %3209 = vrsqrt.f32 %v2550_v15  ;;  %vm2561_vm15 = vmor %vm2559_vm2, %vm2560_vm1  ;;  %vm2569_vm9 = vweird.f32 %v2550_v15 }
 0xb58   :  { %v2555_v16 = vmul.f32 %v3208_v19, %v2554_v37 }
 0xb5a   :  { %v2556_v38 = vmul.f32 0.5, %v2555_v16 }
 0xb5c   :  { %v2557_v27 = vsub.f32 1.5, %v2556_v38 }
 0xb5d   :  { %v3210_v57 = vpop.eup %3209 }
 0xb5e   :  { %v2558_v21 = vmul.f32 %v3208_v19, %v2557_v27  ;;  %v2564_v30 = vmul.f32 %v3210_v57, %v2550_v15  ;;  %v2541_v54 = vpop.xlane.xlu1 %2540  ;;  %vm2570_vm8 = vweird.f32 %v3210_v57 }
 0xb5f   :  { %v2547_v63 = vmul.f32 %v2541_v54, %v3781_v24  ;;  %vm2571_vm10 = vmor %vm2569_vm9, %vm2570_vm8 }
 0xb60   :  { %v2562_v18 = vsel %vm2561_vm15, %v3208_v19, %v2558_v21  ;;  %v2565_v10 = vmul.f32 %v3210_v57, %v2564_v30  ;;  %v3066_v21 = vld [vmem:[%s4436_s14] ss:$0 sm:$0xff] }
 0xb61   :  { %v2593_v28 = vmul.f32 %v2562_v18, %v2525_v59  ;;  %v2551_v20 = vadd.f32 1e-05, %v2547_v63 }
 0xb62   :  { %v2566_v52 = vmul.f32 0.5, %v2565_v10 }
 0xb63   :  { %v2600_v0 = vmul.f32 %v4314_v51, %v2593_v28  ;;  %3211 = vrsqrt.f32 %v2551_v20  ;;  %vm2579_vm12 = vweird.f32 %v2551_v20 }
 0xb64   :  { %v2567_v14 = vsub.f32 1.5, %v2566_v52 }
 0xb65   :  { %v4321_v1 = vadd.f32 %v3064_v35, %v2600_v0 }
 0xb66   :  { %v2568_v41 = vmul.f32 %v3210_v57, %v2567_v14 }
 0xb67   :  { %2952 = vmatmul.msk.f32.vlgmr.msra.gmra.mxu2 %vm91_vm0, %v4321_v1 }
 0xb68   :  { %v2572_v29 = vsel %vm2571_vm10, %v3210_v57, %v2568_v41 }
 0xb69   :  { %v3212_v43 = vpop.eup %3211  ;;  %v2594_v13 = vmul.f32 %v2572_v29, %v4280_v34 }
 0xb6a   :  { %v2574_v40 = vmul.f32 %v3212_v43, %v2551_v20  ;;  %vm2580_vm11 = vweird.f32 %v3212_v43 }
 0xb6b   :  { %v2601_v23 = vmul.f32 %v4314_v51, %v2594_v13  ;;  %vm2581_vm13 = vmor %vm2579_vm12, %vm2580_vm11 }
 0xb6c   :  { %v2575_v12 = vmul.f32 %v3212_v43, %v2574_v40 }
 0xb6d   :  { %v2544_v44 = vpop.xlane.xlu2 %2543  ;;  %v4336_v36 = vadd.f32 %v3064_v35, %v2601_v23 }
 0xb6e   :  { %v2576_v53 = vmul.f32 0.5, %v2575_v12  ;;  %v2548_v58 = vmul.f32 %v2544_v44, %v3781_v24 }
 0xb6f   :  { %2953 = vmatmul.msk.f32.gmra.mxu2 %vm91_vm0, %v4336_v36 }
 0xb70   :  { %v2577_v59 = vsub.f32 1.5, %v2576_v53  ;;  %v2552_v3 = vadd.f32 1e-05, %v2548_v58 }
 0xb72   :  { %v2578_v61 = vmul.f32 %v3212_v43, %v2577_v59  ;;  %3213 = vrsqrt.f32 %v2552_v3  ;;  %vm2589_vm3 = vweird.f32 %v2552_v3 }
 0xb74   :  { %v2582_v26 = vsel %vm2581_vm13, %v3212_v43, %v2578_v61 }
 0xb75   :  { %v2595_v34 = vmul.f32 %v2582_v26, %v4286_v46 }
 0xb77   :  { %v2602_v17 = vmul.f32 %v4314_v51, %v2595_v34 }
 0xb78   :  { %v3214_v33 = vpop.eup %3213 }
 0xb79   :  { %v2584_v32 = vmul.f32 %v3214_v33, %v2552_v3  ;;  %v2609_v50 = vadd.f32 %v3064_v35, %v2602_v17  ;;  %vm2590_vm14 = vweird.f32 %v3214_v33 }
 0xb7a   :  { %vm2591_vm4 = vmor %vm2589_vm3, %vm2590_vm14 }
 0xb7b   :  { %v2585_v5 = vmul.f32 %v3214_v33, %v2584_v32  ;;  %2954 = vmatmul.msk.f32.gmra.mxu2 %vm91_vm0, %v2609_v50 }
 0xb7d   :  { %v2586_v4 = vmul.f32 0.5, %v2585_v5 }
 0xb7f   :  { %v2587_v7 = vsub.f32 1.5, %v2586_v4 }
 0xb81   :  { %v2588_v6 = vmul.f32 %v3214_v33, %v2587_v7 }
 0xb83   :  { %v2592_v42 = vsel %vm2591_vm4, %v3214_v33, %v2588_v6 }
 0xb84   :  { %v2596_v11 = vmul.f32 %v2592_v42, %v4292_v45  ;;  %v3065_v45 = vld [vmem:[%s4433_s12] ss:$0 sm:$0xff] }
 0xb86   :  { %v2603_v60 = vmul.f32 %v4314_v51, %v2596_v11 }
 0xb88   :  { %v2610_v46 = vadd.f32 %v3064_v35, %v2603_v60 }
 0xb8a   :  { %2955 = vmatmul.msk.f32.gmra.mxu2 %vm91_vm0, %v2610_v46 }
 0xbea   :  { %v2648_v31 = vpop.f32.mrf.mxu2 }
 0xbeb   :  { %v2649_v39 = vadd.f32 %v3065_v45, %v2648_v31 }
 0xbed   :  { %v2660_v55 = vmax.f32 %v2649_v39, 0.0  ;;  %v3067_v39 = vld [vmem:[%s4437_s19] ss:$0 sm:$0xff] }
 0xbef   :  { %2956 = vmatmul.msk.f32.vlgmr.msrb.gmra.mxu3 %vm2676_vm5, %v2660_v55 }
 0xbf2   :  { %v2651_v9 = vpop.f32.mrf.mxu2 }
 0xbf3   :  { %v2652_v2 = vadd.f32 %v3065_v45, %v2651_v9 }
 0xbf5   :  { %v2661_v19 = vmax.f32 %v2652_v2, 0.0 }
 0xbf7   :  { %2957 = vmatmul.msk.f32.gmra.mxu3 %vm2676_vm5, %v2661_v19  ;;  %v3068_v19 = vld [vmem:[%s4438_s20] ss:$0 sm:$0xff] }
 0xbfe   :  { %v2654_v15 = vpop.f32.mrf.mxu2 }
 0xbff   :  { %v2655_v37 = vadd.f32 %v3065_v45, %v2654_v15 }
 0xc01   :  { %v2662_v16 = vmax.f32 %v2655_v37, 0.0 }
 0xc03   :  { %2958 = vmatmul.msk.f32.gmra.mxu3 %vm2676_vm5, %v2662_v16 }
 0xc0d   :  { %v2657_v38 = vpop.f32.mrf.mxu2 }
 0xc0e   :  { %v2658_v27 = vadd.f32 %v3065_v45, %v2657_v38 }
 0xc10   :  { %v2663_v57 = vmax.f32 %v2658_v27, 0.0 }
 0xc12   :  { %2959 = vmatmul.msk.f32.gmra.mxu3 %vm2676_vm5, %v2663_v57 }
 0xc72   :  { %v2706_v30 = vpop.f32.mrf.mxu3 }
 0xc73   :  { %v2707_v54 = vadd.f32 %v3066_v21, %v2706_v30 }
 0xc75   :  { %v2718_v51 = vadd.f32 %v2707_v54, %v4321_v1 }
 0xc77   :  { %v2724_v63 = vsel %vm91_vm0, %v2718_v51, 0.0 }
 0xc78   :  { %2725 = vadd.xlane.f32.xlu0 %v2724_v63 }
 0xc7a   :  { %v2709_v18 = vpop.f32.mrf.mxu3 }
 0xc7b   :  { %v2710_v10 = vadd.f32 %v3066_v21, %v2709_v18 }
 0xc7d   :  { %v2719_v28 = vadd.f32 %v2710_v10, %v4336_v36 }
 0xc7f   :  { %v2727_v20 = vsel %vm91_vm0, %v2719_v28, 0.0 }
 0xc80   :  { %2728 = vadd.xlane.f32.xlu1 %v2727_v20 }
 0xc86   :  { %v2712_v35 = vpop.f32.mrf.mxu3 }
 0xc87   :  { %v2713_v52 = vadd.f32 %v3066_v21, %v2712_v35 }
 0xc89   :  { %v2720_v0 = vadd.f32 %v2713_v52, %v2609_v50 }
 0xc8b   :  { %v2730_v14 = vsel %vm91_vm0, %v2720_v0, 0.0 }
 0xc8c   :  { %2731 = vadd.xlane.f32.xlu2 %v2730_v14 }
 0xc95   :  { %v2715_v41 = vpop.f32.mrf.mxu3 }
 0xc96   :  { %v2716_v29 = vadd.f32 %v3066_v21, %v2715_v41 }
 0xc98   :  { %v2721_v43 = vadd.f32 %v2716_v29, %v2610_v46 }
 0xc9a   :  { %v2733_v1 = vsel %vm91_vm0, %v2721_v43, 0.0 }
 0xc9b   :  { %2734 = vadd.xlane.f32.xlu0 %v2733_v1 }
 0xceb   :  { %v2726_v13 = vpop.xlane.xlu0 %2725 }
 0xcec   :  { %v2736_v40 = vmul.f32 %v2726_v13, %v3781_v24 }
 0xcee   :  { %v2740_v47 = vsub.f32 %v2718_v51, %v2736_v40 }
 0xcf0   :  { %v2744_v56 = vmul.f32 %v2740_v47, %v2740_v47 }
 0xcf2   :  { %v2748_v23 = vsel %vm91_vm0, %v2744_v56, 0.0 }
 0xcf3   :  { %v2729_v12 = vpop.xlane.xlu1 %2728  ;;  %2749 = vadd.xlane.f32.xlu1 %v2748_v23 }
 0xcf4   :  { %v2737_v49 = vmul.f32 %v2729_v12, %v3781_v24 }
 0xcf6   :  { %v2741_v44 = vsub.f32 %v2719_v28, %v2737_v49 }
 0xcf8   :  { %v2745_v36 = vmul.f32 %v2741_v44, %v2741_v44 }
 0xcfa   :  { %v2751_v53 = vsel %vm91_vm0, %v2745_v36, 0.0 }
 0xcfb   :  { %2752 = vadd.xlane.f32.xlu2 %v2751_v53 }
 0xcff   :  { %v2732_v58 = vpop.xlane.xlu2 %2731 }
 0xd00   :  { %v2738_v48 = vmul.f32 %v2732_v58, %v3781_v24 }
 0xd02   :  { %v4379_v59 = vsub.f32 %v2720_v0, %v2738_v48 }
 0xd04   :  { %v2746_v3 = vmul.f32 %v4379_v59, %v4379_v59 }
 0xd06   :  { %v2754_v22 = vsel %vm91_vm0, %v2746_v3, 0.0 }
 0xd07   :  { %2755 = vadd.xlane.f32.xlu0 %v2754_v22 }
 0xd0e   :  { %v2735_v61 = vpop.xlane.xlu0 %2734 }
 0xd0f   :  { %v2739_v26 = vmul.f32 %v2735_v61, %v3781_v24 }
 0xd11   :  { %v4385_v34 = vsub.f32 %v2721_v43, %v2739_v26 }
 0xd13   :  { %v2747_v17 = vmul.f32 %v4385_v34, %v4385_v34 }
 0xd15   :  { %v2757_v33 = vsel %vm91_vm0, %v2747_v17, 0.0 }
 0xd16   :  { %2758 = vadd.xlane.f32.xlu1 %v2757_v33 }
 0xd66   :  { %v2750_v32 = vpop.xlane.xlu1 %2749 }
 0xd67   :  { %v2760_v50 = vmul.f32 %v2750_v32, %v3781_v24 }
 0xd69   :  { %v2764_v5 = vadd.f32 1e-05, %v2760_v50 }
 0xd6b   :  { %3215 = vrsqrt.f32 %v2764_v5  ;;  %vm2774_vm7 = vweird.f32 %v2764_v5 }
 0xd6e   :  { %v2753_v4 = vpop.xlane.xlu2 %2752 }
 0xd6f   :  { %v2761_v7 = vmul.f32 %v2753_v4, %v3781_v24 }
 0xd71   :  { %v3216_v6 = vpop.eup %3215  ;;  %v2765_v42 = vadd.f32 1e-05, %v2761_v7 }
 0xd72   :  { %v2769_v11 = vmul.f32 %v3216_v6, %v2764_v5  ;;  %vm2775_vm6 = vweird.f32 %v3216_v6 }
 0xd73   :  { %3217 = vrsqrt.f32 %v2765_v42  ;;  %vm2776_vm1 = vmor %vm2774_vm7, %vm2775_vm6  ;;  %vm2784_vm15 = vweird.f32 %v2765_v42 }
 0xd74   :  { %v2770_v60 = vmul.f32 %v3216_v6, %v2769_v11 }
 0xd76   :  { %v2771_v46 = vmul.f32 0.5, %v2770_v60 }
 0xd78   :  { %v2772_v62 = vsub.f32 1.5, %v2771_v46 }
 0xd79   :  { %v3218_v8 = vpop.eup %3217 }
 0xd7a   :  { %v2773_v25 = vmul.f32 %v3216_v6, %v2772_v62  ;;  %v2779_v45 = vmul.f32 %v3218_v8, %v2765_v42  ;;  %v2756_v31 = vpop.xlane.xlu0 %2755  ;;  %vm2785_vm2 = vweird.f32 %v3218_v8 }
 0xd7b   :  { %v2762_v55 = vmul.f32 %v2756_v31, %v3781_v24  ;;  %vm2786_vm8 = vmor %vm2784_vm15, %vm2785_vm2 }
 0xd7c   :  { %v2777_v9 = vsel %vm2776_vm1, %v3216_v6, %v2773_v25  ;;  %v2780_v2 = vmul.f32 %v3218_v8, %v2779_v45 }
 0xd7d   :  { %v2808_v15 = vmul.f32 %v2777_v9, %v2740_v47  ;;  %v2766_v37 = vadd.f32 1e-05, %v2762_v55 }
 0xd7e   :  { %v2781_v16 = vmul.f32 0.5, %v2780_v2 }
 0xd7f   :  { %v2815_v38 = vmul.f32 %v3067_v39, %v2808_v15  ;;  %3219 = vrsqrt.f32 %v2766_v37  ;;  %vm2794_vm10 = vweird.f32 %v2766_v37 }
 0xd80   :  { %v2782_v27 = vsub.f32 1.5, %v2781_v16 }
 0xd81   :  { %v2822_v57 = vadd.f32 %v3068_v19, %v2815_v38 }
 0xd82   :  { %v2783_v21 = vmul.f32 %v3218_v8, %v2782_v27 }
 0xd83   :  { %2826 = vst.msk [vmem:[%s4439_s21] sm:$0xff] %vm91_vm0, %v2822_v57 }
 0xd84   :  { %v2787_v30 = vsel %vm2786_vm8, %v3218_v8, %v2783_v21 }
 0xd85   :  { %v3220_v54 = vpop.eup %3219  ;;  %v2809_v51 = vmul.f32 %v2787_v30, %v2741_v44 }
 0xd86   :  { %v2789_v63 = vmul.f32 %v3220_v54, %v2766_v37  ;;  %vm2795_vm9 = vweird.f32 %v3220_v54 }
 0xd87   :  { %v2816_v18 = vmul.f32 %v3067_v39, %v2809_v51  ;;  %vm2796_vm11 = vmor %vm2794_vm10, %vm2795_vm9 }
 0xd88   :  { %v2790_v10 = vmul.f32 %v3220_v54, %v2789_v63 }
 0xd89   :  { %v2823_v28 = vadd.f32 %v3068_v19, %v2816_v18  ;;  %v2759_v20 = vpop.xlane.xlu1 %2758 }
 0xd8a   :  { %v2791_v35 = vmul.f32 0.5, %v2790_v10  ;;  %v2763_v52 = vmul.f32 %v2759_v20, %v3781_v24 }
 0xd8b   :  { %2827 = vst.msk [vmem:[%s4439_s21 + $0x8] sm:$0xff] %vm91_vm0, %v2823_v28 }
 0xd8c   :  { %v2792_v0 = vsub.f32 1.5, %v2791_v35  ;;  %v2767_v14 = vadd.f32 1e-05, %v2763_v52 }
 0xd8e   :  { %v2793_v41 = vmul.f32 %v3220_v54, %v2792_v0  ;;  %3221 = vrsqrt.f32 %v2767_v14  ;;  %vm2804_vm13 = vweird.f32 %v2767_v14 }
 0xd90   :  { %v2797_v29 = vsel %vm2796_vm11, %v3220_v54, %v2793_v41 }
 0xd91   :  { %v2810_v43 = vmul.f32 %v2797_v29, %v4379_v59 }
 0xd93   :  { %v2817_v1 = vmul.f32 %v3067_v39, %v2810_v43 }
 0xd94   :  { %v3222_v13 = vpop.eup %3221 }
 0xd95   :  { %v2824_v40 = vadd.f32 %v3068_v19, %v2817_v1  ;;  %v2799_v47 = vmul.f32 %v3222_v13, %v2767_v14  ;;  %vm2805_vm12 = vweird.f32 %v3222_v13 }
 0xd96   :  { %vm2806_vm14 = vmor %vm2804_vm13, %vm2805_vm12 }
 0xd97   :  { %2828 = vst.msk [vmem:[%s4439_s21 + $0x10] sm:$0xff] %vm91_vm0, %v2824_v40  ;;  %v2800_v24 = vmul.f32 %v3222_v13, %v2799_v47 }
 0xd99   :  { %v2801_v56 = vmul.f32 0.5, %v2800_v24 }
 0xd9b   :  { %v2802_v23 = vsub.f32 1.5, %v2801_v56 }
 0xd9d   :  { %v2803_v12 = vmul.f32 %v3222_v13, %v2802_v23 }
 0xd9f   :  { %v2807_v49 = vsel %vm2806_vm14, %v3222_v13, %v2803_v12 }
 0xda0   :  { %v2811_v44 = vmul.f32 %v2807_v49, %v4385_v34 }
 0xda2   :  { %v2818_v36 = vmul.f32 %v3067_v39, %v2811_v44 }
 0xda4   :  { %v2825_v53 = vadd.f32 %v3068_v19, %v2818_v36 }
 0xda6   :  { %2829 = vst.msk [vmem:[%s4439_s21 + $0x18] sm:$0xff] %vm91_vm0, %v2825_v53 }

</bundles_post_ra>
